<compile_context>
chip_gen: v7x
topology: tpu7x:2x2x1
jax: 0.10.0
libtpu: 0.0.40
codegen_flags: <defaults>
</compile_context>

<pallas_src>
import math

import jax
import jax.numpy as jnp
from jax.experimental import pallas as pl
from jax.experimental.pallas import tpu as pltpu

EPS = 1e-5

# n = [d, 256, 128, 64, r] with r = 32 (from the module); small d chosen here.
D = 128
R = 32
N_DIMS = [D, 256, 128, 64, R]
BATCH = 16

# ---------------------- static parameter-packing layout --------------------- #
# Layer order == one encoder->decoder pass (also the DMA chunk order).
ENC_DIMS = [(D, 256), (256, 128), (128, 64), (64, R)]
DEC_DIMS = [(R, 64), (64, 128), (128, 256), (256, D)]
ALL_DIMS = ENC_DIMS + DEC_DIMS

WIDE_COLS = 256     # slab 0: the two dout=256 layers (enc L0, dec L2)
NARROW_COLS = 128   # slab 1: everything else, dout zero-padded to 128 lanes


def _round_up(v, m):
    return ((v + m - 1) // m) * m


def _build_layout():
    layers = []
    rows = [0, 0]                      # running row count per slab
    for li, (din, dout) in enumerate(ALL_DIMS):
        has_bn = (li % 4) != 3         # 4th layer of each stack: bias, no BN
        slab = 0 if dout > NARROW_COLS else 1
        cols = WIDE_COLS if slab == 0 else NARROW_COLS
        din_eff = _round_up(din, NARROW_COLS)   # incoming activation width
        n_vec = 2 if has_bn else 1              # gamma+beta  or  bias
        nrows = _round_up(din_eff + n_vec, 8)   # 8-row aligned DMA chunk
        layers.append(dict(slab=slab, row0=rows[slab], din=din, dout=dout,
                           din_eff=din_eff, cols=cols, has_bn=has_bn,
                           nrows=nrows))
        rows[slab] += nrows
    return layers, rows[0], rows[1]


LAYERS, WIDE_ROWS, NARROW_ROWS = _build_layout()   # 272 x 256 and 1072 x 128


# ----------------------------- kernel -------------------------------------- #
def _bn_relu(z, gamma, beta):
    # PyTorch training-mode BatchNorm1d folded into one scale/shift.
    # gamma/beta are zero in padded columns, so those columns stay exactly 0.
    mean = jnp.mean(z, axis=0, keepdims=True)
    var = jnp.mean((z - mean) * (z - mean), axis=0, keepdims=True)
    scale = gamma * jax.lax.rsqrt(var + EPS)
    shift = beta - mean * scale
    return jnp.maximum(z * scale + shift, 0.0)


def autoencode_kernel(x_ref, wide_hbm, narrow_hbm, out_ref,
                      wide_v, narrow_v, sem):
    hbm = (wide_hbm, narrow_hbm)
    vmem = (wide_v, narrow_v)

    # Kick off every per-layer weight-chunk DMA up front.  Only chunk 0
    # (~136 KiB) is serial with compute; the rest are hidden behind the
    # preceding layers' matmul/BN work.  Pass 2 reuses the resident copies.
    copies = []
    for i, L in enumerate(LAYERS):
        s, r0, n = L['slab'], L['row0'], L['nrows']
        cp = pltpu.make_async_copy(hbm[s].at[pl.ds(r0, n)],
                                   vmem[s].at[pl.ds(r0, n)],
                                   sem.at[i])
        cp.start()
        copies.append(cp)

    def layer(h, idx, first_pass):
        L = LAYERS[idx]
        if first_pass:                 # weights already resident on pass 2
            copies[idx].wait()
        ref = vmem[L['slab']]
        r0, de = L['row0'], L['din_eff']
        w = ref[r0:r0 + de, :]         # full-lane-width, 8-row-aligned slice
        z = jnp.dot(h, w, preferred_element_type=jnp.float32)
        if L['has_bn']:
            gamma = ref[r0 + de:r0 + de + 1, :]
            beta = ref[r0 + de + 1:r0 + de + 2, :]
            return _bn_relu(z, gamma, beta)
        bias = ref[r0 + de:r0 + de + 1, :]
        return jnp.maximum(z + bias, 0.0)

    def stack(h, base, first_pass):
        for i in range(4):
            h = layer(h, base + i, first_pass)
        return h

    x = x_ref[...]
    e1 = stack(x, 0, True)     # encoder(x)   -> (B,128), real lanes 0:R
    d1 = stack(e1, 4, True)    # decoder(e1)  -> (B,128)
    e2 = stack(d1, 0, False)   # encoder(d1)
    d2 = stack(e2, 4, False)   # decoder(e2)
    out_ref[0] = d2            # lane-dense packed output: one full store each
    out_ref[1] = e2            # real values in lanes 0:R, zeros elsewhere


# ----------------------------- wrapper -------------------------------------- #
def pack_params(enc_params, dec_params):
    """One-time packing of all parameters into two lane-dense f32 slabs."""
    slabs = [jnp.zeros((WIDE_ROWS, WIDE_COLS), jnp.float32),
             jnp.zeros((NARROW_ROWS, NARROW_COLS), jnp.float32)]

    per_layer = []
    for params in (enc_params, dec_params):
        for i in range(3):
            w, _b, g, bt = params[4 * i:4 * i + 4]   # bias cancels under BN
            per_layer.append((w, g[0], bt[0]))
        per_layer.append((params[12], params[13][0]))

    for L, tensors in zip(LAYERS, per_layer):
        s, r0, din, dout = L['slab'], L['row0'], L['din'], L['dout']
        slabs[s] = slabs[s].at[r0:r0 + din, :dout].set(tensors[0])
        vrow = r0 + L['din_eff']
        if L['has_bn']:
            slabs[s] = slabs[s].at[vrow, :dout].set(tensors[1])      # gamma
            slabs[s] = slabs[s].at[vrow + 1, :dout].set(tensors[2])  # beta
        else:
            slabs[s] = slabs[s].at[vrow, :dout].set(tensors[1])      # bias
    return slabs[0], slabs[1]


@jax.jit
def autoencode_forward(x, wide_slab, narrow_slab):
    b = x.shape[0]
    packed = pl.pallas_call(
        autoencode_kernel,
        out_shape=jax.ShapeDtypeStruct((2, b, NARROW_COLS), jnp.float32),
        in_specs=[
            pl.BlockSpec(memory_space=pltpu.MemorySpace.VMEM),  # x (8 KiB)
            pl.BlockSpec(memory_space=pl.ANY),   # wide slab  -> manual DMA
            pl.BlockSpec(memory_space=pl.ANY),   # narrow slab -> manual DMA
        ],
        out_specs=pl.BlockSpec(memory_space=pltpu.MemorySpace.VMEM),
        scratch_shapes=[
            pltpu.VMEM((WIDE_ROWS, WIDE_COLS), jnp.float32),
            pltpu.VMEM((NARROW_ROWS, NARROW_COLS), jnp.float32),
            pltpu.SemaphoreType.DMA((len(LAYERS),)),
        ],
        compiler_params=pltpu.CompilerParams(vmem_limit_bytes=4 << 20),
    )(x, wide_slab, narrow_slab)
    dec2 = packed[0]
    enc2 = packed[1, :, :R]
    return enc2, dec2


# --------------------------- parameter init --------------------------------- #
def _init_linear(key, in_dim, out_dim):
    # PyTorch nn.Linear default init: U(-1/sqrt(in), 1/sqrt(in)); W stored (in, out).
    kw, kb = jax.random.split(key)
    bound = 1.0 / math.sqrt(in_dim)
    w = jax.random.uniform(kw, (in_dim, out_dim), jnp.float32, -bound, bound)
    b = jax.random.uniform(kb, (1, out_dim), jnp.float32, -bound, bound)
    return w, b


def make_params(key):
    enc_dims = list(zip(N_DIMS[:-1], N_DIMS[1:]))
    dec_dims = list(zip(N_DIMS[::-1][:-1], N_DIMS[::-1][1:]))

    def build(dims, key):
        params = []
        keys = jax.random.split(key, len(dims))
        for i, (din, dout) in enumerate(dims):
            w, b = _init_linear(keys[i], din, dout)
            params += [w, b]
            if i != len(dims) - 1:  # BatchNorm after all but the last Linear
                params += [jnp.ones((1, dout), jnp.float32),
                           jnp.zeros((1, dout), jnp.float32)]
        return params

    ke, kd = jax.random.split(key)
    return build(enc_dims, ke), build(dec_dims, kd)


# --------------------------- pure-JAX reference ------------------------------ #
def _ref_stack(h, params):
    for i in range(3):
        w, b, g, bt = params[4 * i:4 * i + 4]
        h = h @ w + b
        mean = jnp.mean(h, axis=0, keepdims=True)
        var = jnp.mean((h - mean) ** 2, axis=0, keepdims=True)
        h = (h - mean) / jnp.sqrt(var + EPS) * g + bt
        h = jnp.maximum(h, 0.0)
    h = jnp.maximum(h @ params[12] + params[13], 0.0)
    return h


def reference(x, enc_p, dec_p):
    e1 = _ref_stack(x, enc_p)
    d1 = _ref_stack(e1, dec_p)
    e2 = _ref_stack(d1, enc_p)
    d2 = _ref_stack(e2, dec_p)
    return e2, d2


# ------------------------------- main ---------------------------------------- #
if __name__ == "__main__":
    key = jax.random.PRNGKey(0)
    kx, kp = jax.random.split(key)
    x = jax.random.normal(kx, (BATCH, D), jnp.float32)
    enc_params, dec_params = make_params(kp)

    wide_slab, narrow_slab = pack_params(enc_params, dec_params)  # one-time
    enc2, dec2 = autoencode_forward(x, wide_slab, narrow_slab)
    enc2 = jax.block_until_ready(enc2)
    dec2 = jax.block_until_ready(dec2)

    enc2_ref, dec2_ref = reference(x, enc_params, dec_params)
    assert enc2.shape == (BATCH, R) and dec2.shape == (BATCH, D)
    assert jnp.allclose(enc2, enc2_ref, atol=1e-4, rtol=1e-4)
    assert jnp.allclose(dec2, dec2_ref, atol=1e-4, rtol=1e-4)

    print("KERNEL_OK")
</pallas_src>

<mosaic_0001>
module attributes {stable_mosaic.version = 11 : i64} {
  func.func @autoencode_kernel(%arg0: memref<16x128xf32, #tpu.memory_space<vmem>>, %arg1: memref<272x256xf32, #tpu.memory_space<any>>, %arg2: memref<1072x128xf32, #tpu.memory_space<any>>, %arg3: memref<2x16x128xf32, #tpu.memory_space<vmem>>, %arg4: memref<272x256xf32, #tpu.memory_space<vmem>>, %arg5: memref<1072x128xf32, #tpu.memory_space<vmem>>, %arg6: memref<8x!tpu.dma_semaphore, #tpu.memory_space<semaphore_mem>>) attributes {dimension_semantics = [], scalar_prefetch = 0 : i64, scratch_operands = 3 : i64, tpu.core_type = #tpu.core_type<tc>} {
    %c0_i32 = arith.constant 0 : i32
    %c0_i32_0 = arith.constant 0 : i32
    %c0_i32_1 = arith.constant 0 : i32
    %0 = tpu.memref_slice %arg1[%c0_i32_0, %c0_i32_1] : memref<272x256xf32, #tpu.memory_space<any>> -> memref<136x256xf32, #tpu.memory_space<any>>
    %c0_i32_2 = arith.constant 0 : i32
    %c0_i32_3 = arith.constant 0 : i32
    %1 = tpu.memref_slice %arg4[%c0_i32_2, %c0_i32_3] : memref<272x256xf32, #tpu.memory_space<vmem>> -> memref<136x256xf32, #tpu.memory_space<vmem>>
    %2 = tpu.memref_slice %arg6[%c0_i32] : memref<8x!tpu.dma_semaphore, #tpu.memory_space<semaphore_mem>> -> memref<1x!tpu.dma_semaphore, #tpu.memory_space<semaphore_mem>>
    %3 = tpu.memref_squeeze %2 : memref<1x!tpu.dma_semaphore, #tpu.memory_space<semaphore_mem>> -> memref<!tpu.dma_semaphore, #tpu.memory_space<semaphore_mem>>
    tpu.enqueue_dma source(%0 : memref<136x256xf32, #tpu.memory_space<any>>) target(%1 : memref<136x256xf32, #tpu.memory_space<vmem>>) target_semaphore(%3 : memref<!tpu.dma_semaphore, #tpu.memory_space<semaphore_mem>>)
    %c1_i32 = arith.constant 1 : i32
    %c0_i32_4 = arith.constant 0 : i32
    %c0_i32_5 = arith.constant 0 : i32
    %4 = tpu.memref_slice %arg2[%c0_i32_4, %c0_i32_5] : memref<1072x128xf32, #tpu.memory_space<any>> -> memref<264x128xf32, #tpu.memory_space<any>>
    %c0_i32_6 = arith.constant 0 : i32
    %c0_i32_7 = arith.constant 0 : i32
    %5 = tpu.memref_slice %arg5[%c0_i32_6, %c0_i32_7] : memref<1072x128xf32, #tpu.memory_space<vmem>> -> memref<264x128xf32, #tpu.memory_space<vmem>>
    %6 = tpu.memref_slice %arg6[%c1_i32] : memref<8x!tpu.dma_semaphore, #tpu.memory_space<semaphore_mem>> -> memref<1x!tpu.dma_semaphore, #tpu.memory_space<semaphore_mem>>
    %7 = tpu.memref_squeeze %6 : memref<1x!tpu.dma_semaphore, #tpu.memory_space<semaphore_mem>> -> memref<!tpu.dma_semaphore, #tpu.memory_space<semaphore_mem>>
    tpu.enqueue_dma source(%4 : memref<264x128xf32, #tpu.memory_space<any>>) target(%5 : memref<264x128xf32, #tpu.memory_space<vmem>>) target_semaphore(%7 : memref<!tpu.dma_semaphore, #tpu.memory_space<semaphore_mem>>)
    %c2_i32 = arith.constant 2 : i32
    %c264_i32 = arith.constant 264 : i32
    %c0_i32_8 = arith.constant 0 : i32
    %8 = tpu.memref_slice %arg2[%c264_i32, %c0_i32_8] : memref<1072x128xf32, #tpu.memory_space<any>> -> memref<136x128xf32, #tpu.memory_space<any>>
    %c264_i32_9 = arith.constant 264 : i32
    %c0_i32_10 = arith.constant 0 : i32
    %9 = tpu.memref_slice %arg5[%c264_i32_9, %c0_i32_10] : memref<1072x128xf32, #tpu.memory_space<vmem>> -> memref<136x128xf32, #tpu.memory_space<vmem>>
    %10 = tpu.memref_slice %arg6[%c2_i32] : memref<8x!tpu.dma_semaphore, #tpu.memory_space<semaphore_mem>> -> memref<1x!tpu.dma_semaphore, #tpu.memory_space<semaphore_mem>>
    %11 = tpu.memref_squeeze %10 : memref<1x!tpu.dma_semaphore, #tpu.memory_space<semaphore_mem>> -> memref<!tpu.dma_semaphore, #tpu.memory_space<semaphore_mem>>
    tpu.enqueue_dma source(%8 : memref<136x128xf32, #tpu.memory_space<any>>) target(%9 : memref<136x128xf32, #tpu.memory_space<vmem>>) target_semaphore(%11 : memref<!tpu.dma_semaphore, #tpu.memory_space<semaphore_mem>>)
    %c3_i32 = arith.constant 3 : i32
    %c400_i32 = arith.constant 400 : i32
    %c0_i32_11 = arith.constant 0 : i32
    %12 = tpu.memref_slice %arg2[%c400_i32, %c0_i32_11] : memref<1072x128xf32, #tpu.memory_space<any>> -> memref<136x128xf32, #tpu.memory_space<any>>
    %c400_i32_12 = arith.constant 400 : i32
    %c0_i32_13 = arith.constant 0 : i32
    %13 = tpu.memref_slice %arg5[%c400_i32_12, %c0_i32_13] : memref<1072x128xf32, #tpu.memory_space<vmem>> -> memref<136x128xf32, #tpu.memory_space<vmem>>
    %14 = tpu.memref_slice %arg6[%c3_i32] : memref<8x!tpu.dma_semaphore, #tpu.memory_space<semaphore_mem>> -> memref<1x!tpu.dma_semaphore, #tpu.memory_space<semaphore_mem>>
    %15 = tpu.memref_squeeze %14 : memref<1x!tpu.dma_semaphore, #tpu.memory_space<semaphore_mem>> -> memref<!tpu.dma_semaphore, #tpu.memory_space<semaphore_mem>>
    tpu.enqueue_dma source(%12 : memref<136x128xf32, #tpu.memory_space<any>>) target(%13 : memref<136x128xf32, #tpu.memory_space<vmem>>) target_semaphore(%15 : memref<!tpu.dma_semaphore, #tpu.memory_space<semaphore_mem>>)
    %c4_i32 = arith.constant 4 : i32
    %c536_i32 = arith.constant 536 : i32
    %c0_i32_14 = arith.constant 0 : i32
    %16 = tpu.memref_slice %arg2[%c536_i32, %c0_i32_14] : memref<1072x128xf32, #tpu.memory_space<any>> -> memref<136x128xf32, #tpu.memory_space<any>>
    %c536_i32_15 = arith.constant 536 : i32
    %c0_i32_16 = arith.constant 0 : i32
    %17 = tpu.memref_slice %arg5[%c536_i32_15, %c0_i32_16] : memref<1072x128xf32, #tpu.memory_space<vmem>> -> memref<136x128xf32, #tpu.memory_space<vmem>>
    %18 = tpu.memref_slice %arg6[%c4_i32] : memref<8x!tpu.dma_semaphore, #tpu.memory_space<semaphore_mem>> -> memref<1x!tpu.dma_semaphore, #tpu.memory_space<semaphore_mem>>
    %19 = tpu.memref_squeeze %18 : memref<1x!tpu.dma_semaphore, #tpu.memory_space<semaphore_mem>> -> memref<!tpu.dma_semaphore, #tpu.memory_space<semaphore_mem>>
    tpu.enqueue_dma source(%16 : memref<136x128xf32, #tpu.memory_space<any>>) target(%17 : memref<136x128xf32, #tpu.memory_space<vmem>>) target_semaphore(%19 : memref<!tpu.dma_semaphore, #tpu.memory_space<semaphore_mem>>)
    %c5_i32 = arith.constant 5 : i32
    %c672_i32 = arith.constant 672 : i32
    %c0_i32_17 = arith.constant 0 : i32
    %20 = tpu.memref_slice %arg2[%c672_i32, %c0_i32_17] : memref<1072x128xf32, #tpu.memory_space<any>> -> memref<136x128xf32, #tpu.memory_space<any>>
    %c672_i32_18 = arith.constant 672 : i32
    %c0_i32_19 = arith.constant 0 : i32
    %21 = tpu.memref_slice %arg5[%c672_i32_18, %c0_i32_19] : memref<1072x128xf32, #tpu.memory_space<vmem>> -> memref<136x128xf32, #tpu.memory_space<vmem>>
    %22 = tpu.memref_slice %arg6[%c5_i32] : memref<8x!tpu.dma_semaphore, #tpu.memory_space<semaphore_mem>> -> memref<1x!tpu.dma_semaphore, #tpu.memory_space<semaphore_mem>>
    %23 = tpu.memref_squeeze %22 : memref<1x!tpu.dma_semaphore, #tpu.memory_space<semaphore_mem>> -> memref<!tpu.dma_semaphore, #tpu.memory_space<semaphore_mem>>
    tpu.enqueue_dma source(%20 : memref<136x128xf32, #tpu.memory_space<any>>) target(%21 : memref<136x128xf32, #tpu.memory_space<vmem>>) target_semaphore(%23 : memref<!tpu.dma_semaphore, #tpu.memory_space<semaphore_mem>>)
    %c6_i32 = arith.constant 6 : i32
    %c136_i32 = arith.constant 136 : i32
    %c0_i32_20 = arith.constant 0 : i32
    %24 = tpu.memref_slice %arg1[%c136_i32, %c0_i32_20] : memref<272x256xf32, #tpu.memory_space<any>> -> memref<136x256xf32, #tpu.memory_space<any>>
    %c136_i32_21 = arith.constant 136 : i32
    %c0_i32_22 = arith.constant 0 : i32
    %25 = tpu.memref_slice %arg4[%c136_i32_21, %c0_i32_22] : memref<272x256xf32, #tpu.memory_space<vmem>> -> memref<136x256xf32, #tpu.memory_space<vmem>>
    %26 = tpu.memref_slice %arg6[%c6_i32] : memref<8x!tpu.dma_semaphore, #tpu.memory_space<semaphore_mem>> -> memref<1x!tpu.dma_semaphore, #tpu.memory_space<semaphore_mem>>
    %27 = tpu.memref_squeeze %26 : memref<1x!tpu.dma_semaphore, #tpu.memory_space<semaphore_mem>> -> memref<!tpu.dma_semaphore, #tpu.memory_space<semaphore_mem>>
    tpu.enqueue_dma source(%24 : memref<136x256xf32, #tpu.memory_space<any>>) target(%25 : memref<136x256xf32, #tpu.memory_space<vmem>>) target_semaphore(%27 : memref<!tpu.dma_semaphore, #tpu.memory_space<semaphore_mem>>)
    %c7_i32 = arith.constant 7 : i32
    %c808_i32 = arith.constant 808 : i32
    %c0_i32_23 = arith.constant 0 : i32
    %28 = tpu.memref_slice %arg2[%c808_i32, %c0_i32_23] : memref<1072x128xf32, #tpu.memory_space<any>> -> memref<264x128xf32, #tpu.memory_space<any>>
    %c808_i32_24 = arith.constant 808 : i32
    %c0_i32_25 = arith.constant 0 : i32
    %29 = tpu.memref_slice %arg5[%c808_i32_24, %c0_i32_25] : memref<1072x128xf32, #tpu.memory_space<vmem>> -> memref<264x128xf32, #tpu.memory_space<vmem>>
    %30 = tpu.memref_slice %arg6[%c7_i32] : memref<8x!tpu.dma_semaphore, #tpu.memory_space<semaphore_mem>> -> memref<1x!tpu.dma_semaphore, #tpu.memory_space<semaphore_mem>>
    %31 = tpu.memref_squeeze %30 : memref<1x!tpu.dma_semaphore, #tpu.memory_space<semaphore_mem>> -> memref<!tpu.dma_semaphore, #tpu.memory_space<semaphore_mem>>
    tpu.enqueue_dma source(%28 : memref<264x128xf32, #tpu.memory_space<any>>) target(%29 : memref<264x128xf32, #tpu.memory_space<vmem>>) target_semaphore(%31 : memref<!tpu.dma_semaphore, #tpu.memory_space<semaphore_mem>>)
    %c0 = arith.constant 0 : index
    %c0_26 = arith.constant 0 : index
    %32 = vector.load %arg0[%c0, %c0_26] : memref<16x128xf32, #tpu.memory_space<vmem>>, vector<16x128xf32>
    %c0_i32_27 = arith.constant 0 : i32
    %c0_i32_28 = arith.constant 0 : i32
    %c0_i32_29 = arith.constant 0 : i32
    %33 = tpu.memref_slice %arg1[%c0_i32_28, %c0_i32_29] : memref<272x256xf32, #tpu.memory_space<any>> -> memref<136x256xf32, #tpu.memory_space<any>>
    %c0_i32_30 = arith.constant 0 : i32
    %c0_i32_31 = arith.constant 0 : i32
    %34 = tpu.memref_slice %arg4[%c0_i32_30, %c0_i32_31] : memref<272x256xf32, #tpu.memory_space<vmem>> -> memref<136x256xf32, #tpu.memory_space<vmem>>
    %35 = tpu.memref_slice %arg6[%c0_i32_27] : memref<8x!tpu.dma_semaphore, #tpu.memory_space<semaphore_mem>> -> memref<1x!tpu.dma_semaphore, #tpu.memory_space<semaphore_mem>>
    %36 = tpu.memref_squeeze %35 : memref<1x!tpu.dma_semaphore, #tpu.memory_space<semaphore_mem>> -> memref<!tpu.dma_semaphore, #tpu.memory_space<semaphore_mem>>
    tpu.wait_dma2 semaphore(%36 : memref<!tpu.dma_semaphore, #tpu.memory_space<semaphore_mem>>) src(%33 : memref<136x256xf32, #tpu.memory_space<any>>) dst(%34 : memref<136x256xf32, #tpu.memory_space<vmem>>)
    %c0_32 = arith.constant 0 : index
    %c0_33 = arith.constant 0 : index
    %37 = vector.load %arg4[%c0_32, %c0_33] : memref<272x256xf32, #tpu.memory_space<vmem>>, vector<128x256xf32>
    %cst = arith.constant dense<0.000000e+00> : vector<16x256xf32>
    %38 = tpu.matmul %32, %37, %cst {dimension_numbers = #tpu.dot_dimension_numbers<[1], [0], [0], [1], [0, 0, 1, 1], [], []>} : vector<16x128xf32>, vector<128x256xf32>, vector<16x256xf32> -> vector<16x256xf32>
    %c128 = arith.constant 128 : index
    %c0_34 = arith.constant 0 : index
    %39 = vector.load %arg4[%c128, %c0_34] : memref<272x256xf32, #tpu.memory_space<vmem>>, vector<1x256xf32>
    %c129 = arith.constant 129 : index
    %c0_35 = arith.constant 0 : index
    %40 = vector.load %arg4[%c129, %c0_35] : memref<272x256xf32, #tpu.memory_space<vmem>>, vector<1x256xf32>
    %cst_36 = arith.constant dense<0.000000e+00> : vector<256xf32>
    %41 = vector.multi_reduction <add>, %38, %cst_36 [0] : vector<16x256xf32> to vector<256xf32>
    %42 = vector.shape_cast %41 : vector<256xf32> to vector<1x256xf32>
    %cst_37 = arith.constant 1.600000e+01 : f32
    %43 = vector.broadcast %cst_37 : f32 to vector<1x256xf32>
    %44 = arith.divf %42, %43 : vector<1x256xf32>
    %45 = vector.broadcast %44 : vector<1x256xf32> to vector<16x256xf32>
    %46 = arith.subf %38, %45 : vector<16x256xf32>
    %47 = vector.broadcast %44 : vector<1x256xf32> to vector<16x256xf32>
    %48 = arith.subf %38, %47 : vector<16x256xf32>
    %49 = arith.mulf %46, %48 : vector<16x256xf32>
    %cst_38 = arith.constant dense<0.000000e+00> : vector<256xf32>
    %50 = vector.multi_reduction <add>, %49, %cst_38 [0] : vector<16x256xf32> to vector<256xf32>
    %51 = vector.shape_cast %50 : vector<256xf32> to vector<1x256xf32>
    %cst_39 = arith.constant 1.600000e+01 : f32
    %52 = vector.broadcast %cst_39 : f32 to vector<1x256xf32>
    %53 = arith.divf %51, %52 : vector<1x256xf32>
    %cst_40 = arith.constant 9.99999974E-6 : f32
    %54 = vector.broadcast %cst_40 : f32 to vector<1x256xf32>
    %55 = arith.addf %53, %54 : vector<1x256xf32>
    %56 = math.rsqrt %55 : vector<1x256xf32>
    %57 = arith.mulf %39, %56 : vector<1x256xf32>
    %58 = arith.mulf %44, %57 : vector<1x256xf32>
    %59 = arith.subf %40, %58 : vector<1x256xf32>
    %60 = vector.broadcast %57 : vector<1x256xf32> to vector<16x256xf32>
    %61 = arith.mulf %38, %60 : vector<16x256xf32>
    %62 = vector.broadcast %59 : vector<1x256xf32> to vector<16x256xf32>
    %63 = arith.addf %61, %62 : vector<16x256xf32>
    %cst_41 = arith.constant 0.000000e+00 : f32
    %64 = vector.broadcast %cst_41 : f32 to vector<16x256xf32>
    %65 = arith.maximumf %63, %64 : vector<16x256xf32>
    %c1_i32_42 = arith.constant 1 : i32
    %c0_i32_43 = arith.constant 0 : i32
    %c0_i32_44 = arith.constant 0 : i32
    %66 = tpu.memref_slice %arg2[%c0_i32_43, %c0_i32_44] : memref<1072x128xf32, #tpu.memory_space<any>> -> memref<264x128xf32, #tpu.memory_space<any>>
    %c0_i32_45 = arith.constant 0 : i32
    %c0_i32_46 = arith.constant 0 : i32
    %67 = tpu.memref_slice %arg5[%c0_i32_45, %c0_i32_46] : memref<1072x128xf32, #tpu.memory_space<vmem>> -> memref<264x128xf32, #tpu.memory_space<vmem>>
    %68 = tpu.memref_slice %arg6[%c1_i32_42] : memref<8x!tpu.dma_semaphore, #tpu.memory_space<semaphore_mem>> -> memref<1x!tpu.dma_semaphore, #tpu.memory_space<semaphore_mem>>
    %69 = tpu.memref_squeeze %68 : memref<1x!tpu.dma_semaphore, #tpu.memory_space<semaphore_mem>> -> memref<!tpu.dma_semaphore, #tpu.memory_space<semaphore_mem>>
    tpu.wait_dma2 semaphore(%69 : memref<!tpu.dma_semaphore, #tpu.memory_space<semaphore_mem>>) src(%66 : memref<264x128xf32, #tpu.memory_space<any>>) dst(%67 : memref<264x128xf32, #tpu.memory_space<vmem>>)
    %c0_47 = arith.constant 0 : index
    %c0_48 = arith.constant 0 : index
    %70 = vector.load %arg5[%c0_47, %c0_48] : memref<1072x128xf32, #tpu.memory_space<vmem>>, vector<256x128xf32>
    %cst_49 = arith.constant dense<0.000000e+00> : vector<16x128xf32>
    %71 = tpu.matmul %65, %70, %cst_49 {dimension_numbers = #tpu.dot_dimension_numbers<[1], [0], [0], [1], [0, 0, 1, 1], [], []>} : vector<16x256xf32>, vector<256x128xf32>, vector<16x128xf32> -> vector<16x128xf32>
    %c256 = arith.constant 256 : index
    %c0_50 = arith.constant 0 : index
    %72 = vector.load %arg5[%c256, %c0_50] : memref<1072x128xf32, #tpu.memory_space<vmem>>, vector<1x128xf32>
    %c257 = arith.constant 257 : index
    %c0_51 = arith.constant 0 : index
    %73 = vector.load %arg5[%c257, %c0_51] : memref<1072x128xf32, #tpu.memory_space<vmem>>, vector<1x128xf32>
    %cst_52 = arith.constant dense<0.000000e+00> : vector<128xf32>
    %74 = vector.multi_reduction <add>, %71, %cst_52 [0] : vector<16x128xf32> to vector<128xf32>
    %75 = vector.shape_cast %74 : vector<128xf32> to vector<1x128xf32>
    %cst_53 = arith.constant 1.600000e+01 : f32
    %76 = vector.broadcast %cst_53 : f32 to vector<1x128xf32>
    %77 = arith.divf %75, %76 : vector<1x128xf32>
    %78 = vector.broadcast %77 : vector<1x128xf32> to vector<16x128xf32>
    %79 = arith.subf %71, %78 : vector<16x128xf32>
    %80 = vector.broadcast %77 : vector<1x128xf32> to vector<16x128xf32>
    %81 = arith.subf %71, %80 : vector<16x128xf32>
    %82 = arith.mulf %79, %81 : vector<16x128xf32>
    %cst_54 = arith.constant dense<0.000000e+00> : vector<128xf32>
    %83 = vector.multi_reduction <add>, %82, %cst_54 [0] : vector<16x128xf32> to vector<128xf32>
    %84 = vector.shape_cast %83 : vector<128xf32> to vector<1x128xf32>
    %cst_55 = arith.constant 1.600000e+01 : f32
    %85 = vector.broadcast %cst_55 : f32 to vector<1x128xf32>
    %86 = arith.divf %84, %85 : vector<1x128xf32>
    %cst_56 = arith.constant 9.99999974E-6 : f32
    %87 = vector.broadcast %cst_56 : f32 to vector<1x128xf32>
    %88 = arith.addf %86, %87 : vector<1x128xf32>
    %89 = math.rsqrt %88 : vector<1x128xf32>
    %90 = arith.mulf %72, %89 : vector<1x128xf32>
    %91 = arith.mulf %77, %90 : vector<1x128xf32>
    %92 = arith.subf %73, %91 : vector<1x128xf32>
    %93 = vector.broadcast %90 : vector<1x128xf32> to vector<16x128xf32>
    %94 = arith.mulf %71, %93 : vector<16x128xf32>
    %95 = vector.broadcast %92 : vector<1x128xf32> to vector<16x128xf32>
    %96 = arith.addf %94, %95 : vector<16x128xf32>
    %cst_57 = arith.constant 0.000000e+00 : f32
    %97 = vector.broadcast %cst_57 : f32 to vector<16x128xf32>
    %98 = arith.maximumf %96, %97 : vector<16x128xf32>
    %c2_i32_58 = arith.constant 2 : i32
    %c264_i32_59 = arith.constant 264 : i32
    %c0_i32_60 = arith.constant 0 : i32
    %99 = tpu.memref_slice %arg2[%c264_i32_59, %c0_i32_60] : memref<1072x128xf32, #tpu.memory_space<any>> -> memref<136x128xf32, #tpu.memory_space<any>>
    %c264_i32_61 = arith.constant 264 : i32
    %c0_i32_62 = arith.constant 0 : i32
    %100 = tpu.memref_slice %arg5[%c264_i32_61, %c0_i32_62] : memref<1072x128xf32, #tpu.memory_space<vmem>> -> memref<136x128xf32, #tpu.memory_space<vmem>>
    %101 = tpu.memref_slice %arg6[%c2_i32_58] : memref<8x!tpu.dma_semaphore, #tpu.memory_space<semaphore_mem>> -> memref<1x!tpu.dma_semaphore, #tpu.memory_space<semaphore_mem>>
    %102 = tpu.memref_squeeze %101 : memref<1x!tpu.dma_semaphore, #tpu.memory_space<semaphore_mem>> -> memref<!tpu.dma_semaphore, #tpu.memory_space<semaphore_mem>>
    tpu.wait_dma2 semaphore(%102 : memref<!tpu.dma_semaphore, #tpu.memory_space<semaphore_mem>>) src(%99 : memref<136x128xf32, #tpu.memory_space<any>>) dst(%100 : memref<136x128xf32, #tpu.memory_space<vmem>>)
    %c264 = arith.constant 264 : index
    %c0_63 = arith.constant 0 : index
    %103 = vector.load %arg5[%c264, %c0_63] : memref<1072x128xf32, #tpu.memory_space<vmem>>, vector<128x128xf32>
    %cst_64 = arith.constant dense<0.000000e+00> : vector<16x128xf32>
    %104 = tpu.matmul %98, %103, %cst_64 {dimension_numbers = #tpu.dot_dimension_numbers<[1], [0], [0], [1], [0, 0, 1, 1], [], []>} : vector<16x128xf32>, vector<128x128xf32>, vector<16x128xf32> -> vector<16x128xf32>
    %c392 = arith.constant 392 : index
    %c0_65 = arith.constant 0 : index
    %105 = vector.load %arg5[%c392, %c0_65] : memref<1072x128xf32, #tpu.memory_space<vmem>>, vector<1x128xf32>
    %c393 = arith.constant 393 : index
    %c0_66 = arith.constant 0 : index
    %106 = vector.load %arg5[%c393, %c0_66] : memref<1072x128xf32, #tpu.memory_space<vmem>>, vector<1x128xf32>
    %cst_67 = arith.constant dense<0.000000e+00> : vector<128xf32>
    %107 = vector.multi_reduction <add>, %104, %cst_67 [0] : vector<16x128xf32> to vector<128xf32>
    %108 = vector.shape_cast %107 : vector<128xf32> to vector<1x128xf32>
    %cst_68 = arith.constant 1.600000e+01 : f32
    %109 = vector.broadcast %cst_68 : f32 to vector<1x128xf32>
    %110 = arith.divf %108, %109 : vector<1x128xf32>
    %111 = vector.broadcast %110 : vector<1x128xf32> to vector<16x128xf32>
    %112 = arith.subf %104, %111 : vector<16x128xf32>
    %113 = vector.broadcast %110 : vector<1x128xf32> to vector<16x128xf32>
    %114 = arith.subf %104, %113 : vector<16x128xf32>
    %115 = arith.mulf %112, %114 : vector<16x128xf32>
    %cst_69 = arith.constant dense<0.000000e+00> : vector<128xf32>
    %116 = vector.multi_reduction <add>, %115, %cst_69 [0] : vector<16x128xf32> to vector<128xf32>
    %117 = vector.shape_cast %116 : vector<128xf32> to vector<1x128xf32>
    %cst_70 = arith.constant 1.600000e+01 : f32
    %118 = vector.broadcast %cst_70 : f32 to vector<1x128xf32>
    %119 = arith.divf %117, %118 : vector<1x128xf32>
    %cst_71 = arith.constant 9.99999974E-6 : f32
    %120 = vector.broadcast %cst_71 : f32 to vector<1x128xf32>
    %121 = arith.addf %119, %120 : vector<1x128xf32>
    %122 = math.rsqrt %121 : vector<1x128xf32>
    %123 = arith.mulf %105, %122 : vector<1x128xf32>
    %124 = arith.mulf %110, %123 : vector<1x128xf32>
    %125 = arith.subf %106, %124 : vector<1x128xf32>
    %126 = vector.broadcast %123 : vector<1x128xf32> to vector<16x128xf32>
    %127 = arith.mulf %104, %126 : vector<16x128xf32>
    %128 = vector.broadcast %125 : vector<1x128xf32> to vector<16x128xf32>
    %129 = arith.addf %127, %128 : vector<16x128xf32>
    %cst_72 = arith.constant 0.000000e+00 : f32
    %130 = vector.broadcast %cst_72 : f32 to vector<16x128xf32>
    %131 = arith.maximumf %129, %130 : vector<16x128xf32>
    %c3_i32_73 = arith.constant 3 : i32
    %c400_i32_74 = arith.constant 400 : i32
    %c0_i32_75 = arith.constant 0 : i32
    %132 = tpu.memref_slice %arg2[%c400_i32_74, %c0_i32_75] : memref<1072x128xf32, #tpu.memory_space<any>> -> memref<136x128xf32, #tpu.memory_space<any>>
    %c400_i32_76 = arith.constant 400 : i32
    %c0_i32_77 = arith.constant 0 : i32
    %133 = tpu.memref_slice %arg5[%c400_i32_76, %c0_i32_77] : memref<1072x128xf32, #tpu.memory_space<vmem>> -> memref<136x128xf32, #tpu.memory_space<vmem>>
    %134 = tpu.memref_slice %arg6[%c3_i32_73] : memref<8x!tpu.dma_semaphore, #tpu.memory_space<semaphore_mem>> -> memref<1x!tpu.dma_semaphore, #tpu.memory_space<semaphore_mem>>
    %135 = tpu.memref_squeeze %134 : memref<1x!tpu.dma_semaphore, #tpu.memory_space<semaphore_mem>> -> memref<!tpu.dma_semaphore, #tpu.memory_space<semaphore_mem>>
    tpu.wait_dma2 semaphore(%135 : memref<!tpu.dma_semaphore, #tpu.memory_space<semaphore_mem>>) src(%132 : memref<136x128xf32, #tpu.memory_space<any>>) dst(%133 : memref<136x128xf32, #tpu.memory_space<vmem>>)
    %c400 = arith.constant 400 : index
    %c0_78 = arith.constant 0 : index
    %136 = vector.load %arg5[%c400, %c0_78] : memref<1072x128xf32, #tpu.memory_space<vmem>>, vector<128x128xf32>
    %cst_79 = arith.constant dense<0.000000e+00> : vector<16x128xf32>
    %137 = tpu.matmul %131, %136, %cst_79 {dimension_numbers = #tpu.dot_dimension_numbers<[1], [0], [0], [1], [0, 0, 1, 1], [], []>} : vector<16x128xf32>, vector<128x128xf32>, vector<16x128xf32> -> vector<16x128xf32>
    %c528 = arith.constant 528 : index
    %c0_80 = arith.constant 0 : index
    %138 = vector.load %arg5[%c528, %c0_80] : memref<1072x128xf32, #tpu.memory_space<vmem>>, vector<1x128xf32>
    %139 = vector.broadcast %138 : vector<1x128xf32> to vector<16x128xf32>
    %140 = arith.addf %137, %139 : vector<16x128xf32>
    %cst_81 = arith.constant 0.000000e+00 : f32
    %141 = vector.broadcast %cst_81 : f32 to vector<16x128xf32>
    %142 = arith.maximumf %140, %141 : vector<16x128xf32>
    %c4_i32_82 = arith.constant 4 : i32
    %c536_i32_83 = arith.constant 536 : i32
    %c0_i32_84 = arith.constant 0 : i32
    %143 = tpu.memref_slice %arg2[%c536_i32_83, %c0_i32_84] : memref<1072x128xf32, #tpu.memory_space<any>> -> memref<136x128xf32, #tpu.memory_space<any>>
    %c536_i32_85 = arith.constant 536 : i32
    %c0_i32_86 = arith.constant 0 : i32
    %144 = tpu.memref_slice %arg5[%c536_i32_85, %c0_i32_86] : memref<1072x128xf32, #tpu.memory_space<vmem>> -> memref<136x128xf32, #tpu.memory_space<vmem>>
    %145 = tpu.memref_slice %arg6[%c4_i32_82] : memref<8x!tpu.dma_semaphore, #tpu.memory_space<semaphore_mem>> -> memref<1x!tpu.dma_semaphore, #tpu.memory_space<semaphore_mem>>
    %146 = tpu.memref_squeeze %145 : memref<1x!tpu.dma_semaphore, #tpu.memory_space<semaphore_mem>> -> memref<!tpu.dma_semaphore, #tpu.memory_space<semaphore_mem>>
    tpu.wait_dma2 semaphore(%146 : memref<!tpu.dma_semaphore, #tpu.memory_space<semaphore_mem>>) src(%143 : memref<136x128xf32, #tpu.memory_space<any>>) dst(%144 : memref<136x128xf32, #tpu.memory_space<vmem>>)
    %c536 = arith.constant 536 : index
    %c0_87 = arith.constant 0 : index
    %147 = vector.load %arg5[%c536, %c0_87] : memref<1072x128xf32, #tpu.memory_space<vmem>>, vector<128x128xf32>
    %cst_88 = arith.constant dense<0.000000e+00> : vector<16x128xf32>
    %148 = tpu.matmul %142, %147, %cst_88 {dimension_numbers = #tpu.dot_dimension_numbers<[1], [0], [0], [1], [0, 0, 1, 1], [], []>} : vector<16x128xf32>, vector<128x128xf32>, vector<16x128xf32> -> vector<16x128xf32>
    %c664 = arith.constant 664 : index
    %c0_89 = arith.constant 0 : index
    %149 = vector.load %arg5[%c664, %c0_89] : memref<1072x128xf32, #tpu.memory_space<vmem>>, vector<1x128xf32>
    %c665 = arith.constant 665 : index
    %c0_90 = arith.constant 0 : index
    %150 = vector.load %arg5[%c665, %c0_90] : memref<1072x128xf32, #tpu.memory_space<vmem>>, vector<1x128xf32>
    %cst_91 = arith.constant dense<0.000000e+00> : vector<128xf32>
    %151 = vector.multi_reduction <add>, %148, %cst_91 [0] : vector<16x128xf32> to vector<128xf32>
    %152 = vector.shape_cast %151 : vector<128xf32> to vector<1x128xf32>
    %cst_92 = arith.constant 1.600000e+01 : f32
    %153 = vector.broadcast %cst_92 : f32 to vector<1x128xf32>
    %154 = arith.divf %152, %153 : vector<1x128xf32>
    %155 = vector.broadcast %154 : vector<1x128xf32> to vector<16x128xf32>
    %156 = arith.subf %148, %155 : vector<16x128xf32>
    %157 = vector.broadcast %154 : vector<1x128xf32> to vector<16x128xf32>
    %158 = arith.subf %148, %157 : vector<16x128xf32>
    %159 = arith.mulf %156, %158 : vector<16x128xf32>
    %cst_93 = arith.constant dense<0.000000e+00> : vector<128xf32>
    %160 = vector.multi_reduction <add>, %159, %cst_93 [0] : vector<16x128xf32> to vector<128xf32>
    %161 = vector.shape_cast %160 : vector<128xf32> to vector<1x128xf32>
    %cst_94 = arith.constant 1.600000e+01 : f32
    %162 = vector.broadcast %cst_94 : f32 to vector<1x128xf32>
    %163 = arith.divf %161, %162 : vector<1x128xf32>
    %cst_95 = arith.constant 9.99999974E-6 : f32
    %164 = vector.broadcast %cst_95 : f32 to vector<1x128xf32>
    %165 = arith.addf %163, %164 : vector<1x128xf32>
    %166 = math.rsqrt %165 : vector<1x128xf32>
    %167 = arith.mulf %149, %166 : vector<1x128xf32>
    %168 = arith.mulf %154, %167 : vector<1x128xf32>
    %169 = arith.subf %150, %168 : vector<1x128xf32>
    %170 = vector.broadcast %167 : vector<1x128xf32> to vector<16x128xf32>
    %171 = arith.mulf %148, %170 : vector<16x128xf32>
    %172 = vector.broadcast %169 : vector<1x128xf32> to vector<16x128xf32>
    %173 = arith.addf %171, %172 : vector<16x128xf32>
    %cst_96 = arith.constant 0.000000e+00 : f32
    %174 = vector.broadcast %cst_96 : f32 to vector<16x128xf32>
    %175 = arith.maximumf %173, %174 : vector<16x128xf32>
    %c5_i32_97 = arith.constant 5 : i32
    %c672_i32_98 = arith.constant 672 : i32
    %c0_i32_99 = arith.constant 0 : i32
    %176 = tpu.memref_slice %arg2[%c672_i32_98, %c0_i32_99] : memref<1072x128xf32, #tpu.memory_space<any>> -> memref<136x128xf32, #tpu.memory_space<any>>
    %c672_i32_100 = arith.constant 672 : i32
    %c0_i32_101 = arith.constant 0 : i32
    %177 = tpu.memref_slice %arg5[%c672_i32_100, %c0_i32_101] : memref<1072x128xf32, #tpu.memory_space<vmem>> -> memref<136x128xf32, #tpu.memory_space<vmem>>
    %178 = tpu.memref_slice %arg6[%c5_i32_97] : memref<8x!tpu.dma_semaphore, #tpu.memory_space<semaphore_mem>> -> memref<1x!tpu.dma_semaphore, #tpu.memory_space<semaphore_mem>>
    %179 = tpu.memref_squeeze %178 : memref<1x!tpu.dma_semaphore, #tpu.memory_space<semaphore_mem>> -> memref<!tpu.dma_semaphore, #tpu.memory_space<semaphore_mem>>
    tpu.wait_dma2 semaphore(%179 : memref<!tpu.dma_semaphore, #tpu.memory_space<semaphore_mem>>) src(%176 : memref<136x128xf32, #tpu.memory_space<any>>) dst(%177 : memref<136x128xf32, #tpu.memory_space<vmem>>)
    %c672 = arith.constant 672 : index
    %c0_102 = arith.constant 0 : index
    %180 = vector.load %arg5[%c672, %c0_102] : memref<1072x128xf32, #tpu.memory_space<vmem>>, vector<128x128xf32>
    %cst_103 = arith.constant dense<0.000000e+00> : vector<16x128xf32>
    %181 = tpu.matmul %175, %180, %cst_103 {dimension_numbers = #tpu.dot_dimension_numbers<[1], [0], [0], [1], [0, 0, 1, 1], [], []>} : vector<16x128xf32>, vector<128x128xf32>, vector<16x128xf32> -> vector<16x128xf32>
    %c800 = arith.constant 800 : index
    %c0_104 = arith.constant 0 : index
    %182 = vector.load %arg5[%c800, %c0_104] : memref<1072x128xf32, #tpu.memory_space<vmem>>, vector<1x128xf32>
    %c801 = arith.constant 801 : index
    %c0_105 = arith.constant 0 : index
    %183 = vector.load %arg5[%c801, %c0_105] : memref<1072x128xf32, #tpu.memory_space<vmem>>, vector<1x128xf32>
    %cst_106 = arith.constant dense<0.000000e+00> : vector<128xf32>
    %184 = vector.multi_reduction <add>, %181, %cst_106 [0] : vector<16x128xf32> to vector<128xf32>
    %185 = vector.shape_cast %184 : vector<128xf32> to vector<1x128xf32>
    %cst_107 = arith.constant 1.600000e+01 : f32
    %186 = vector.broadcast %cst_107 : f32 to vector<1x128xf32>
    %187 = arith.divf %185, %186 : vector<1x128xf32>
    %188 = vector.broadcast %187 : vector<1x128xf32> to vector<16x128xf32>
    %189 = arith.subf %181, %188 : vector<16x128xf32>
    %190 = vector.broadcast %187 : vector<1x128xf32> to vector<16x128xf32>
    %191 = arith.subf %181, %190 : vector<16x128xf32>
    %192 = arith.mulf %189, %191 : vector<16x128xf32>
    %cst_108 = arith.constant dense<0.000000e+00> : vector<128xf32>
    %193 = vector.multi_reduction <add>, %192, %cst_108 [0] : vector<16x128xf32> to vector<128xf32>
    %194 = vector.shape_cast %193 : vector<128xf32> to vector<1x128xf32>
    %cst_109 = arith.constant 1.600000e+01 : f32
    %195 = vector.broadcast %cst_109 : f32 to vector<1x128xf32>
    %196 = arith.divf %194, %195 : vector<1x128xf32>
    %cst_110 = arith.constant 9.99999974E-6 : f32
    %197 = vector.broadcast %cst_110 : f32 to vector<1x128xf32>
    %198 = arith.addf %196, %197 : vector<1x128xf32>
    %199 = math.rsqrt %198 : vector<1x128xf32>
    %200 = arith.mulf %182, %199 : vector<1x128xf32>
    %201 = arith.mulf %187, %200 : vector<1x128xf32>
    %202 = arith.subf %183, %201 : vector<1x128xf32>
    %203 = vector.broadcast %200 : vector<1x128xf32> to vector<16x128xf32>
    %204 = arith.mulf %181, %203 : vector<16x128xf32>
    %205 = vector.broadcast %202 : vector<1x128xf32> to vector<16x128xf32>
    %206 = arith.addf %204, %205 : vector<16x128xf32>
    %cst_111 = arith.constant 0.000000e+00 : f32
    %207 = vector.broadcast %cst_111 : f32 to vector<16x128xf32>
    %208 = arith.maximumf %206, %207 : vector<16x128xf32>
    %c6_i32_112 = arith.constant 6 : i32
    %c136_i32_113 = arith.constant 136 : i32
    %c0_i32_114 = arith.constant 0 : i32
    %209 = tpu.memref_slice %arg1[%c136_i32_113, %c0_i32_114] : memref<272x256xf32, #tpu.memory_space<any>> -> memref<136x256xf32, #tpu.memory_space<any>>
    %c136_i32_115 = arith.constant 136 : i32
    %c0_i32_116 = arith.constant 0 : i32
    %210 = tpu.memref_slice %arg4[%c136_i32_115, %c0_i32_116] : memref<272x256xf32, #tpu.memory_space<vmem>> -> memref<136x256xf32, #tpu.memory_space<vmem>>
    %211 = tpu.memref_slice %arg6[%c6_i32_112] : memref<8x!tpu.dma_semaphore, #tpu.memory_space<semaphore_mem>> -> memref<1x!tpu.dma_semaphore, #tpu.memory_space<semaphore_mem>>
    %212 = tpu.memref_squeeze %211 : memref<1x!tpu.dma_semaphore, #tpu.memory_space<semaphore_mem>> -> memref<!tpu.dma_semaphore, #tpu.memory_space<semaphore_mem>>
    tpu.wait_dma2 semaphore(%212 : memref<!tpu.dma_semaphore, #tpu.memory_space<semaphore_mem>>) src(%209 : memref<136x256xf32, #tpu.memory_space<any>>) dst(%210 : memref<136x256xf32, #tpu.memory_space<vmem>>)
    %c136 = arith.constant 136 : index
    %c0_117 = arith.constant 0 : index
    %213 = vector.load %arg4[%c136, %c0_117] : memref<272x256xf32, #tpu.memory_space<vmem>>, vector<128x256xf32>
    %cst_118 = arith.constant dense<0.000000e+00> : vector<16x256xf32>
    %214 = tpu.matmul %208, %213, %cst_118 {dimension_numbers = #tpu.dot_dimension_numbers<[1], [0], [0], [1], [0, 0, 1, 1], [], []>} : vector<16x128xf32>, vector<128x256xf32>, vector<16x256xf32> -> vector<16x256xf32>
    %c264_119 = arith.constant 264 : index
    %c0_120 = arith.constant 0 : index
    %215 = vector.load %arg4[%c264_119, %c0_120] : memref<272x256xf32, #tpu.memory_space<vmem>>, vector<1x256xf32>
    %c265 = arith.constant 265 : index
    %c0_121 = arith.constant 0 : index
    %216 = vector.load %arg4[%c265, %c0_121] : memref<272x256xf32, #tpu.memory_space<vmem>>, vector<1x256xf32>
    %cst_122 = arith.constant dense<0.000000e+00> : vector<256xf32>
    %217 = vector.multi_reduction <add>, %214, %cst_122 [0] : vector<16x256xf32> to vector<256xf32>
    %218 = vector.shape_cast %217 : vector<256xf32> to vector<1x256xf32>
    %cst_123 = arith.constant 1.600000e+01 : f32
    %219 = vector.broadcast %cst_123 : f32 to vector<1x256xf32>
    %220 = arith.divf %218, %219 : vector<1x256xf32>
    %221 = vector.broadcast %220 : vector<1x256xf32> to vector<16x256xf32>
    %222 = arith.subf %214, %221 : vector<16x256xf32>
    %223 = vector.broadcast %220 : vector<1x256xf32> to vector<16x256xf32>
    %224 = arith.subf %214, %223 : vector<16x256xf32>
    %225 = arith.mulf %222, %224 : vector<16x256xf32>
    %cst_124 = arith.constant dense<0.000000e+00> : vector<256xf32>
    %226 = vector.multi_reduction <add>, %225, %cst_124 [0] : vector<16x256xf32> to vector<256xf32>
    %227 = vector.shape_cast %226 : vector<256xf32> to vector<1x256xf32>
    %cst_125 = arith.constant 1.600000e+01 : f32
    %228 = vector.broadcast %cst_125 : f32 to vector<1x256xf32>
    %229 = arith.divf %227, %228 : vector<1x256xf32>
    %cst_126 = arith.constant 9.99999974E-6 : f32
    %230 = vector.broadcast %cst_126 : f32 to vector<1x256xf32>
    %231 = arith.addf %229, %230 : vector<1x256xf32>
    %232 = math.rsqrt %231 : vector<1x256xf32>
    %233 = arith.mulf %215, %232 : vector<1x256xf32>
    %234 = arith.mulf %220, %233 : vector<1x256xf32>
    %235 = arith.subf %216, %234 : vector<1x256xf32>
    %236 = vector.broadcast %233 : vector<1x256xf32> to vector<16x256xf32>
    %237 = arith.mulf %214, %236 : vector<16x256xf32>
    %238 = vector.broadcast %235 : vector<1x256xf32> to vector<16x256xf32>
    %239 = arith.addf %237, %238 : vector<16x256xf32>
    %cst_127 = arith.constant 0.000000e+00 : f32
    %240 = vector.broadcast %cst_127 : f32 to vector<16x256xf32>
    %241 = arith.maximumf %239, %240 : vector<16x256xf32>
    %c7_i32_128 = arith.constant 7 : i32
    %c808_i32_129 = arith.constant 808 : i32
    %c0_i32_130 = arith.constant 0 : i32
    %242 = tpu.memref_slice %arg2[%c808_i32_129, %c0_i32_130] : memref<1072x128xf32, #tpu.memory_space<any>> -> memref<264x128xf32, #tpu.memory_space<any>>
    %c808_i32_131 = arith.constant 808 : i32
    %c0_i32_132 = arith.constant 0 : i32
    %243 = tpu.memref_slice %arg5[%c808_i32_131, %c0_i32_132] : memref<1072x128xf32, #tpu.memory_space<vmem>> -> memref<264x128xf32, #tpu.memory_space<vmem>>
    %244 = tpu.memref_slice %arg6[%c7_i32_128] : memref<8x!tpu.dma_semaphore, #tpu.memory_space<semaphore_mem>> -> memref<1x!tpu.dma_semaphore, #tpu.memory_space<semaphore_mem>>
    %245 = tpu.memref_squeeze %244 : memref<1x!tpu.dma_semaphore, #tpu.memory_space<semaphore_mem>> -> memref<!tpu.dma_semaphore, #tpu.memory_space<semaphore_mem>>
    tpu.wait_dma2 semaphore(%245 : memref<!tpu.dma_semaphore, #tpu.memory_space<semaphore_mem>>) src(%242 : memref<264x128xf32, #tpu.memory_space<any>>) dst(%243 : memref<264x128xf32, #tpu.memory_space<vmem>>)
    %c808 = arith.constant 808 : index
    %c0_133 = arith.constant 0 : index
    %246 = vector.load %arg5[%c808, %c0_133] : memref<1072x128xf32, #tpu.memory_space<vmem>>, vector<256x128xf32>
    %cst_134 = arith.constant dense<0.000000e+00> : vector<16x128xf32>
    %247 = tpu.matmul %241, %246, %cst_134 {dimension_numbers = #tpu.dot_dimension_numbers<[1], [0], [0], [1], [0, 0, 1, 1], [], []>} : vector<16x256xf32>, vector<256x128xf32>, vector<16x128xf32> -> vector<16x128xf32>
    %c1064 = arith.constant 1064 : index
    %c0_135 = arith.constant 0 : index
    %248 = vector.load %arg5[%c1064, %c0_135] : memref<1072x128xf32, #tpu.memory_space<vmem>>, vector<1x128xf32>
    %249 = vector.broadcast %248 : vector<1x128xf32> to vector<16x128xf32>
    %250 = arith.addf %247, %249 : vector<16x128xf32>
    %cst_136 = arith.constant 0.000000e+00 : f32
    %251 = vector.broadcast %cst_136 : f32 to vector<16x128xf32>
    %252 = arith.maximumf %250, %251 : vector<16x128xf32>
    %c0_137 = arith.constant 0 : index
    %c0_138 = arith.constant 0 : index
    %253 = vector.load %arg4[%c0_137, %c0_138] : memref<272x256xf32, #tpu.memory_space<vmem>>, vector<128x256xf32>
    %cst_139 = arith.constant dense<0.000000e+00> : vector<16x256xf32>
    %254 = tpu.matmul %252, %253, %cst_139 {dimension_numbers = #tpu.dot_dimension_numbers<[1], [0], [0], [1], [0, 0, 1, 1], [], []>} : vector<16x128xf32>, vector<128x256xf32>, vector<16x256xf32> -> vector<16x256xf32>
    %c128_140 = arith.constant 128 : index
    %c0_141 = arith.constant 0 : index
    %255 = vector.load %arg4[%c128_140, %c0_141] : memref<272x256xf32, #tpu.memory_space<vmem>>, vector<1x256xf32>
    %c129_142 = arith.constant 129 : index
    %c0_143 = arith.constant 0 : index
    %256 = vector.load %arg4[%c129_142, %c0_143] : memref<272x256xf32, #tpu.memory_space<vmem>>, vector<1x256xf32>
    %cst_144 = arith.constant dense<0.000000e+00> : vector<256xf32>
    %257 = vector.multi_reduction <add>, %254, %cst_144 [0] : vector<16x256xf32> to vector<256xf32>
    %258 = vector.shape_cast %257 : vector<256xf32> to vector<1x256xf32>
    %cst_145 = arith.constant 1.600000e+01 : f32
    %259 = vector.broadcast %cst_145 : f32 to vector<1x256xf32>
    %260 = arith.divf %258, %259 : vector<1x256xf32>
    %261 = vector.broadcast %260 : vector<1x256xf32> to vector<16x256xf32>
    %262 = arith.subf %254, %261 : vector<16x256xf32>
    %263 = vector.broadcast %260 : vector<1x256xf32> to vector<16x256xf32>
    %264 = arith.subf %254, %263 : vector<16x256xf32>
    %265 = arith.mulf %262, %264 : vector<16x256xf32>
    %cst_146 = arith.constant dense<0.000000e+00> : vector<256xf32>
    %266 = vector.multi_reduction <add>, %265, %cst_146 [0] : vector<16x256xf32> to vector<256xf32>
    %267 = vector.shape_cast %266 : vector<256xf32> to vector<1x256xf32>
    %cst_147 = arith.constant 1.600000e+01 : f32
    %268 = vector.broadcast %cst_147 : f32 to vector<1x256xf32>
    %269 = arith.divf %267, %268 : vector<1x256xf32>
    %cst_148 = arith.constant 9.99999974E-6 : f32
    %270 = vector.broadcast %cst_148 : f32 to vector<1x256xf32>
    %271 = arith.addf %269, %270 : vector<1x256xf32>
    %272 = math.rsqrt %271 : vector<1x256xf32>
    %273 = arith.mulf %255, %272 : vector<1x256xf32>
    %274 = arith.mulf %260, %273 : vector<1x256xf32>
    %275 = arith.subf %256, %274 : vector<1x256xf32>
    %276 = vector.broadcast %273 : vector<1x256xf32> to vector<16x256xf32>
    %277 = arith.mulf %254, %276 : vector<16x256xf32>
    %278 = vector.broadcast %275 : vector<1x256xf32> to vector<16x256xf32>
    %279 = arith.addf %277, %278 : vector<16x256xf32>
    %cst_149 = arith.constant 0.000000e+00 : f32
    %280 = vector.broadcast %cst_149 : f32 to vector<16x256xf32>
    %281 = arith.maximumf %279, %280 : vector<16x256xf32>
    %c0_150 = arith.constant 0 : index
    %c0_151 = arith.constant 0 : index
    %282 = vector.load %arg5[%c0_150, %c0_151] : memref<1072x128xf32, #tpu.memory_space<vmem>>, vector<256x128xf32>
    %cst_152 = arith.constant dense<0.000000e+00> : vector<16x128xf32>
    %283 = tpu.matmul %281, %282, %cst_152 {dimension_numbers = #tpu.dot_dimension_numbers<[1], [0], [0], [1], [0, 0, 1, 1], [], []>} : vector<16x256xf32>, vector<256x128xf32>, vector<16x128xf32> -> vector<16x128xf32>
    %c256_153 = arith.constant 256 : index
    %c0_154 = arith.constant 0 : index
    %284 = vector.load %arg5[%c256_153, %c0_154] : memref<1072x128xf32, #tpu.memory_space<vmem>>, vector<1x128xf32>
    %c257_155 = arith.constant 257 : index
    %c0_156 = arith.constant 0 : index
    %285 = vector.load %arg5[%c257_155, %c0_156] : memref<1072x128xf32, #tpu.memory_space<vmem>>, vector<1x128xf32>
    %cst_157 = arith.constant dense<0.000000e+00> : vector<128xf32>
    %286 = vector.multi_reduction <add>, %283, %cst_157 [0] : vector<16x128xf32> to vector<128xf32>
    %287 = vector.shape_cast %286 : vector<128xf32> to vector<1x128xf32>
    %cst_158 = arith.constant 1.600000e+01 : f32
    %288 = vector.broadcast %cst_158 : f32 to vector<1x128xf32>
    %289 = arith.divf %287, %288 : vector<1x128xf32>
    %290 = vector.broadcast %289 : vector<1x128xf32> to vector<16x128xf32>
    %291 = arith.subf %283, %290 : vector<16x128xf32>
    %292 = vector.broadcast %289 : vector<1x128xf32> to vector<16x128xf32>
    %293 = arith.subf %283, %292 : vector<16x128xf32>
    %294 = arith.mulf %291, %293 : vector<16x128xf32>
    %cst_159 = arith.constant dense<0.000000e+00> : vector<128xf32>
    %295 = vector.multi_reduction <add>, %294, %cst_159 [0] : vector<16x128xf32> to vector<128xf32>
    %296 = vector.shape_cast %295 : vector<128xf32> to vector<1x128xf32>
    %cst_160 = arith.constant 1.600000e+01 : f32
    %297 = vector.broadcast %cst_160 : f32 to vector<1x128xf32>
    %298 = arith.divf %296, %297 : vector<1x128xf32>
    %cst_161 = arith.constant 9.99999974E-6 : f32
    %299 = vector.broadcast %cst_161 : f32 to vector<1x128xf32>
    %300 = arith.addf %298, %299 : vector<1x128xf32>
    %301 = math.rsqrt %300 : vector<1x128xf32>
    %302 = arith.mulf %284, %301 : vector<1x128xf32>
    %303 = arith.mulf %289, %302 : vector<1x128xf32>
    %304 = arith.subf %285, %303 : vector<1x128xf32>
    %305 = vector.broadcast %302 : vector<1x128xf32> to vector<16x128xf32>
    %306 = arith.mulf %283, %305 : vector<16x128xf32>
    %307 = vector.broadcast %304 : vector<1x128xf32> to vector<16x128xf32>
    %308 = arith.addf %306, %307 : vector<16x128xf32>
    %cst_162 = arith.constant 0.000000e+00 : f32
    %309 = vector.broadcast %cst_162 : f32 to vector<16x128xf32>
    %310 = arith.maximumf %308, %309 : vector<16x128xf32>
    %c264_163 = arith.constant 264 : index
    %c0_164 = arith.constant 0 : index
    %311 = vector.load %arg5[%c264_163, %c0_164] : memref<1072x128xf32, #tpu.memory_space<vmem>>, vector<128x128xf32>
    %cst_165 = arith.constant dense<0.000000e+00> : vector<16x128xf32>
    %312 = tpu.matmul %310, %311, %cst_165 {dimension_numbers = #tpu.dot_dimension_numbers<[1], [0], [0], [1], [0, 0, 1, 1], [], []>} : vector<16x128xf32>, vector<128x128xf32>, vector<16x128xf32> -> vector<16x128xf32>
    %c392_166 = arith.constant 392 : index
    %c0_167 = arith.constant 0 : index
    %313 = vector.load %arg5[%c392_166, %c0_167] : memref<1072x128xf32, #tpu.memory_space<vmem>>, vector<1x128xf32>
    %c393_168 = arith.constant 393 : index
    %c0_169 = arith.constant 0 : index
    %314 = vector.load %arg5[%c393_168, %c0_169] : memref<1072x128xf32, #tpu.memory_space<vmem>>, vector<1x128xf32>
    %cst_170 = arith.constant dense<0.000000e+00> : vector<128xf32>
    %315 = vector.multi_reduction <add>, %312, %cst_170 [0] : vector<16x128xf32> to vector<128xf32>
    %316 = vector.shape_cast %315 : vector<128xf32> to vector<1x128xf32>
    %cst_171 = arith.constant 1.600000e+01 : f32
    %317 = vector.broadcast %cst_171 : f32 to vector<1x128xf32>
    %318 = arith.divf %316, %317 : vector<1x128xf32>
    %319 = vector.broadcast %318 : vector<1x128xf32> to vector<16x128xf32>
    %320 = arith.subf %312, %319 : vector<16x128xf32>
    %321 = vector.broadcast %318 : vector<1x128xf32> to vector<16x128xf32>
    %322 = arith.subf %312, %321 : vector<16x128xf32>
    %323 = arith.mulf %320, %322 : vector<16x128xf32>
    %cst_172 = arith.constant dense<0.000000e+00> : vector<128xf32>
    %324 = vector.multi_reduction <add>, %323, %cst_172 [0] : vector<16x128xf32> to vector<128xf32>
    %325 = vector.shape_cast %324 : vector<128xf32> to vector<1x128xf32>
    %cst_173 = arith.constant 1.600000e+01 : f32
    %326 = vector.broadcast %cst_173 : f32 to vector<1x128xf32>
    %327 = arith.divf %325, %326 : vector<1x128xf32>
    %cst_174 = arith.constant 9.99999974E-6 : f32
    %328 = vector.broadcast %cst_174 : f32 to vector<1x128xf32>
    %329 = arith.addf %327, %328 : vector<1x128xf32>
    %330 = math.rsqrt %329 : vector<1x128xf32>
    %331 = arith.mulf %313, %330 : vector<1x128xf32>
    %332 = arith.mulf %318, %331 : vector<1x128xf32>
    %333 = arith.subf %314, %332 : vector<1x128xf32>
    %334 = vector.broadcast %331 : vector<1x128xf32> to vector<16x128xf32>
    %335 = arith.mulf %312, %334 : vector<16x128xf32>
    %336 = vector.broadcast %333 : vector<1x128xf32> to vector<16x128xf32>
    %337 = arith.addf %335, %336 : vector<16x128xf32>
    %cst_175 = arith.constant 0.000000e+00 : f32
    %338 = vector.broadcast %cst_175 : f32 to vector<16x128xf32>
    %339 = arith.maximumf %337, %338 : vector<16x128xf32>
    %c400_176 = arith.constant 400 : index
    %c0_177 = arith.constant 0 : index
    %340 = vector.load %arg5[%c400_176, %c0_177] : memref<1072x128xf32, #tpu.memory_space<vmem>>, vector<128x128xf32>
    %cst_178 = arith.constant dense<0.000000e+00> : vector<16x128xf32>
    %341 = tpu.matmul %339, %340, %cst_178 {dimension_numbers = #tpu.dot_dimension_numbers<[1], [0], [0], [1], [0, 0, 1, 1], [], []>} : vector<16x128xf32>, vector<128x128xf32>, vector<16x128xf32> -> vector<16x128xf32>
    %c528_179 = arith.constant 528 : index
    %c0_180 = arith.constant 0 : index
    %342 = vector.load %arg5[%c528_179, %c0_180] : memref<1072x128xf32, #tpu.memory_space<vmem>>, vector<1x128xf32>
    %343 = vector.broadcast %342 : vector<1x128xf32> to vector<16x128xf32>
    %344 = arith.addf %341, %343 : vector<16x128xf32>
    %cst_181 = arith.constant 0.000000e+00 : f32
    %345 = vector.broadcast %cst_181 : f32 to vector<16x128xf32>
    %346 = arith.maximumf %344, %345 : vector<16x128xf32>
    %c536_182 = arith.constant 536 : index
    %c0_183 = arith.constant 0 : index
    %347 = vector.load %arg5[%c536_182, %c0_183] : memref<1072x128xf32, #tpu.memory_space<vmem>>, vector<128x128xf32>
    %cst_184 = arith.constant dense<0.000000e+00> : vector<16x128xf32>
    %348 = tpu.matmul %346, %347, %cst_184 {dimension_numbers = #tpu.dot_dimension_numbers<[1], [0], [0], [1], [0, 0, 1, 1], [], []>} : vector<16x128xf32>, vector<128x128xf32>, vector<16x128xf32> -> vector<16x128xf32>
    %c664_185 = arith.constant 664 : index
    %c0_186 = arith.constant 0 : index
    %349 = vector.load %arg5[%c664_185, %c0_186] : memref<1072x128xf32, #tpu.memory_space<vmem>>, vector<1x128xf32>
    %c665_187 = arith.constant 665 : index
    %c0_188 = arith.constant 0 : index
    %350 = vector.load %arg5[%c665_187, %c0_188] : memref<1072x128xf32, #tpu.memory_space<vmem>>, vector<1x128xf32>
    %cst_189 = arith.constant dense<0.000000e+00> : vector<128xf32>
    %351 = vector.multi_reduction <add>, %348, %cst_189 [0] : vector<16x128xf32> to vector<128xf32>
    %352 = vector.shape_cast %351 : vector<128xf32> to vector<1x128xf32>
    %cst_190 = arith.constant 1.600000e+01 : f32
    %353 = vector.broadcast %cst_190 : f32 to vector<1x128xf32>
    %354 = arith.divf %352, %353 : vector<1x128xf32>
    %355 = vector.broadcast %354 : vector<1x128xf32> to vector<16x128xf32>
    %356 = arith.subf %348, %355 : vector<16x128xf32>
    %357 = vector.broadcast %354 : vector<1x128xf32> to vector<16x128xf32>
    %358 = arith.subf %348, %357 : vector<16x128xf32>
    %359 = arith.mulf %356, %358 : vector<16x128xf32>
    %cst_191 = arith.constant dense<0.000000e+00> : vector<128xf32>
    %360 = vector.multi_reduction <add>, %359, %cst_191 [0] : vector<16x128xf32> to vector<128xf32>
    %361 = vector.shape_cast %360 : vector<128xf32> to vector<1x128xf32>
    %cst_192 = arith.constant 1.600000e+01 : f32
    %362 = vector.broadcast %cst_192 : f32 to vector<1x128xf32>
    %363 = arith.divf %361, %362 : vector<1x128xf32>
    %cst_193 = arith.constant 9.99999974E-6 : f32
    %364 = vector.broadcast %cst_193 : f32 to vector<1x128xf32>
    %365 = arith.addf %363, %364 : vector<1x128xf32>
    %366 = math.rsqrt %365 : vector<1x128xf32>
    %367 = arith.mulf %349, %366 : vector<1x128xf32>
    %368 = arith.mulf %354, %367 : vector<1x128xf32>
    %369 = arith.subf %350, %368 : vector<1x128xf32>
    %370 = vector.broadcast %367 : vector<1x128xf32> to vector<16x128xf32>
    %371 = arith.mulf %348, %370 : vector<16x128xf32>
    %372 = vector.broadcast %369 : vector<1x128xf32> to vector<16x128xf32>
    %373 = arith.addf %371, %372 : vector<16x128xf32>
    %cst_194 = arith.constant 0.000000e+00 : f32
    %374 = vector.broadcast %cst_194 : f32 to vector<16x128xf32>
    %375 = arith.maximumf %373, %374 : vector<16x128xf32>
    %c672_195 = arith.constant 672 : index
    %c0_196 = arith.constant 0 : index
    %376 = vector.load %arg5[%c672_195, %c0_196] : memref<1072x128xf32, #tpu.memory_space<vmem>>, vector<128x128xf32>
    %cst_197 = arith.constant dense<0.000000e+00> : vector<16x128xf32>
    %377 = tpu.matmul %375, %376, %cst_197 {dimension_numbers = #tpu.dot_dimension_numbers<[1], [0], [0], [1], [0, 0, 1, 1], [], []>} : vector<16x128xf32>, vector<128x128xf32>, vector<16x128xf32> -> vector<16x128xf32>
    %c800_198 = arith.constant 800 : index
    %c0_199 = arith.constant 0 : index
    %378 = vector.load %arg5[%c800_198, %c0_199] : memref<1072x128xf32, #tpu.memory_space<vmem>>, vector<1x128xf32>
    %c801_200 = arith.constant 801 : index
    %c0_201 = arith.constant 0 : index
    %379 = vector.load %arg5[%c801_200, %c0_201] : memref<1072x128xf32, #tpu.memory_space<vmem>>, vector<1x128xf32>
    %cst_202 = arith.constant dense<0.000000e+00> : vector<128xf32>
    %380 = vector.multi_reduction <add>, %377, %cst_202 [0] : vector<16x128xf32> to vector<128xf32>
    %381 = vector.shape_cast %380 : vector<128xf32> to vector<1x128xf32>
    %cst_203 = arith.constant 1.600000e+01 : f32
    %382 = vector.broadcast %cst_203 : f32 to vector<1x128xf32>
    %383 = arith.divf %381, %382 : vector<1x128xf32>
    %384 = vector.broadcast %383 : vector<1x128xf32> to vector<16x128xf32>
    %385 = arith.subf %377, %384 : vector<16x128xf32>
    %386 = vector.broadcast %383 : vector<1x128xf32> to vector<16x128xf32>
    %387 = arith.subf %377, %386 : vector<16x128xf32>
    %388 = arith.mulf %385, %387 : vector<16x128xf32>
    %cst_204 = arith.constant dense<0.000000e+00> : vector<128xf32>
    %389 = vector.multi_reduction <add>, %388, %cst_204 [0] : vector<16x128xf32> to vector<128xf32>
    %390 = vector.shape_cast %389 : vector<128xf32> to vector<1x128xf32>
    %cst_205 = arith.constant 1.600000e+01 : f32
    %391 = vector.broadcast %cst_205 : f32 to vector<1x128xf32>
    %392 = arith.divf %390, %391 : vector<1x128xf32>
    %cst_206 = arith.constant 9.99999974E-6 : f32
    %393 = vector.broadcast %cst_206 : f32 to vector<1x128xf32>
    %394 = arith.addf %392, %393 : vector<1x128xf32>
    %395 = math.rsqrt %394 : vector<1x128xf32>
    %396 = arith.mulf %378, %395 : vector<1x128xf32>
    %397 = arith.mulf %383, %396 : vector<1x128xf32>
    %398 = arith.subf %379, %397 : vector<1x128xf32>
    %399 = vector.broadcast %396 : vector<1x128xf32> to vector<16x128xf32>
    %400 = arith.mulf %377, %399 : vector<16x128xf32>
    %401 = vector.broadcast %398 : vector<1x128xf32> to vector<16x128xf32>
    %402 = arith.addf %400, %401 : vector<16x128xf32>
    %cst_207 = arith.constant 0.000000e+00 : f32
    %403 = vector.broadcast %cst_207 : f32 to vector<16x128xf32>
    %404 = arith.maximumf %402, %403 : vector<16x128xf32>
    %c136_208 = arith.constant 136 : index
    %c0_209 = arith.constant 0 : index
    %405 = vector.load %arg4[%c136_208, %c0_209] : memref<272x256xf32, #tpu.memory_space<vmem>>, vector<128x256xf32>
    %cst_210 = arith.constant dense<0.000000e+00> : vector<16x256xf32>
    %406 = tpu.matmul %404, %405, %cst_210 {dimension_numbers = #tpu.dot_dimension_numbers<[1], [0], [0], [1], [0, 0, 1, 1], [], []>} : vector<16x128xf32>, vector<128x256xf32>, vector<16x256xf32> -> vector<16x256xf32>
    %c264_211 = arith.constant 264 : index
    %c0_212 = arith.constant 0 : index
    %407 = vector.load %arg4[%c264_211, %c0_212] : memref<272x256xf32, #tpu.memory_space<vmem>>, vector<1x256xf32>
    %c265_213 = arith.constant 265 : index
    %c0_214 = arith.constant 0 : index
    %408 = vector.load %arg4[%c265_213, %c0_214] : memref<272x256xf32, #tpu.memory_space<vmem>>, vector<1x256xf32>
    %cst_215 = arith.constant dense<0.000000e+00> : vector<256xf32>
    %409 = vector.multi_reduction <add>, %406, %cst_215 [0] : vector<16x256xf32> to vector<256xf32>
    %410 = vector.shape_cast %409 : vector<256xf32> to vector<1x256xf32>
    %cst_216 = arith.constant 1.600000e+01 : f32
    %411 = vector.broadcast %cst_216 : f32 to vector<1x256xf32>
    %412 = arith.divf %410, %411 : vector<1x256xf32>
    %413 = vector.broadcast %412 : vector<1x256xf32> to vector<16x256xf32>
    %414 = arith.subf %406, %413 : vector<16x256xf32>
    %415 = vector.broadcast %412 : vector<1x256xf32> to vector<16x256xf32>
    %416 = arith.subf %406, %415 : vector<16x256xf32>
    %417 = arith.mulf %414, %416 : vector<16x256xf32>
    %cst_217 = arith.constant dense<0.000000e+00> : vector<256xf32>
    %418 = vector.multi_reduction <add>, %417, %cst_217 [0] : vector<16x256xf32> to vector<256xf32>
    %419 = vector.shape_cast %418 : vector<256xf32> to vector<1x256xf32>
    %cst_218 = arith.constant 1.600000e+01 : f32
    %420 = vector.broadcast %cst_218 : f32 to vector<1x256xf32>
    %421 = arith.divf %419, %420 : vector<1x256xf32>
    %cst_219 = arith.constant 9.99999974E-6 : f32
    %422 = vector.broadcast %cst_219 : f32 to vector<1x256xf32>
    %423 = arith.addf %421, %422 : vector<1x256xf32>
    %424 = math.rsqrt %423 : vector<1x256xf32>
    %425 = arith.mulf %407, %424 : vector<1x256xf32>
    %426 = arith.mulf %412, %425 : vector<1x256xf32>
    %427 = arith.subf %408, %426 : vector<1x256xf32>
    %428 = vector.broadcast %425 : vector<1x256xf32> to vector<16x256xf32>
    %429 = arith.mulf %406, %428 : vector<16x256xf32>
    %430 = vector.broadcast %427 : vector<1x256xf32> to vector<16x256xf32>
    %431 = arith.addf %429, %430 : vector<16x256xf32>
    %cst_220 = arith.constant 0.000000e+00 : f32
    %432 = vector.broadcast %cst_220 : f32 to vector<16x256xf32>
    %433 = arith.maximumf %431, %432 : vector<16x256xf32>
    %c808_221 = arith.constant 808 : index
    %c0_222 = arith.constant 0 : index
    %434 = vector.load %arg5[%c808_221, %c0_222] : memref<1072x128xf32, #tpu.memory_space<vmem>>, vector<256x128xf32>
    %cst_223 = arith.constant dense<0.000000e+00> : vector<16x128xf32>
    %435 = tpu.matmul %433, %434, %cst_223 {dimension_numbers = #tpu.dot_dimension_numbers<[1], [0], [0], [1], [0, 0, 1, 1], [], []>} : vector<16x256xf32>, vector<256x128xf32>, vector<16x128xf32> -> vector<16x128xf32>
    %c1064_224 = arith.constant 1064 : index
    %c0_225 = arith.constant 0 : index
    %436 = vector.load %arg5[%c1064_224, %c0_225] : memref<1072x128xf32, #tpu.memory_space<vmem>>, vector<1x128xf32>
    %437 = vector.broadcast %436 : vector<1x128xf32> to vector<16x128xf32>
    %438 = arith.addf %435, %437 : vector<16x128xf32>
    %cst_226 = arith.constant 0.000000e+00 : f32
    %439 = vector.broadcast %cst_226 : f32 to vector<16x128xf32>
    %440 = arith.maximumf %438, %439 : vector<16x128xf32>
    %c0_227 = arith.constant 0 : index
    %c0_228 = arith.constant 0 : index
    %c0_229 = arith.constant 0 : index
    %441 = vector.load %arg3[%c0_227, %c0_228, %c0_229] : memref<2x16x128xf32, #tpu.memory_space<vmem>>, vector<1x16x128xf32>
    %442 = vector.shape_cast %441 : vector<1x16x128xf32> to vector<16x128xf32>
    %443 = vector.shape_cast %440 : vector<16x128xf32> to vector<1x16x128xf32>
    tpu.vector_store %arg3[%c0_227, %c0_228, %c0_229], %443 {strides = array<i32>} : memref<2x16x128xf32, #tpu.memory_space<vmem>>, vector<1x16x128xf32>,
    %c1 = arith.constant 1 : index
    %c0_230 = arith.constant 0 : index
    %c0_231 = arith.constant 0 : index
    %444 = vector.load %arg3[%c1, %c0_230, %c0_231] : memref<2x16x128xf32, #tpu.memory_space<vmem>>, vector<1x16x128xf32>
    %445 = vector.shape_cast %444 : vector<1x16x128xf32> to vector<16x128xf32>
    %446 = vector.shape_cast %346 : vector<16x128xf32> to vector<1x16x128xf32>
    tpu.vector_store %arg3[%c1, %c0_230, %c0_231], %446 {strides = array<i32>} : memref<2x16x128xf32, #tpu.memory_space<vmem>>, vector<1x16x128xf32>,
    return
  }
}

</mosaic_0001>

<bundles_post_ra>
// kernel: autoencode_forward.1
= control target key start
LH: loop header
LB: loop body
LE: loop exit
PB: predicated region body
PF: predicated region fallthrough
CT: control target
= control target key end

     0   :  { %8 = vsyncpa [#allocation6], 0  ;;  %s3995_s12 = smov [#allocation5]   ;;  %s4430_s0 = inlined_call_operand.hbm [shape: f32[16,128], index: 0, kind: input, shape index: {}]   ;;  %s4431_s1 = inlined_call_operand.hbm [shape: f32[272,256], index: 1, kind: input, shape index: {}]   ;;  %s4432_s2 = inlined_call_operand.hbm [shape: f32[1072,128], index: 2, kind: input, shape index: {}]   ;;  %s4433_s3 = inlined_call_operand.vmem [shape: f32[2,16,128], index: 3, kind: output, shape index: {}]  }
   0x1   :  { %s14_s13 = sshll.u32 %s3995_s12, 4  ;;  %s3761_s16 = scalar_lea.hbm %s4430_s0, 256  ;;  %s15_s13 = int_to_ptr.vmem [resolvable:$true] %s14_s13 }
   0x2   :  { %p3762_p0 = scmp.ne.s32.totalorder %s4430_s0, %s3761_s16  ;;  %p3765_p1 = scmp.lt.u32.totalorder %s3761_s16, %s4430_s0 }
   0x4   :  { %p3767_p2 = pnand %p3765_p1, %p3762_p0 }
   0x6   :  { %3770 = shalt.err (!%p3767_p2)
}
   0x7   :  { %s3771_s21 = scalar_lea.vmem %s15_s13, 256  ;;  %p3776_p4 = scmp.lt.s32.totalorder %s15_s13, %s15_s13 }
   0x8   :  { %p3772_p3 = scmp.ne.s32.totalorder %s15_s13, %s3771_s21  ;;  %p3777_p5 = scmp.lt.s32.totalorder %s3771_s21, %s3771_s21 }
   0xa   :  { %p3778_p6 = por %p3777_p5, %p3776_p4 }
   0xc   :  { %p3779_p7 = pnand %p3778_p6, %p3772_p3 }
   0xe   :  { %3782 = shalt.err (!%p3779_p7)
}
   0xf   :  { %s3996_s22 = smov 128   ;;  %s3997_s23 = smov 8  }
  0x10   :  { %20 = dma.hbm_to_vmem [thread:$0]  %s4430_s0, 256, %s15_s13, [#allocation6], %s3996_s22, %s3996_s22, %s3997_s23  }
  0x11   :  { %3977 = dma.done.wait [#allocation6], 256  }
  0x12   :  { %3978 = vsyncadd [#allocation6], 4294967040  ;;  %s3998_s26 = smov [#allocation2]   ;;  %s3999_s28 = smov [#allocation3]  }
  0x13   :  { %s31_s27 = sshll.u32 %s3998_s26, 4  ;;  %s43_s29 = sshll.u32 %s3999_s28, 4  ;;  %s4040_s27 = int_to_ptr.vmem [resolvable:$true] %s31_s27  ;;  %s4042_s29 = int_to_ptr.vmem [resolvable:$true] %s43_s29 }
  0x14   :  { %s4047_s5 = scalar_lea.hbm %s4431_s1, 4352  ;;  %s4056_s9 = scalar_lea.hbm %s4431_s1, 8704 }
  0x15   :  { %p3784_p8 = scmp.ne.s32.totalorder %s4431_s1, %s4047_s5  ;;  %p3786_p9 = scmp.lt.u32.totalorder %s4056_s9, %s4047_s5 }
  0x16   :  { %p3787_p10 = scmp.lt.u32.totalorder %s4047_s5, %s4431_s1 }
  0x18   :  { %p3788_p11 = por %p3787_p10, %p3786_p9 }
  0x1a   :  { %p3789_p12 = pnand %p3788_p11, %p3784_p8 }
  0x1c   :  { %3792 = shalt.err (!%p3789_p12)  }
  0x1d   :  { %s3793_s14 = scalar_lea.vmem %s4040_s27, 4352  ;;  %s3797_s15 = scalar_lea.vmem %s4040_s27, 8704 }
  0x1e   :  { %p3794_p13 = scmp.ne.s32.totalorder %s4040_s27, %s3793_s14  ;;  %p3798_p0 = scmp.lt.s32.totalorder %s4040_s27, %s4040_s27 }
  0x1f   :  { %p3799_p1 = scmp.lt.s32.totalorder %s3797_s15, %s3793_s14 }
  0x21   :  { %p3800_p2 = por %p3799_p1, %p3798_p0 }
  0x23   :  { %p3801_p3 = pnand %p3800_p2, %p3794_p13 }
  0x25   :  { %3804 = shalt.err (!%p3801_p3)  }
  0x26   :  { %34 = dma.hbm_to_vmem [thread:$0]  %s4431_s1, 4352, %s4040_s27, [#allocation4] }
  0x27   :  { %s4086_s20 = scalar_lea.hbm %s4432_s2, 4224  ;;  %s4095_s25 = scalar_lea.hbm %s4432_s2, 17152 }
  0x28   :  { %p3806_p4 = scmp.ne.s32.totalorder %s4432_s2, %s4086_s20  ;;  %p3808_p5 = scmp.lt.u32.totalorder %s4095_s25, %s4086_s20 }
  0x29   :  { %p3809_p6 = scmp.lt.u32.totalorder %s4086_s20, %s4432_s2 }
  0x2b   :  { %p3810_p7 = por %p3809_p6, %p3808_p5 }
  0x2d   :  { %p3811_p8 = pnand %p3810_p7, %p3806_p4 }
  0x2f   :  { %3814 = shalt.err (!%p3811_p8)  }
  0x30   :  { %s3815_s6 = scalar_lea.vmem %s4042_s29, 4224  ;;  %s4111_s7 = scalar_lea.vmem %s4042_s29, 17152 }
  0x31   :  { %p3816_p11 = scmp.ne.s32.totalorder %s4042_s29, %s3815_s6  ;;  %p3820_p12 = scmp.lt.s32.totalorder %s4042_s29, %s4042_s29 }
  0x32   :  { %p3821_p13 = scmp.lt.s32.totalorder %s4111_s7, %s3815_s6 }
  0x34   :  { %p3822_p0 = por %p3821_p13, %p3820_p12 }
  0x36   :  { %p3823_p1 = pnand %p3822_p0, %p3816_p11 }
  0x38   :  { %3826 = shalt.err (!%p3823_p1)  }
  0x39   :  { %46 = dma.hbm_to_vmem [thread:$0]  %s4432_s2, 4224, %s4042_s29, [#allocation4 + $0x1]  ;;  %v4125_v0 = vld [vmem:[#allocation5] sm:$0xff]  ;;  %v4127_v1 = vld [vmem:[#allocation5 + $0x8] sm:$0xff] }
  0x3a   :  { %s4000_s10 = smov [#allocation3 + $0x108]   ;;  %s4123_s14 = scalar_lea.hbm %s4432_s2, 6400 }
  0x3b   :  { %s57_s11 = sshll.u32 %s4000_s10, 4  ;;  %p3828_p2 = scmp.ne.s32.totalorder %s4086_s20, %s4123_s14  ;;  %s58_s11 = int_to_ptr.vmem [resolvable:$true] %s57_s11 }
  0x3c   :  { %p3831_p3 = scmp.lt.u32.totalorder %s4095_s25, %s4123_s14  ;;  %p3833_p5 = scmp.lt.u32.totalorder %s4123_s14, %s4086_s20 }
  0x3e   :  { %p3832_p4 = por %p3831_p3, %p3809_p6 }
  0x40   :  { %p3834_p7 = por %p3833_p5, %p3832_p4 }
  0x42   :  { %p3835_p8 = pnand %p3834_p7, %p3828_p2 }
  0x44   :  { %3838 = shalt.err (!%p3835_p8)  }
  0x45   :  { %s3839_s18 = scalar_lea.vmem %s58_s11, 2176  ;;  %p3844_p12 = scmp.lt.s32.totalorder %s58_s11, %s4042_s29 }
  0x46   :  { %p3840_p11 = scmp.ne.s32.totalorder %s58_s11, %s3839_s18  ;;  %p3845_p13 = scmp.lt.s32.totalorder %s4111_s7, %s3839_s18 }
  0x48   :  { %p3846_p0 = por %p3845_p13, %p3844_p12 }
  0x4a   :  { %p3847_p1 = pnand %p3846_p0, %p3840_p11 }
  0x4c   :  { %3850 = shalt.err (!%p3847_p1)  }
  0x4d   :  { %60 = dma.hbm_to_vmem [thread:$0]  %s4086_s20, 2176, %s58_s11, [#allocation4 + $0x2] }
  0x4e   :  { %s4001_s19 = smov [#allocation3 + $0x190]   ;;  %s4146_s24 = scalar_lea.hbm %s4432_s2, 8576 }
  0x4f   :  { %s71_s21 = sshll.u32 %s4001_s19, 4  ;;  %p3853_p6 = scmp.ne.s32.totalorder %s4123_s14, %s4146_s24  ;;  %s72_s21 = int_to_ptr.vmem [resolvable:$true] %s71_s21 }
  0x50   :  { %p3855_p2 = scmp.lt.u32.totalorder %s4123_s14, %s4432_s2  ;;  %p3856_p3 = scmp.lt.u32.totalorder %s4095_s25, %s4146_s24 }
  0x51   :  { %p3858_p5 = scmp.lt.u32.totalorder %s4146_s24, %s4123_s14 }
  0x52   :  { %p3857_p4 = por %p3856_p3, %p3855_p2 }
  0x54   :  { %p3859_p7 = por %p3858_p5, %p3857_p4 }
  0x56   :  { %p3860_p8 = pnand %p3859_p7, %p3853_p6 }
  0x58   :  { %3863 = shalt.err (!%p3860_p8)  }
  0x59   :  { %s3864_s20 = scalar_lea.vmem %s72_s21, 2176  ;;  %p3869_p12 = scmp.lt.s32.totalorder %s72_s21, %s4042_s29 }
  0x5a   :  { %p3865_p11 = scmp.ne.s32.totalorder %s72_s21, %s3864_s20  ;;  %p3870_p13 = scmp.lt.s32.totalorder %s4111_s7, %s3864_s20 }
  0x5c   :  { %p3871_p0 = por %p3870_p13, %p3869_p12 }
  0x5e   :  { %p3872_p1 = pnand %p3871_p0, %p3865_p11 }
  0x60   :  { %3875 = shalt.err (!%p3872_p1)  }
  0x61   :  { %74 = dma.hbm_to_vmem [thread:$0]  %s4123_s14, 2176, %s72_s21, [#allocation4 + $0x3] }
  0x62   :  { %s4002_s30 = smov [#allocation3 + $0x218]   ;;  %s4164_s8 = scalar_lea.hbm %s4432_s2, 10752 }
  0x63   :  { %s85_s4 = sshll.u32 %s4002_s30, 4  ;;  %p3878_p6 = scmp.ne.s32.totalorder %s4146_s24, %s4164_s8  ;;  %s86_s4 = int_to_ptr.vmem [resolvable:$true] %s85_s4 }
  0x64   :  { %p3880_p2 = scmp.lt.u32.totalorder %s4146_s24, %s4432_s2  ;;  %p3881_p3 = scmp.lt.u32.totalorder %s4095_s25, %s4164_s8 }
  0x65   :  { %p3883_p5 = scmp.lt.u32.totalorder %s4164_s8, %s4146_s24 }
  0x66   :  { %p3882_p4 = por %p3881_p3, %p3880_p2 }
  0x68   :  { %p3884_p7 = por %p3883_p5, %p3882_p4 }
  0x6a   :  { %p3885_p8 = pnand %p3884_p7, %p3878_p6 }
  0x6c   :  { %3888 = shalt.err (!%p3885_p8)  }
  0x6d   :  { %s3889_s12 = scalar_lea.vmem %s86_s4, 2176  ;;  %p3894_p12 = scmp.lt.s32.totalorder %s86_s4, %s4042_s29 }
  0x6e   :  { %p3890_p11 = scmp.ne.s32.totalorder %s86_s4, %s3889_s12  ;;  %p3895_p13 = scmp.lt.s32.totalorder %s4111_s7, %s3889_s12 }
  0x70   :  { %p3896_p0 = por %p3895_p13, %p3894_p12 }
  0x72   :  { %p3897_p1 = pnand %p3896_p0, %p3890_p11 }
  0x74   :  { %3900 = shalt.err (!%p3897_p1)  }
  0x75   :  { %88 = dma.hbm_to_vmem [thread:$0]  %s4146_s24, 2176, %s86_s4, [#allocation4 + $0x4] }
  0x76   :  { %s4003_s13 = smov [#allocation3 + $0x2a0]   ;;  %s4182_s18 = scalar_lea.hbm %s4432_s2, 12928 }
  0x77   :  { %s99_s14 = sshll.u32 %s4003_s13, 4  ;;  %p3903_p6 = scmp.ne.s32.totalorder %s4164_s8, %s4182_s18  ;;  %s100_s14 = int_to_ptr.vmem [resolvable:$true] %s99_s14 }
  0x78   :  { %p3905_p2 = scmp.lt.u32.totalorder %s4164_s8, %s4432_s2  ;;  %p3906_p3 = scmp.lt.u32.totalorder %s4095_s25, %s4182_s18 }
  0x79   :  { %p3908_p5 = scmp.lt.u32.totalorder %s4182_s18, %s4164_s8 }
  0x7a   :  { %p3907_p4 = por %p3906_p3, %p3905_p2 }
  0x7c   :  { %p3909_p7 = por %p3908_p5, %p3907_p4 }
  0x7e   :  { %p3910_p8 = pnand %p3909_p7, %p3903_p6 }
  0x80   :  { %3913 = shalt.err (!%p3910_p8)  }
  0x81   :  { %s3914_s22 = scalar_lea.vmem %s100_s14, 2176  ;;  %p3919_p12 = scmp.lt.s32.totalorder %s100_s14, %s4042_s29 }
  0x82   :  { %p3915_p11 = scmp.ne.s32.totalorder %s100_s14, %s3914_s22  ;;  %p3920_p13 = scmp.lt.s32.totalorder %s4111_s7, %s3914_s22 }
  0x84   :  { %p3921_p0 = por %p3920_p13, %p3919_p12 }
  0x86   :  { %p3922_p1 = pnand %p3921_p0, %p3915_p11 }
  0x88   :  { %3925 = shalt.err (!%p3922_p1)  }
  0x89   :  { %102 = dma.hbm_to_vmem [thread:$0]  %s4164_s8, 2176, %s100_s14, [#allocation4 + $0x5] }
  0x8a   :  { %s4004_s23 = smov [#allocation2 + $0x110]   ;;  %p3928_p6 = scmp.ne.s32.totalorder %s4047_s5, %s4056_s9 }
  0x8b   :  { %s113_s24 = sshll.u32 %s4004_s23, 4  ;;  %p3931_p2 = scmp.lt.u32.totalorder %s4056_s9, %s4056_s9  ;;  %s114_s24 = int_to_ptr.vmem [resolvable:$true] %s113_s24 }
  0x8d   :  { %p3932_p4 = por %p3931_p2, %p3787_p10 }
  0x8f   :  { %p3934_p5 = por %p3932_p4, %p3786_p9 }
  0x91   :  { %p3935_p7 = pnand %p3934_p5, %p3928_p6 }
  0x93   :  { %3938 = shalt.err (!%p3935_p7)  }
  0x94   :  { %s3939_s20 = scalar_lea.vmem %s114_s24, 4352  ;;  %p3944_p11 = scmp.lt.s32.totalorder %s114_s24, %s4040_s27 }
  0x95   :  { %p3940_p8 = scmp.ne.s32.totalorder %s114_s24, %s3939_s20  ;;  %p3945_p12 = scmp.lt.s32.totalorder %s3797_s15, %s3939_s20 }
  0x97   :  { %p3946_p13 = por %p3945_p12, %p3944_p11 }
  0x99   :  { %p3947_p0 = pnand %p3946_p13, %p3940_p8 }
  0x9b   :  { %3950 = shalt.err (!%p3947_p0)  }
  0x9c   :  { %116 = dma.hbm_to_vmem [thread:$0]  %s4047_s5, 4352, %s114_s24, [#allocation4 + $0x6] }
  0x9d   :  { %s4005_s1 = smov [#allocation3 + $0x328]   ;;  %p3953_p9 = scmp.ne.s32.totalorder %s4182_s18, %s4095_s25 }
  0x9e   :  { %s127_s9 = sshll.u32 %s4005_s1, 4  ;;  %p3955_p10 = scmp.lt.u32.totalorder %s4182_s18, %s4432_s2  ;;  %s128_s9 = int_to_ptr.vmem [resolvable:$true] %s127_s9 }
  0x9f   :  { %p3956_p1 = scmp.lt.u32.totalorder %s4095_s25, %s4095_s25 }
  0xa1   :  { %p3957_p6 = por %p3956_p1, %p3955_p10 }
  0xa3   :  { %p3959_p2 = por %p3957_p6, %p3906_p3 }
  0xa5   :  { %p3960_p4 = pnand %p3959_p2, %p3953_p9 }
  0xa7   :  { %3963 = shalt.err (!%p3960_p4)  }
  0xa8   :  { %s3964_s27 = scalar_lea.vmem %s128_s9, 4224  ;;  %p3969_p7 = scmp.lt.s32.totalorder %s128_s9, %s4042_s29 }
  0xa9   :  { %p3965_p5 = scmp.ne.s32.totalorder %s128_s9, %s3964_s27  ;;  %p3970_p8 = scmp.lt.s32.totalorder %s4111_s7, %s3964_s27 }
  0xab   :  { %p3971_p11 = por %p3970_p8, %p3969_p7 }
  0xad   :  { %p3972_p12 = pnand %p3971_p11, %p3965_p5 }
  0xaf   :  { %3975 = shalt.err (!%p3972_p12)  }
  0xb0   :  { %130 = dma.hbm_to_vmem [thread:$0]  %s4182_s18, 4224, %s128_s9, [#allocation4 + $0x7] }
  0xb1   :  { %3979 = dma.done.wait [#allocation4], 4352 }
  0xb2   :  { %3980 = vsyncadd [#allocation4], 4294962944  ;;  %v4006_v2 = vmov 0.0   ;;  %v138_v3 = vld [vmem:[#allocation2 + $0x8] sm:$0xff]  ;;  %v140_v4 = vld [vmem:[#allocation2 + $0x18] sm:$0xff] }
  0xb3   :  { %233 = vmatprep.mubr.f32.mxu0 %v4006_v2  ;;  %v137_v5 = vld [vmem:[#allocation2] sm:$0xff]  ;;  %v3203_v6 = vpack.c.bf16 %v140_v4, %v138_v3  ;;  %v139_v7 = vld [vmem:[#allocation2 + $0x10] sm:$0xff]  ;;  %v142_v8 = vld [vmem:[#allocation2 + $0x28] sm:$0xff] }
  0xb4   :  { %v144_v9 = vld [vmem:[#allocation2 + $0x38] sm:$0xff]  ;;  %v3205_v10 = vpack.c.bf16 %v139_v7, %v137_v5  ;;  %v141_v12 = vld [vmem:[#allocation2 + $0x20] sm:$0xff]  ;;  %v143_v13 = vld [vmem:[#allocation2 + $0x30] sm:$0xff] }
  0xb5   :  { %v3207_v11 = vpack.c.bf16 %v144_v9, %v142_v8  ;;  %v146_v14 = vld [vmem:[#allocation2 + $0x48] sm:$0xff]  ;;  %3204 = vmatprep.subr.bf16.mxu0 %v3203_v6  ;;  %v148_v15 = vld [vmem:[#allocation2 + $0x58] sm:$0xff]  ;;  %v3209_v16 = vpack.c.bf16 %v143_v13, %v141_v12  ;;  %v145_v18 = vld [vmem:[#allocation2 + $0x40] sm:$0xff] }
  0xb6   :  { %3206 = vmatpush1.bf16.msra.mxu0 %v3205_v10  ;;  %v3211_v17 = vpack.c.bf16 %v148_v15, %v146_v14  ;;  %v147_v19 = vld [vmem:[#allocation2 + $0x50] sm:$0xff]  ;;  %v150_v20 = vld [vmem:[#allocation2 + $0x68] sm:$0xff]  ;;  %v152_v21 = vld [vmem:[#allocation2 + $0x78] sm:$0xff] }
  0xb7   :  { %3208 = vmatprep.subr.bf16.mxu0 %v3207_v11  ;;  %v3213_v22 = vpack.c.bf16 %v147_v19, %v145_v18  ;;  %v3215_v23 = vpack.c.bf16 %v152_v21, %v150_v20  ;;  %v149_v24 = vld [vmem:[#allocation2 + $0x60] sm:$0xff]  ;;  %v151_v25 = vld [vmem:[#allocation2 + $0x70] sm:$0xff]  ;;  %v154_v26 = vld [vmem:[#allocation2 + $0x88] sm:$0xff] }
  0xb8   :  { %v156_v27 = vld [vmem:[#allocation2 + $0x98] sm:$0xff]  ;;  %v3217_v28 = vpack.c.bf16 %v151_v25, %v149_v24  ;;  %v153_v30 = vld [vmem:[#allocation2 + $0x80] sm:$0xff]  ;;  %v155_v31 = vld [vmem:[#allocation2 + $0x90] sm:$0xff] }
  0xb9   :  { %v3219_v29 = vpack.c.bf16 %v156_v27, %v154_v26  ;;  %v158_v32 = vld [vmem:[#allocation2 + $0xa8] sm:$0xff]  ;;  %v160_v33 = vld [vmem:[#allocation2 + $0xb8] sm:$0xff]  ;;  %v3221_v34 = vpack.c.bf16 %v155_v31, %v153_v30  ;;  %v157_v36 = vld [vmem:[#allocation2 + $0xa0] sm:$0xff] }
  0xba   :  { %3210 = vmatpush1.bf16.msra.mxu0 %v3209_v16  ;;  %v3223_v35 = vpack.c.bf16 %v160_v33, %v158_v32  ;;  %v159_v37 = vld [vmem:[#allocation2 + $0xb0] sm:$0xff]  ;;  %v162_v38 = vld [vmem:[#allocation2 + $0xc8] sm:$0xff]  ;;  %v164_v39 = vld [vmem:[#allocation2 + $0xd8] sm:$0xff] }
  0xbb   :  { %3212 = vmatprep.subr.bf16.mxu0 %v3211_v17  ;;  %v3225_v40 = vpack.c.bf16 %v159_v37, %v157_v36  ;;  %v3227_v41 = vpack.c.bf16 %v164_v39, %v162_v38  ;;  %v161_v42 = vld [vmem:[#allocation2 + $0xc0] sm:$0xff]  ;;  %v163_v43 = vld [vmem:[#allocation2 + $0xd0] sm:$0xff]  ;;  %v166_v44 = vld [vmem:[#allocation2 + $0xe8] sm:$0xff]  ;;  %v301_v36 = vlaneseq }
  0xbc   :  { %v168_v45 = vld [vmem:[#allocation2 + $0xf8] sm:$0xff]  ;;  %v3229_v46 = vpack.c.bf16 %v163_v43, %v161_v42  ;;  %v165_v48 = vld [vmem:[#allocation2 + $0xe0] sm:$0xff]  ;;  %v167_v49 = vld [vmem:[#allocation2 + $0xf0] sm:$0xff] }
  0xbd   :  { %v3231_v47 = vpack.c.bf16 %v168_v45, %v166_v44  ;;  %v3233_v50 = vpack.c.bf16 %v167_v49, %v165_v48  ;;  %v302_v38 = vshrl.u32 %v301_v36, 7  ;;  %v247_v44 = vld [vmem:[#allocation2 + $0x100] ss:$8 sm:$0x3] }
  0xbe   :  { %3214 = vmatpush1.bf16.msra.mxu0 %v3213_v22 }
  0xbf   :  { %3216 = vmatprep.subr.bf16.mxu0 %v3215_v23 }
  0xc2   :  { %3218 = vmatpush1.bf16.msra.mxu0 %v3217_v28 }
  0xc3   :  { %3220 = vmatprep.subr.bf16.mxu0 %v3219_v29 }
  0xc6   :  { %3222 = vmatpush1.bf16.msra.mxu0 %v3221_v34  ;;  %v4007_v34 = vmov 1966171168  }
  0xc7   :  { %3224 = vmatprep.subr.bf16.mxu0 %v3223_v35  ;;  %v299_v35 = vunpack.c.l.s4 %v4007_v34 }
  0xc9   :  { %v300_v37 = vunpack.c.0.s8 %v299_v35 }
  0xca   :  { %3226 = vmatpush1.bf16.msra.mxu0 %v3225_v40 }
  0xcb   :  { %3228 = vmatprep.subr.bf16.mxu0 %v3227_v41  ;;  %v4250_v40 = vsub.s32 %v300_v37, %v302_v38 }
  0xce   :  { %3230 = vmatpush1.bf16.msra.mxu0 %v3229_v46  ;;  %v4254_v46 = vsub.s32 0, %v302_v38 }
  0xcf   :  { %3232 = vmatprep.subr.bf16.mxu0 %v3231_v47  ;;  %v4256_v47 = vsub.s32 1, %v302_v38 }
  0xd2   :  { %3234 = vmatpush1.bf16.msra.mxu0 %v3233_v50 }
  0xd5   :  { %234 = vmatmul.mubr.f32.vlgmr.msra.gmra.mrb[0].mxu0 %v4125_v0 }
  0xd6   :  { %239 = vmatprep.mubr.f32.mxu0 %v4006_v2 }
  0xd9   :  { %240 = vmatmul.mubr.f32.gmra.mrb[2].mxu0 %v4127_v1 }
 0x1a8   :  { %v4234_v51 = vpop.f32.mrb[0].mxu0 }
 0x1a9   :  { %v4236_v52 = vpop.f32.mrb[1].mxu0 }
 0x1ac   :  { %v4238_v53 = vpop.f32.mrb[2].mxu0 }
 0x1ad   :  { %v250_v54 = vadd.f32 %v4238_v53, %v4234_v51  ;;  %v4242_v55 = vpop.f32.mrb[3].mxu0 }
 0x1ae   :  { %v257_v56 = vadd.f32 %v4242_v55, %v4236_v52 }
 0x1af   :  { %v251_v57 = vrot.slane %v250_v54, 4 }
 0x1b0   :  { %v258_v58 = vrot.slane %v257_v56, 4 }
 0x1b1   :  { %v252_v59 = vadd.f32 %v251_v57, %v250_v54 }
 0x1b2   :  { %v259_v60 = vadd.f32 %v258_v58, %v257_v56 }
 0x1b3   :  { %v253_v61 = vrot.slane %v252_v59, 2 }
 0x1b4   :  { %v260_v62 = vrot.slane %v259_v60, 2 }
 0x1b5   :  { %v254_v63 = vadd.f32 %v253_v61, %v252_v59 }
 0x1b6   :  { %v261_v0 = vadd.f32 %v260_v62, %v259_v60 }
 0x1b7   :  { %v255_v1 = vrot.slane %v254_v63, 1 }
 0x1b8   :  { %v262_v3 = vrot.slane %v261_v0, 1 }
 0x1b9   :  { %v256_v4 = vadd.f32 %v255_v1, %v254_v63  ;;  %v249_v63 = vld [vmem:[#allocation2 + $0x101] ss:$8 sm:$0x3] }
 0x1ba   :  { %v263_v5 = vadd.f32 %v262_v3, %v261_v0 }
 0x1bb   :  { %v265_v6 = vmul.f32 0.0625, %v256_v4 }
 0x1bc   :  { %v266_v7 = vmul.f32 0.0625, %v263_v5 }
 0x1bd   :  { %v267_v8 = vsub.f32 %v4234_v51, %v265_v6  ;;  %v269_v9 = vsub.f32 %v4238_v53, %v265_v6 }
 0x1be   :  { %v268_v10 = vsub.f32 %v4236_v52, %v266_v7  ;;  %v270_v11 = vsub.f32 %v4242_v55, %v266_v7 }
 0x1bf   :  { %v271_v12 = vmul.f32 %v267_v8, %v267_v8  ;;  %v273_v13 = vmul.f32 %v269_v9, %v269_v9 }
 0x1c0   :  { %v272_v14 = vmul.f32 %v268_v10, %v268_v10  ;;  %v274_v15 = vmul.f32 %v270_v11, %v270_v11 }
 0x1c1   :  { %v275_v16 = vadd.f32 %v273_v13, %v271_v12 }
 0x1c2   :  { %v282_v17 = vadd.f32 %v274_v15, %v272_v14 }
 0x1c3   :  { %v276_v18 = vrot.slane %v275_v16, 4 }
 0x1c4   :  { %v283_v19 = vrot.slane %v282_v17, 4 }
 0x1c5   :  { %v277_v20 = vadd.f32 %v276_v18, %v275_v16 }
 0x1c6   :  { %v284_v21 = vadd.f32 %v283_v19, %v282_v17 }
 0x1c7   :  { %v278_v22 = vrot.slane %v277_v20, 2 }
 0x1c8   :  { %v285_v23 = vrot.slane %v284_v21, 2 }
 0x1c9   :  { %v279_v24 = vadd.f32 %v278_v22, %v277_v20 }
 0x1ca   :  { %v286_v25 = vadd.f32 %v285_v23, %v284_v21 }
 0x1cb   :  { %v280_v26 = vrot.slane %v279_v24, 1 }
 0x1cc   :  { %v287_v27 = vrot.slane %v286_v25, 1 }
 0x1cd   :  { %v281_v28 = vadd.f32 %v280_v26, %v279_v24 }
 0x1ce   :  { %v288_v29 = vadd.f32 %v287_v27, %v286_v25 }
 0x1cf   :  { %v289_v30 = vmul.f32 0.0625, %v281_v28 }
 0x1d0   :  { %v290_v31 = vmul.f32 0.0625, %v288_v29 }
 0x1d1   :  { %v291_v32 = vadd.f32 1e-05, %v289_v30 }
 0x1d2   :  { %v292_v33 = vadd.f32 1e-05, %v290_v31 }
 0x1d3   :  { %3728 = vrsqrt.f32 %v291_v32 }
 0x1d4   :  { %3730 = vrsqrt.f32 %v292_v33 }
 0x1dd   :  { %v3729_v39 = vpop.eup %3728 }
 0x1de   :  { %v3731_v41 = vpop.eup %3730 }
 0x1df   :  { %v297_v42 = vcombine.low %v3729_v39, %v3731_v41 }
 0x1e1   :  { %v304_v43 = vrot.slane %v297_v42, %v4250_v40 }
 0x1e3   :  { %v311_v45 = vrot.slane %v304_v43, %v4250_v40 }
 0x1e5   :  { %v313_v48 = vmul.f32 %v311_v45, %v247_v44 }
 0x1e7   :  { %v318_v49 = vrot.slane %v313_v48, %v4254_v46  ;;  %v322_v50 = vrot.slane %v313_v48, %v4256_v47 }
 0x1e9   :  { %v325_v54 = vmul.f32 %v318_v49, %v265_v6  ;;  %v326_v56 = vmul.f32 %v322_v50, %v266_v7  ;;  %v346_v57 = vmul.f32 %v318_v49, %v4234_v51  ;;  %v347_v58 = vmul.f32 %v322_v50, %v4236_v52 }
 0x1ea   :  { %v348_v59 = vmul.f32 %v318_v49, %v4238_v53  ;;  %v349_v60 = vmul.f32 %v322_v50, %v4242_v55 }
 0x1eb   :  { %v329_v61 = vcombine.low %v325_v54, %v326_v56 }
 0x1ed   :  { %v336_v62 = vrot.slane %v329_v61, %v4250_v40 }
 0x1ef   :  { %v343_v0 = vrot.slane %v336_v62, %v4250_v40 }
 0x1f1   :  { %v345_v1 = vsub.f32 %v249_v63, %v343_v0 }
 0x1f3   :  { %v354_v3 = vrot.slane %v345_v1, %v4254_v46  ;;  %v358_v4 = vrot.slane %v345_v1, %v4256_v47 }
 0x1f5   :  { %v4268_v5 = vadd.f32 %v354_v3, %v346_v57  ;;  %v362_v51 = vadd.f32 %v358_v4, %v347_v58  ;;  %v4270_v6 = vadd.f32 %v354_v3, %v348_v59  ;;  %v4272_v52 = vadd.f32 %v358_v4, %v349_v60 }
 0x1f7   :  { %v365_v53 = vmax.f32 %v4268_v5, 0.0  ;;  %v366_v55 = vmax.f32 %v362_v51, 0.0  ;;  %v367_v7 = vmax.f32 %v4270_v6, 0.0  ;;  %v368_v8 = vmax.f32 %v4272_v52, 0.0 }
 0x1f8   :  { %3981 = dma.done.wait [#allocation4 + $0x1], 4224 }
 0x1f9   :  { %3982 = vsyncadd [#allocation4 + $0x1], 4294963072  ;;  %468 = vmatprep.mubr.f32.mxu1 %v366_v55  ;;  %v388_v9 = vld [vmem:[#allocation3 + $0x80] sm:$0xff]  ;;  %v389_v10 = vld [vmem:[#allocation3 + $0x88] sm:$0xff] }
 0x1fa   :  { %v372_v11 = vld [vmem:[#allocation3] sm:$0xff]  ;;  %v3235_v12 = vpack.c.bf16 %v389_v10, %v388_v9  ;;  %v373_v13 = vld [vmem:[#allocation3 + $0x8] sm:$0xff]  ;;  %v390_v14 = vld [vmem:[#allocation3 + $0x90] sm:$0xff] }
 0x1fb   :  { %v391_v15 = vld [vmem:[#allocation3 + $0x98] sm:$0xff]  ;;  %v3237_v16 = vpack.c.bf16 %v373_v13, %v372_v11  ;;  %v374_v18 = vld [vmem:[#allocation3 + $0x10] sm:$0xff]  ;;  %v392_v20 = vld [vmem:[#allocation3 + $0xa0] sm:$0xff] }
 0x1fc   :  { %v3239_v17 = vpack.c.bf16 %v391_v15, %v390_v14  ;;  %v375_v19 = vld [vmem:[#allocation3 + $0x18] sm:$0xff]  ;;  %3236 = vmatprep.subr.bf16.mxu1 %v3235_v12  ;;  %v393_v21 = vld [vmem:[#allocation3 + $0xa8] sm:$0xff]  ;;  %v376_v24 = vld [vmem:[#allocation3 + $0x20] sm:$0xff] }
 0x1fd   :  { %3238 = vmatpush3.bf16.msra.mxu1 %v3237_v16  ;;  %v3241_v22 = vpack.c.bf16 %v375_v19, %v374_v18  ;;  %v3243_v23 = vpack.c.bf16 %v393_v21, %v392_v20  ;;  %v377_v25 = vld [vmem:[#allocation3 + $0x28] sm:$0xff]  ;;  %v394_v26 = vld [vmem:[#allocation3 + $0xb0] sm:$0xff]  ;;  %v395_v27 = vld [vmem:[#allocation3 + $0xb8] sm:$0xff] }
 0x1fe   :  { %3240 = vmatprep.subr.bf16.mxu1 %v3239_v17  ;;  %v3245_v28 = vpack.c.bf16 %v377_v25, %v376_v24  ;;  %v3247_v29 = vpack.c.bf16 %v395_v27, %v394_v26  ;;  %v378_v30 = vld [vmem:[#allocation3 + $0x30] sm:$0xff]  ;;  %v379_v31 = vld [vmem:[#allocation3 + $0x38] sm:$0xff]  ;;  %v396_v32 = vld [vmem:[#allocation3 + $0xc0] sm:$0xff] }
 0x1ff   :  { %v397_v33 = vld [vmem:[#allocation3 + $0xc8] sm:$0xff]  ;;  %v3249_v34 = vpack.c.bf16 %v379_v31, %v378_v30  ;;  %v380_v36 = vld [vmem:[#allocation3 + $0x40] sm:$0xff]  ;;  %v398_v38 = vld [vmem:[#allocation3 + $0xd0] sm:$0xff] }
 0x200   :  { %v3251_v35 = vpack.c.bf16 %v397_v33, %v396_v32  ;;  %v381_v37 = vld [vmem:[#allocation3 + $0x48] sm:$0xff]  ;;  %v399_v39 = vld [vmem:[#allocation3 + $0xd8] sm:$0xff]  ;;  %v382_v43 = vld [vmem:[#allocation3 + $0x50] sm:$0xff] }
 0x201   :  { %3242 = vmatpush3.bf16.msra.mxu1 %v3241_v22  ;;  %v3253_v41 = vpack.c.bf16 %v381_v37, %v380_v36  ;;  %v3255_v42 = vpack.c.bf16 %v399_v39, %v398_v38  ;;  %v383_v44 = vld [vmem:[#allocation3 + $0x58] sm:$0xff]  ;;  %v400_v45 = vld [vmem:[#allocation3 + $0xe0] sm:$0xff]  ;;  %v401_v48 = vld [vmem:[#allocation3 + $0xe8] sm:$0xff] }
 0x202   :  { %3244 = vmatprep.subr.bf16.mxu1 %v3243_v23  ;;  %v3257_v49 = vpack.c.bf16 %v383_v44, %v382_v43  ;;  %v3259_v50 = vpack.c.bf16 %v401_v48, %v400_v45  ;;  %v384_v54 = vld [vmem:[#allocation3 + $0x60] sm:$0xff]  ;;  %v385_v56 = vld [vmem:[#allocation3 + $0x68] sm:$0xff]  ;;  %v402_v57 = vld [vmem:[#allocation3 + $0xf0] sm:$0xff] }
 0x203   :  { %v403_v58 = vld [vmem:[#allocation3 + $0xf8] sm:$0xff]  ;;  %v3261_v59 = vpack.c.bf16 %v385_v56, %v384_v54  ;;  %v386_v61 = vld [vmem:[#allocation3 + $0x70] sm:$0xff]  ;;  %v479_v24 = vld [vmem:[#allocation3 + $0x100] sm:$0x1] }
 0x204   :  { %v3263_v60 = vpack.c.bf16 %v403_v58, %v402_v57  ;;  %v387_v62 = vld [vmem:[#allocation3 + $0x78] sm:$0xff]  ;;  %v480_v27 = vld [vmem:[#allocation3 + $0x101] sm:$0x1] }
 0x205   :  { %3246 = vmatpush3.bf16.msra.mxu1 %v3245_v28  ;;  %v3265_v63 = vpack.c.bf16 %v387_v62, %v386_v61 }
 0x206   :  { %3248 = vmatprep.subr.bf16.mxu1 %v3247_v29 }
 0x209   :  { %3250 = vmatpush3.bf16.msra.mxu1 %v3249_v34 }
 0x20a   :  { %3252 = vmatprep.subr.bf16.mxu1 %v3251_v35 }
 0x20d   :  { %3254 = vmatpush3.bf16.msra.mxu1 %v3253_v41 }
 0x20e   :  { %3256 = vmatprep.subr.bf16.mxu1 %v3255_v42 }
 0x211   :  { %3258 = vmatpush3.bf16.msra.mxu1 %v3257_v49 }
 0x212   :  { %3260 = vmatprep.subr.bf16.mxu1 %v3259_v50 }
 0x215   :  { %3262 = vmatpush3.bf16.msra.mxu1 %v3261_v59 }
 0x216   :  { %3264 = vmatprep.subr.bf16.mxu1 %v3263_v60 }
 0x219   :  { %3266 = vmatpush3.bf16.msra.mxu1 %v3265_v63 }
 0x21c   :  { %469 = vmatmul.mubr.f32.vlgmr.msra.gmra.mrb[0].mxu1 %v365_v53 }
 0x21d   :  { %473 = vmatprep.mubr.f32.mxu1 %v368_v8 }
 0x220   :  { %474 = vmatmul.mubr.f32.gmra.mrb[2].mxu1 %v367_v7 }
 0x2ef   :  { %v2659_v0 = vpop.f32.mrb[0].mxu1 }
 0x2f0   :  { %v2660_v1 = vpop.f32.mrb[1].mxu1 }
 0x2f1   :  { %v2661_v3 = vadd.f32 %v2660_v1, %v2659_v0 }
 0x2f3   :  { %v2662_v4 = vpop.f32.mrb[2].mxu1 }
 0x2f4   :  { %v2663_v51 = vpop.f32.mrb[3].mxu1 }
 0x2f5   :  { %v2664_v55 = vadd.f32 %v2663_v51, %v2662_v4 }
 0x2f7   :  { %v481_v9 = vadd.f32 %v2664_v55, %v2661_v3 }
 0x2f9   :  { %v482_v10 = vrot.slane %v481_v9, 4 }
 0x2fb   :  { %v483_v11 = vadd.f32 %v482_v10, %v481_v9 }
 0x2fd   :  { %v484_v12 = vrot.slane %v483_v11, 2 }
 0x2ff   :  { %v485_v13 = vadd.f32 %v484_v12, %v483_v11 }
 0x301   :  { %v486_v14 = vrot.slane %v485_v13, 1 }
 0x303   :  { %v487_v5 = vadd.f32 %v486_v14, %v485_v13 }
 0x305   :  { %v488_v53 = vmul.f32 0.0625, %v487_v5 }
 0x307   :  { %v489_v15 = vsub.f32 %v2661_v3, %v488_v53  ;;  %v490_v52 = vsub.f32 %v2664_v55, %v488_v53 }
 0x309   :  { %v491_v8 = vmul.f32 %v489_v15, %v489_v15  ;;  %v492_v16 = vmul.f32 %v490_v52, %v490_v52 }
 0x30b   :  { %v493_v6 = vadd.f32 %v492_v16, %v491_v8 }
 0x30d   :  { %v494_v7 = vrot.slane %v493_v6, 4 }
 0x30f   :  { %v495_v17 = vadd.f32 %v494_v7, %v493_v6 }
 0x311   :  { %v496_v18 = vrot.slane %v495_v17, 2 }
 0x313   :  { %v497_v19 = vadd.f32 %v496_v18, %v495_v17 }
 0x315   :  { %v498_v20 = vrot.slane %v497_v19, 1 }
 0x317   :  { %v499_v21 = vadd.f32 %v498_v20, %v497_v19 }
 0x319   :  { %v500_v22 = vmul.f32 0.0625, %v499_v21 }
 0x31b   :  { %v501_v23 = vadd.f32 1e-05, %v500_v22 }
 0x31d   :  { %3732 = vrsqrt.f32 %v501_v23 }
 0x327   :  { %v3733_v25 = vpop.eup %3732 }
 0x328   :  { %v503_v26 = vmul.f32 %v3733_v25, %v479_v24 }
 0x32a   :  { %v504_v28 = vmul.f32 %v503_v26, %v488_v53  ;;  %v509_v29 = vrot.slane %v503_v26, %v4254_v46 }
 0x32c   :  { %v505_v30 = vsub.f32 %v480_v27, %v504_v28  ;;  %v510_v31 = vmul.f32 %v2661_v3, %v509_v29  ;;  %v511_v32 = vmul.f32 %v2664_v55, %v509_v29 }
 0x32e   :  { %v515_v33 = vrot.slane %v505_v30, %v4254_v46 }
 0x330   :  { %v516_v34 = vadd.f32 %v515_v33, %v510_v31  ;;  %v517_v35 = vadd.f32 %v515_v33, %v511_v32 }
 0x332   :  { %v518_v36 = vmax.f32 %v516_v34, 0.0  ;;  %v519_v37 = vmax.f32 %v517_v35, 0.0 }
 0x333   :  { %3983 = dma.done.wait [#allocation4 + $0x2], 2176 }
 0x334   :  { %3984 = vsyncadd [#allocation4 + $0x2], 4294965120  ;;  %2955 = vmatprep.mubr.f32.mxu0 %v518_v36  ;;  %v523_v38 = vld [vmem:[#allocation3 + $0x108] sm:$0xff]  ;;  %v524_v39 = vld [vmem:[#allocation3 + $0x110] sm:$0xff] }
 0x335   :  { %v525_v41 = vld [vmem:[#allocation3 + $0x118] sm:$0xff]  ;;  %v3267_v42 = vpack.c.bf16 %v524_v39, %v523_v38  ;;  %v526_v43 = vld [vmem:[#allocation3 + $0x120] sm:$0xff]  ;;  %v527_v45 = vld [vmem:[#allocation3 + $0x128] sm:$0xff] }
 0x336   :  { %v3271_v44 = vpack.c.bf16 %v526_v43, %v525_v41  ;;  %v528_v48 = vld [vmem:[#allocation3 + $0x130] sm:$0xff]  ;;  %v529_v50 = vld [vmem:[#allocation3 + $0x138] sm:$0xff]  ;;  %v530_v54 = vld [vmem:[#allocation3 + $0x140] sm:$0xff] }
 0x337   :  { %3268 = vmatprep.subr.bf16.mxu0 %v3267_v42  ;;  %v3275_v49 = vpack.c.bf16 %v528_v48, %v527_v45  ;;  %v3279_v56 = vpack.c.bf16 %v530_v54, %v529_v50  ;;  %v531_v57 = vld [vmem:[#allocation3 + $0x148] sm:$0xff]  ;;  %v532_v58 = vld [vmem:[#allocation3 + $0x150] sm:$0xff]  ;;  %v533_v60 = vld [vmem:[#allocation3 + $0x158] sm:$0xff] }
 0x338   :  { %3270 = vmatpush3.bf16.msra.mxu0 %v3267_v42  ;;  %v3283_v59 = vpack.c.bf16 %v532_v58, %v531_v57  ;;  %v534_v61 = vld [vmem:[#allocation3 + $0x160] sm:$0xff]  ;;  %v535_v63 = vld [vmem:[#allocation3 + $0x168] sm:$0xff]  ;;  %v536_v0 = vld [vmem:[#allocation3 + $0x170] sm:$0xff] }
 0x339   :  { %3272 = vmatprep.subr.bf16.mxu0 %v3271_v44  ;;  %v3287_v62 = vpack.c.bf16 %v534_v61, %v533_v60  ;;  %v3291_v1 = vpack.c.bf16 %v536_v0, %v535_v63  ;;  %v537_v3 = vld [vmem:[#allocation3 + $0x178] sm:$0xff]  ;;  %v538_v4 = vld [vmem:[#allocation3 + $0x180] sm:$0xff]  ;;  %v614_v25 = vld [vmem:[#allocation3 + $0x188] sm:$0x1] }
 0x33a   :  { %v3295_v51 = vpack.c.bf16 %v538_v4, %v537_v3  ;;  %v615_v28 = vld [vmem:[#allocation3 + $0x189] sm:$0x1] }
 0x33c   :  { %3274 = vmatpush3.bf16.msra.mxu0 %v3271_v44 }
 0x33d   :  { %3276 = vmatprep.subr.bf16.mxu0 %v3275_v49 }
 0x340   :  { %3278 = vmatpush3.bf16.msra.mxu0 %v3275_v49 }
 0x341   :  { %3280 = vmatprep.subr.bf16.mxu0 %v3279_v56 }
 0x344   :  { %3282 = vmatpush3.bf16.msra.mxu0 %v3279_v56 }
 0x345   :  { %3284 = vmatprep.subr.bf16.mxu0 %v3283_v59 }
 0x348   :  { %3286 = vmatpush3.bf16.msra.mxu0 %v3283_v59 }
 0x349   :  { %3288 = vmatprep.subr.bf16.mxu0 %v3287_v62 }
 0x34c   :  { %3290 = vmatpush3.bf16.msra.mxu0 %v3287_v62 }
 0x34d   :  { %3292 = vmatprep.subr.bf16.mxu0 %v3291_v1 }
 0x350   :  { %3294 = vmatpush3.bf16.msra.mxu0 %v3291_v1 }
 0x351   :  { %3296 = vmatprep.subr.bf16.mxu0 %v3295_v51 }
 0x354   :  { %3298 = vmatpush3.bf16.msra.mxu0 %v3295_v51 }
 0x357   :  { %2956 = vmatmul.mubr.f32.vlgmr.msra.gmra.mrb[4].mxu0 %v519_v37 }
 0x42a   :  { %v2957_v55 = vpop.f32.mrb[4].mxu0 }
 0x42b   :  { %v605_v9 = vpop.f32.mrb[5].mxu0 }
 0x42c   :  { %v616_v10 = vadd.f32 %v2957_v55, %v605_v9 }
 0x42e   :  { %v617_v11 = vrot.slane %v616_v10, 4 }
 0x430   :  { %v618_v12 = vadd.f32 %v617_v11, %v616_v10 }
 0x432   :  { %v619_v13 = vrot.slane %v618_v12, 2 }
 0x434   :  { %v620_v14 = vadd.f32 %v619_v13, %v618_v12 }
 0x436   :  { %v621_v5 = vrot.slane %v620_v14, 1 }
 0x438   :  { %v622_v53 = vadd.f32 %v621_v5, %v620_v14 }
 0x43a   :  { %v623_v15 = vmul.f32 0.0625, %v622_v53 }
 0x43c   :  { %v624_v52 = vsub.f32 %v605_v9, %v623_v15  ;;  %v625_v8 = vsub.f32 %v2957_v55, %v623_v15 }
 0x43e   :  { %v626_v16 = vmul.f32 %v624_v52, %v624_v52  ;;  %v627_v6 = vmul.f32 %v625_v8, %v625_v8 }
 0x440   :  { %v628_v7 = vadd.f32 %v627_v6, %v626_v16 }
 0x442   :  { %v629_v17 = vrot.slane %v628_v7, 4 }
 0x444   :  { %v630_v18 = vadd.f32 %v629_v17, %v628_v7 }
 0x446   :  { %v631_v19 = vrot.slane %v630_v18, 2 }
 0x448   :  { %v632_v20 = vadd.f32 %v631_v19, %v630_v18 }
 0x44a   :  { %v633_v21 = vrot.slane %v632_v20, 1 }
 0x44c   :  { %v634_v22 = vadd.f32 %v633_v21, %v632_v20 }
 0x44e   :  { %v635_v23 = vmul.f32 0.0625, %v634_v22 }
 0x450   :  { %v636_v24 = vadd.f32 1e-05, %v635_v23 }
 0x452   :  { %3734 = vrsqrt.f32 %v636_v24 }
 0x45c   :  { %v3735_v26 = vpop.eup %3734 }
 0x45d   :  { %v638_v27 = vmul.f32 %v3735_v26, %v614_v25 }
 0x45f   :  { %v639_v29 = vmul.f32 %v638_v27, %v623_v15  ;;  %v644_v30 = vrot.slane %v638_v27, %v4254_v46 }
 0x461   :  { %v640_v31 = vsub.f32 %v615_v28, %v639_v29  ;;  %v645_v32 = vmul.f32 %v644_v30, %v605_v9  ;;  %v646_v33 = vmul.f32 %v2957_v55, %v644_v30 }
 0x463   :  { %v650_v34 = vrot.slane %v640_v31, %v4254_v46 }
 0x465   :  { %v651_v35 = vadd.f32 %v650_v34, %v645_v32  ;;  %v652_v36 = vadd.f32 %v650_v34, %v646_v33 }
 0x467   :  { %v653_v37 = vmax.f32 %v651_v35, 0.0  ;;  %v654_v38 = vmax.f32 %v652_v36, 0.0 }
 0x468   :  { %3985 = dma.done.wait [#allocation4 + $0x3], 2176 }
 0x469   :  { %3986 = vsyncadd [#allocation4 + $0x3], 4294965120  ;;  %2990 = vmatprep.mubr.f32.mxu1 %v653_v37  ;;  %v657_v39 = vld [vmem:[#allocation3 + $0x190] sm:$0xff]  ;;  %v658_v41 = vld [vmem:[#allocation3 + $0x198] sm:$0xff] }
 0x46a   :  { %v659_v42 = vld [vmem:[#allocation3 + $0x1a0] sm:$0xff]  ;;  %v3299_v43 = vpack.c.bf16 %v658_v41, %v657_v39  ;;  %v660_v44 = vld [vmem:[#allocation3 + $0x1a8] sm:$0xff]  ;;  %v661_v48 = vld [vmem:[#allocation3 + $0x1b0] sm:$0xff] }
 0x46b   :  { %v3303_v45 = vpack.c.bf16 %v660_v44, %v659_v42  ;;  %v662_v49 = vld [vmem:[#allocation3 + $0x1b8] sm:$0xff]  ;;  %v663_v54 = vld [vmem:[#allocation3 + $0x1c0] sm:$0xff]  ;;  %v664_v56 = vld [vmem:[#allocation3 + $0x1c8] sm:$0xff] }
 0x46c   :  { %3300 = vmatprep.subr.bf16.mxu1 %v3299_v43  ;;  %v3307_v50 = vpack.c.bf16 %v662_v49, %v661_v48  ;;  %v3311_v57 = vpack.c.bf16 %v664_v56, %v663_v54  ;;  %v665_v58 = vld [vmem:[#allocation3 + $0x1d0] sm:$0xff]  ;;  %v666_v59 = vld [vmem:[#allocation3 + $0x1d8] sm:$0xff]  ;;  %v667_v61 = vld [vmem:[#allocation3 + $0x1e0] sm:$0xff] }
 0x46d   :  { %3302 = vmatpush3.bf16.msra.mxu1 %v3299_v43  ;;  %v3315_v60 = vpack.c.bf16 %v666_v59, %v665_v58  ;;  %v668_v62 = vld [vmem:[#allocation3 + $0x1e8] sm:$0xff]  ;;  %v669_v0 = vld [vmem:[#allocation3 + $0x1f0] sm:$0xff]  ;;  %v670_v1 = vld [vmem:[#allocation3 + $0x1f8] sm:$0xff] }
 0x46e   :  { %3304 = vmatprep.subr.bf16.mxu1 %v3303_v45  ;;  %v3319_v63 = vpack.c.bf16 %v668_v62, %v667_v61  ;;  %v3323_v3 = vpack.c.bf16 %v670_v1, %v669_v0  ;;  %v671_v4 = vld [vmem:[#allocation3 + $0x200] sm:$0xff]  ;;  %v672_v51 = vld [vmem:[#allocation3 + $0x208] sm:$0xff]  ;;  %v2614_v9 = vld [vmem:[#allocation3 + $0x210] ss:$0 sm:$0xff] }
 0x46f   :  { %v3327_v55 = vpack.c.bf16 %v672_v51, %v671_v4 }
 0x471   :  { %3306 = vmatpush3.bf16.msra.mxu1 %v3303_v45 }
 0x472   :  { %3308 = vmatprep.subr.bf16.mxu1 %v3307_v50 }
 0x475   :  { %3310 = vmatpush3.bf16.msra.mxu1 %v3307_v50 }
 0x476   :  { %3312 = vmatprep.subr.bf16.mxu1 %v3311_v57 }
 0x479   :  { %3314 = vmatpush3.bf16.msra.mxu1 %v3311_v57 }
 0x47a   :  { %3316 = vmatprep.subr.bf16.mxu1 %v3315_v60 }
 0x47d   :  { %3318 = vmatpush3.bf16.msra.mxu1 %v3315_v60 }
 0x47e   :  { %3320 = vmatprep.subr.bf16.mxu1 %v3319_v63 }
 0x481   :  { %3322 = vmatpush3.bf16.msra.mxu1 %v3319_v63 }
 0x482   :  { %3324 = vmatprep.subr.bf16.mxu1 %v3323_v3 }
 0x485   :  { %3326 = vmatpush3.bf16.msra.mxu1 %v3323_v3 }
 0x486   :  { %3328 = vmatprep.subr.bf16.mxu1 %v3327_v55 }
 0x489   :  { %3330 = vmatpush3.bf16.msra.mxu1 %v3327_v55 }
 0x48c   :  { %2991 = vmatmul.mubr.f32.vlgmr.msra.gmra.mrb[4].mxu1 %v654_v38 }
 0x55f   :  { %v2992_v10 = vpop.f32.mrb[4].mxu1 }
 0x560   :  { %v750_v11 = vadd.f32 %v2992_v10, %v2614_v9  ;;  %v744_v12 = vpop.f32.mrb[5].mxu1 }
 0x561   :  { %v745_v13 = vadd.f32 %v2614_v9, %v744_v12 }
 0x562   :  { %v754_v14 = vmax.f32 %v750_v11, 0.0 }
 0x563   :  { %v753_v5 = vmax.f32 %v745_v13, 0.0 }
 0x564   :  { %3987 = dma.done.wait [#allocation4 + $0x4], 2176 }
 0x565   :  { %3988 = vsyncadd [#allocation4 + $0x4], 4294965120  ;;  %3025 = vmatprep.mubr.f32.mxu0 %v753_v5  ;;  %v757_v53 = vld [vmem:[#allocation3 + $0x218] sm:$0xff]  ;;  %v758_v15 = vld [vmem:[#allocation3 + $0x220] sm:$0xff] }
 0x566   :  { %v759_v52 = vld [vmem:[#allocation3 + $0x228] sm:$0xff]  ;;  %v3331_v8 = vpack.c.bf16 %v758_v15, %v757_v53  ;;  %v760_v16 = vld [vmem:[#allocation3 + $0x230] sm:$0xff]  ;;  %v761_v7 = vld [vmem:[#allocation3 + $0x238] sm:$0xff] }
 0x567   :  { %v3335_v6 = vpack.c.bf16 %v760_v16, %v759_v52  ;;  %v762_v17 = vld [vmem:[#allocation3 + $0x240] sm:$0xff]  ;;  %v763_v19 = vld [vmem:[#allocation3 + $0x248] sm:$0xff]  ;;  %v764_v20 = vld [vmem:[#allocation3 + $0x250] sm:$0xff] }
 0x568   :  { %3332 = vmatprep.subr.bf16.mxu0 %v3331_v8  ;;  %v3339_v18 = vpack.c.bf16 %v762_v17, %v761_v7  ;;  %v3343_v21 = vpack.c.bf16 %v764_v20, %v763_v19  ;;  %v765_v22 = vld [vmem:[#allocation3 + $0x258] sm:$0xff]  ;;  %v766_v23 = vld [vmem:[#allocation3 + $0x260] sm:$0xff]  ;;  %v767_v25 = vld [vmem:[#allocation3 + $0x268] sm:$0xff] }
 0x569   :  { %3334 = vmatpush3.bf16.msra.mxu0 %v3331_v8  ;;  %v3347_v24 = vpack.c.bf16 %v766_v23, %v765_v22  ;;  %v768_v26 = vld [vmem:[#allocation3 + $0x270] sm:$0xff]  ;;  %v769_v28 = vld [vmem:[#allocation3 + $0x278] sm:$0xff]  ;;  %v770_v29 = vld [vmem:[#allocation3 + $0x280] sm:$0xff] }
 0x56a   :  { %3336 = vmatprep.subr.bf16.mxu0 %v3335_v6  ;;  %v3351_v27 = vpack.c.bf16 %v768_v26, %v767_v25  ;;  %v3355_v30 = vpack.c.bf16 %v770_v29, %v769_v28  ;;  %v771_v31 = vld [vmem:[#allocation3 + $0x288] sm:$0xff]  ;;  %v772_v32 = vld [vmem:[#allocation3 + $0x290] sm:$0xff]  ;;  %v848_v0 = vld [vmem:[#allocation3 + $0x298] sm:$0x1] }
 0x56b   :  { %v3359_v33 = vpack.c.bf16 %v772_v32, %v771_v31  ;;  %v849_v4 = vld [vmem:[#allocation3 + $0x299] sm:$0x1] }
 0x56d   :  { %3338 = vmatpush3.bf16.msra.mxu0 %v3335_v6 }
 0x56e   :  { %3340 = vmatprep.subr.bf16.mxu0 %v3339_v18 }
 0x571   :  { %3342 = vmatpush3.bf16.msra.mxu0 %v3339_v18 }
 0x572   :  { %3344 = vmatprep.subr.bf16.mxu0 %v3343_v21 }
 0x575   :  { %3346 = vmatpush3.bf16.msra.mxu0 %v3343_v21 }
 0x576   :  { %3348 = vmatprep.subr.bf16.mxu0 %v3347_v24 }
 0x579   :  { %3350 = vmatpush3.bf16.msra.mxu0 %v3347_v24 }
 0x57a   :  { %3352 = vmatprep.subr.bf16.mxu0 %v3351_v27 }
 0x57d   :  { %3354 = vmatpush3.bf16.msra.mxu0 %v3351_v27 }
 0x57e   :  { %3356 = vmatprep.subr.bf16.mxu0 %v3355_v30 }
 0x581   :  { %3358 = vmatpush3.bf16.msra.mxu0 %v3355_v30 }
 0x582   :  { %3360 = vmatprep.subr.bf16.mxu0 %v3359_v33 }
 0x585   :  { %3362 = vmatpush3.bf16.msra.mxu0 %v3359_v33 }
 0x588   :  { %3026 = vmatmul.mubr.f32.vlgmr.msra.gmra.mrb[6].mxu0 %v754_v14 }
 0x65b   :  { %v3027_v34 = vpop.f32.mrb[6].mxu0 }
 0x65c   :  { %v839_v35 = vpop.f32.mrb[7].mxu0 }
 0x65d   :  { %v850_v36 = vadd.f32 %v3027_v34, %v839_v35 }
 0x65f   :  { %v851_v37 = vrot.slane %v850_v36, 4 }
 0x661   :  { %v852_v38 = vadd.f32 %v851_v37, %v850_v36 }
 0x663   :  { %v853_v39 = vrot.slane %v852_v38, 2 }
 0x665   :  { %v854_v41 = vadd.f32 %v853_v39, %v852_v38 }
 0x667   :  { %v855_v42 = vrot.slane %v854_v41, 1 }
 0x669   :  { %v856_v43 = vadd.f32 %v855_v42, %v854_v41 }
 0x66b   :  { %v857_v44 = vmul.f32 0.0625, %v856_v43 }
 0x66d   :  { %v858_v45 = vsub.f32 %v839_v35, %v857_v44  ;;  %v859_v48 = vsub.f32 %v3027_v34, %v857_v44 }
 0x66f   :  { %v860_v49 = vmul.f32 %v858_v45, %v858_v45  ;;  %v861_v50 = vmul.f32 %v859_v48, %v859_v48 }
 0x671   :  { %v862_v54 = vadd.f32 %v861_v50, %v860_v49 }
 0x673   :  { %v863_v56 = vrot.slane %v862_v54, 4 }
 0x675   :  { %v864_v57 = vadd.f32 %v863_v56, %v862_v54 }
 0x677   :  { %v865_v58 = vrot.slane %v864_v57, 2 }
 0x679   :  { %v866_v59 = vadd.f32 %v865_v58, %v864_v57 }
 0x67b   :  { %v867_v60 = vrot.slane %v866_v59, 1 }
 0x67d   :  { %v868_v61 = vadd.f32 %v867_v60, %v866_v59 }
 0x67f   :  { %v869_v62 = vmul.f32 0.0625, %v868_v61 }
 0x681   :  { %v870_v63 = vadd.f32 1e-05, %v869_v62 }
 0x683   :  { %3736 = vrsqrt.f32 %v870_v63 }
 0x68d   :  { %v3737_v1 = vpop.eup %3736 }
 0x68e   :  { %v872_v3 = vmul.f32 %v3737_v1, %v848_v0 }
 0x690   :  { %v873_v51 = vmul.f32 %v872_v3, %v857_v44  ;;  %v878_v55 = vrot.slane %v872_v3, %v4254_v46 }
 0x692   :  { %v874_v9 = vsub.f32 %v849_v4, %v873_v51  ;;  %v879_v10 = vmul.f32 %v878_v55, %v839_v35  ;;  %v880_v11 = vmul.f32 %v3027_v34, %v878_v55 }
 0x694   :  { %v884_v12 = vrot.slane %v874_v9, %v4254_v46 }
 0x696   :  { %v885_v13 = vadd.f32 %v884_v12, %v879_v10  ;;  %v886_v14 = vadd.f32 %v884_v12, %v880_v11 }
 0x698   :  { %v887_v5 = vmax.f32 %v885_v13, 0.0  ;;  %v888_v53 = vmax.f32 %v886_v14, 0.0 }
 0x699   :  { %3989 = dma.done.wait [#allocation4 + $0x5], 2176 }
 0x69a   :  { %3990 = vsyncadd [#allocation4 + $0x5], 4294965120  ;;  %3060 = vmatprep.mubr.f32.mxu1 %v887_v5  ;;  %v891_v15 = vld [vmem:[#allocation3 + $0x2a0] sm:$0xff]  ;;  %v892_v52 = vld [vmem:[#allocation3 + $0x2a8] sm:$0xff] }
 0x69b   :  { %v893_v8 = vld [vmem:[#allocation3 + $0x2b0] sm:$0xff]  ;;  %v3363_v16 = vpack.c.bf16 %v892_v52, %v891_v15  ;;  %v894_v6 = vld [vmem:[#allocation3 + $0x2b8] sm:$0xff]  ;;  %v895_v17 = vld [vmem:[#allocation3 + $0x2c0] sm:$0xff] }
 0x69c   :  { %v3367_v7 = vpack.c.bf16 %v894_v6, %v893_v8  ;;  %v896_v18 = vld [vmem:[#allocation3 + $0x2c8] sm:$0xff]  ;;  %v897_v20 = vld [vmem:[#allocation3 + $0x2d0] sm:$0xff]  ;;  %v898_v21 = vld [vmem:[#allocation3 + $0x2d8] sm:$0xff] }
 0x69d   :  { %3364 = vmatprep.subr.bf16.mxu1 %v3363_v16  ;;  %v3371_v19 = vpack.c.bf16 %v896_v18, %v895_v17  ;;  %v3375_v22 = vpack.c.bf16 %v898_v21, %v897_v20  ;;  %v899_v23 = vld [vmem:[#allocation3 + $0x2e0] sm:$0xff]  ;;  %v900_v24 = vld [vmem:[#allocation3 + $0x2e8] sm:$0xff]  ;;  %v901_v26 = vld [vmem:[#allocation3 + $0x2f0] sm:$0xff] }
 0x69e   :  { %3366 = vmatpush3.bf16.msra.mxu1 %v3363_v16  ;;  %v3379_v25 = vpack.c.bf16 %v900_v24, %v899_v23  ;;  %v902_v27 = vld [vmem:[#allocation3 + $0x2f8] sm:$0xff]  ;;  %v903_v29 = vld [vmem:[#allocation3 + $0x300] sm:$0xff]  ;;  %v904_v30 = vld [vmem:[#allocation3 + $0x308] sm:$0xff] }
 0x69f   :  { %3368 = vmatprep.subr.bf16.mxu1 %v3367_v7  ;;  %v3383_v28 = vpack.c.bf16 %v902_v27, %v901_v26  ;;  %v3387_v31 = vpack.c.bf16 %v904_v30, %v903_v29  ;;  %v905_v32 = vld [vmem:[#allocation3 + $0x310] sm:$0xff]  ;;  %v906_v33 = vld [vmem:[#allocation3 + $0x318] sm:$0xff]  ;;  %v982_v1 = vld [vmem:[#allocation3 + $0x320] sm:$0x1] }
 0x6a0   :  { %v3391_v34 = vpack.c.bf16 %v906_v33, %v905_v32  ;;  %v983_v51 = vld [vmem:[#allocation3 + $0x321] sm:$0x1] }
 0x6a2   :  { %3370 = vmatpush3.bf16.msra.mxu1 %v3367_v7 }
 0x6a3   :  { %3372 = vmatprep.subr.bf16.mxu1 %v3371_v19 }
 0x6a6   :  { %3374 = vmatpush3.bf16.msra.mxu1 %v3371_v19 }
 0x6a7   :  { %3376 = vmatprep.subr.bf16.mxu1 %v3375_v22 }
 0x6aa   :  { %3378 = vmatpush3.bf16.msra.mxu1 %v3375_v22 }
 0x6ab   :  { %3380 = vmatprep.subr.bf16.mxu1 %v3379_v25 }
 0x6ae   :  { %3382 = vmatpush3.bf16.msra.mxu1 %v3379_v25 }
 0x6af   :  { %3384 = vmatprep.subr.bf16.mxu1 %v3383_v28 }
 0x6b2   :  { %3386 = vmatpush3.bf16.msra.mxu1 %v3383_v28 }
 0x6b3   :  { %3388 = vmatprep.subr.bf16.mxu1 %v3387_v31 }
 0x6b6   :  { %3390 = vmatpush3.bf16.msra.mxu1 %v3387_v31 }
 0x6b7   :  { %3392 = vmatprep.subr.bf16.mxu1 %v3391_v34 }
 0x6ba   :  { %3394 = vmatpush3.bf16.msra.mxu1 %v3391_v34 }
 0x6bd   :  { %3061 = vmatmul.mubr.f32.vlgmr.msra.gmra.mrb[6].mxu1 %v888_v53 }
 0x790   :  { %v3062_v35 = vpop.f32.mrb[6].mxu1 }
 0x791   :  { %v973_v36 = vpop.f32.mrb[7].mxu1 }
 0x792   :  { %v984_v37 = vadd.f32 %v3062_v35, %v973_v36 }
 0x794   :  { %v985_v38 = vrot.slane %v984_v37, 4 }
 0x796   :  { %v986_v39 = vadd.f32 %v985_v38, %v984_v37 }
 0x798   :  { %v987_v41 = vrot.slane %v986_v39, 2 }
 0x79a   :  { %v988_v42 = vadd.f32 %v987_v41, %v986_v39 }
 0x79c   :  { %v989_v43 = vrot.slane %v988_v42, 1 }
 0x79e   :  { %v990_v44 = vadd.f32 %v989_v43, %v988_v42 }
 0x7a0   :  { %v991_v45 = vmul.f32 0.0625, %v990_v44 }
 0x7a2   :  { %v992_v48 = vsub.f32 %v973_v36, %v991_v45  ;;  %v993_v49 = vsub.f32 %v3062_v35, %v991_v45 }
 0x7a4   :  { %v994_v50 = vmul.f32 %v992_v48, %v992_v48  ;;  %v995_v54 = vmul.f32 %v993_v49, %v993_v49 }
 0x7a6   :  { %v996_v56 = vadd.f32 %v995_v54, %v994_v50 }
 0x7a8   :  { %v997_v57 = vrot.slane %v996_v56, 4 }
 0x7aa   :  { %v998_v58 = vadd.f32 %v997_v57, %v996_v56 }
 0x7ac   :  { %v999_v59 = vrot.slane %v998_v58, 2 }
 0x7ae   :  { %v1000_v60 = vadd.f32 %v999_v59, %v998_v58 }
 0x7b0   :  { %v1001_v61 = vrot.slane %v1000_v60, 1 }
 0x7b2   :  { %v1002_v62 = vadd.f32 %v1001_v61, %v1000_v60 }
 0x7b4   :  { %v1003_v63 = vmul.f32 0.0625, %v1002_v62 }
 0x7b6   :  { %v1004_v0 = vadd.f32 1e-05, %v1003_v63 }
 0x7b8   :  { %3738 = vrsqrt.f32 %v1004_v0 }
 0x7c2   :  { %v3739_v3 = vpop.eup %3738 }
 0x7c3   :  { %v1006_v4 = vmul.f32 %v3739_v3, %v982_v1 }
 0x7c5   :  { %v1007_v55 = vmul.f32 %v1006_v4, %v991_v45  ;;  %v1012_v9 = vrot.slane %v1006_v4, %v4254_v46 }
 0x7c7   :  { %v1008_v10 = vsub.f32 %v983_v51, %v1007_v55  ;;  %v1013_v11 = vmul.f32 %v1012_v9, %v973_v36  ;;  %v1014_v12 = vmul.f32 %v3062_v35, %v1012_v9 }
 0x7c9   :  { %v1018_v13 = vrot.slane %v1008_v10, %v4254_v46 }
 0x7cb   :  { %v4291_v14 = vadd.f32 %v1018_v13, %v1013_v11  ;;  %v4293_v5 = vadd.f32 %v1018_v13, %v1014_v12 }
 0x7cd   :  { %v1021_v53 = vmax.f32 %v4291_v14, 0.0  ;;  %v1022_v15 = vmax.f32 %v4293_v5, 0.0 }
 0x7ce   :  { %3991 = dma.done.wait [#allocation4 + $0x6], 4352 }
 0x7cf   :  { %3992 = vsyncadd [#allocation4 + $0x6], 4294962944  ;;  %1121 = vmatprep.mubr.f32.mxu0 %v4006_v2  ;;  %v1026_v52 = vld [vmem:[#allocation2 + $0x118] sm:$0xff]  ;;  %v1028_v8 = vld [vmem:[#allocation2 + $0x128] sm:$0xff] }
 0x7d0   :  { %v1025_v16 = vld [vmem:[#allocation2 + $0x110] sm:$0xff]  ;;  %v3395_v6 = vpack.c.bf16 %v1028_v8, %v1026_v52  ;;  %v1027_v7 = vld [vmem:[#allocation2 + $0x120] sm:$0xff]  ;;  %v1030_v17 = vld [vmem:[#allocation2 + $0x138] sm:$0xff] }
 0x7d1   :  { %v1032_v18 = vld [vmem:[#allocation2 + $0x148] sm:$0xff]  ;;  %v3397_v19 = vpack.c.bf16 %v1027_v7, %v1025_v16  ;;  %v1029_v21 = vld [vmem:[#allocation2 + $0x130] sm:$0xff]  ;;  %v1031_v22 = vld [vmem:[#allocation2 + $0x140] sm:$0xff] }
 0x7d2   :  { %v3399_v20 = vpack.c.bf16 %v1032_v18, %v1030_v17  ;;  %v1034_v23 = vld [vmem:[#allocation2 + $0x158] sm:$0xff]  ;;  %3396 = vmatprep.subr.bf16.mxu0 %v3395_v6  ;;  %v1036_v24 = vld [vmem:[#allocation2 + $0x168] sm:$0xff]  ;;  %v3401_v25 = vpack.c.bf16 %v1031_v22, %v1029_v21  ;;  %v1033_v27 = vld [vmem:[#allocation2 + $0x150] sm:$0xff] }
 0x7d3   :  { %3398 = vmatpush1.bf16.msra.mxu0 %v3397_v19  ;;  %v3403_v26 = vpack.c.bf16 %v1036_v24, %v1034_v23  ;;  %v1035_v28 = vld [vmem:[#allocation2 + $0x160] sm:$0xff]  ;;  %v1038_v29 = vld [vmem:[#allocation2 + $0x178] sm:$0xff]  ;;  %v1040_v30 = vld [vmem:[#allocation2 + $0x188] sm:$0xff] }
 0x7d4   :  { %3400 = vmatprep.subr.bf16.mxu0 %v3399_v20  ;;  %v3405_v31 = vpack.c.bf16 %v1035_v28, %v1033_v27  ;;  %v3407_v32 = vpack.c.bf16 %v1040_v30, %v1038_v29  ;;  %v1037_v33 = vld [vmem:[#allocation2 + $0x170] sm:$0xff]  ;;  %v1039_v34 = vld [vmem:[#allocation2 + $0x180] sm:$0xff]  ;;  %v1042_v35 = vld [vmem:[#allocation2 + $0x198] sm:$0xff] }
 0x7d5   :  { %v1044_v36 = vld [vmem:[#allocation2 + $0x1a8] sm:$0xff]  ;;  %v3409_v37 = vpack.c.bf16 %v1039_v34, %v1037_v33  ;;  %v1041_v39 = vld [vmem:[#allocation2 + $0x190] sm:$0xff]  ;;  %v1043_v41 = vld [vmem:[#allocation2 + $0x1a0] sm:$0xff] }
 0x7d6   :  { %v3411_v38 = vpack.c.bf16 %v1044_v36, %v1042_v35  ;;  %v1046_v42 = vld [vmem:[#allocation2 + $0x1b8] sm:$0xff]  ;;  %v1048_v43 = vld [vmem:[#allocation2 + $0x1c8] sm:$0xff]  ;;  %v3413_v44 = vpack.c.bf16 %v1043_v41, %v1041_v39  ;;  %v1045_v48 = vld [vmem:[#allocation2 + $0x1b0] sm:$0xff] }
 0x7d7   :  { %3402 = vmatpush1.bf16.msra.mxu0 %v3401_v25  ;;  %v3415_v45 = vpack.c.bf16 %v1048_v43, %v1046_v42  ;;  %v1047_v49 = vld [vmem:[#allocation2 + $0x1c0] sm:$0xff]  ;;  %v1050_v50 = vld [vmem:[#allocation2 + $0x1d8] sm:$0xff]  ;;  %v1052_v54 = vld [vmem:[#allocation2 + $0x1e8] sm:$0xff] }
 0x7d8   :  { %3404 = vmatprep.subr.bf16.mxu0 %v3403_v26  ;;  %v3417_v56 = vpack.c.bf16 %v1047_v49, %v1045_v48  ;;  %v3419_v57 = vpack.c.bf16 %v1052_v54, %v1050_v50  ;;  %v1049_v58 = vld [vmem:[#allocation2 + $0x1d0] sm:$0xff]  ;;  %v1051_v59 = vld [vmem:[#allocation2 + $0x1e0] sm:$0xff]  ;;  %v1054_v60 = vld [vmem:[#allocation2 + $0x1f8] sm:$0xff] }
 0x7d9   :  { %v1056_v61 = vld [vmem:[#allocation2 + $0x208] sm:$0xff]  ;;  %v3421_v62 = vpack.c.bf16 %v1051_v59, %v1049_v58  ;;  %v1053_v0 = vld [vmem:[#allocation2 + $0x1f0] sm:$0xff]  ;;  %v1055_v1 = vld [vmem:[#allocation2 + $0x200] sm:$0xff] }
 0x7da   :  { %v3423_v63 = vpack.c.bf16 %v1056_v61, %v1054_v60  ;;  %v3425_v3 = vpack.c.bf16 %v1055_v1, %v1053_v0 }
 0x7db   :  { %3406 = vmatpush1.bf16.msra.mxu0 %v3405_v31 }
 0x7dc   :  { %3408 = vmatprep.subr.bf16.mxu0 %v3407_v32 }
 0x7df   :  { %3410 = vmatpush1.bf16.msra.mxu0 %v3409_v37 }
 0x7e0   :  { %3412 = vmatprep.subr.bf16.mxu0 %v3411_v38 }
 0x7e3   :  { %3414 = vmatpush1.bf16.msra.mxu0 %v3413_v44 }
 0x7e4   :  { %3416 = vmatprep.subr.bf16.mxu0 %v3415_v45 }
 0x7e7   :  { %3418 = vmatpush1.bf16.msra.mxu0 %v3417_v56 }
 0x7e8   :  { %3420 = vmatprep.subr.bf16.mxu0 %v3419_v57  ;;  %v1135_v57 = vld [vmem:[#allocation2 + $0x210] ss:$8 sm:$0x3] }
 0x7eb   :  { %3422 = vmatpush1.bf16.msra.mxu0 %v3421_v62 }
 0x7ec   :  { %3424 = vmatprep.subr.bf16.mxu0 %v3423_v63 }
 0x7ef   :  { %3426 = vmatpush1.bf16.msra.mxu0 %v3425_v3 }
 0x7f2   :  { %1122 = vmatmul.mubr.f32.vlgmr.msra.gmra.mrb[8].mxu0 %v1021_v53 }
 0x7f3   :  { %1127 = vmatprep.mubr.f32.mxu0 %v4006_v2 }
 0x7f6   :  { %1128 = vmatmul.mubr.f32.gmra.mrb[10].mxu0 %v1022_v15 }
 0x8c5   :  { %v1123_v4 = vpop.f32.mrb[8].mxu0 }
 0x8c6   :  { %v1125_v51 = vpop.f32.mrb[9].mxu0 }
 0x8c9   :  { %v1129_v55 = vpop.f32.mrb[10].mxu0 }
 0x8ca   :  { %v1138_v9 = vadd.f32 %v1129_v55, %v1123_v4  ;;  %v1131_v10 = vpop.f32.mrb[11].mxu0 }
 0x8cb   :  { %v1145_v11 = vadd.f32 %v1131_v10, %v1125_v51 }
 0x8cc   :  { %v1139_v12 = vrot.slane %v1138_v9, 4 }
 0x8cd   :  { %v1146_v13 = vrot.slane %v1145_v11, 4 }
 0x8ce   :  { %v1140_v52 = vadd.f32 %v1139_v12, %v1138_v9 }
 0x8cf   :  { %v1147_v8 = vadd.f32 %v1146_v13, %v1145_v11  ;;  %v1137_v13 = vld [vmem:[#allocation2 + $0x211] ss:$8 sm:$0x3] }
 0x8d0   :  { %v1141_v16 = vrot.slane %v1140_v52, 2 }
 0x8d1   :  { %v1148_v6 = vrot.slane %v1147_v8, 2 }
 0x8d2   :  { %v1142_v7 = vadd.f32 %v1141_v16, %v1140_v52 }
 0x8d3   :  { %v1149_v14 = vadd.f32 %v1148_v6, %v1147_v8 }
 0x8d4   :  { %v1143_v53 = vrot.slane %v1142_v7, 1 }
 0x8d5   :  { %v1150_v17 = vrot.slane %v1149_v14, 1 }
 0x8d6   :  { %v1144_v18 = vadd.f32 %v1143_v53, %v1142_v7 }
 0x8d7   :  { %v1151_v19 = vadd.f32 %v1150_v17, %v1149_v14 }
 0x8d8   :  { %v1152_v5 = vmul.f32 0.0625, %v1144_v18 }
 0x8d9   :  { %v1153_v15 = vmul.f32 0.0625, %v1151_v19 }
 0x8da   :  { %v1154_v20 = vsub.f32 %v1123_v4, %v1152_v5  ;;  %v1156_v21 = vsub.f32 %v1129_v55, %v1152_v5 }
 0x8db   :  { %v1155_v22 = vsub.f32 %v1125_v51, %v1153_v15  ;;  %v1157_v23 = vsub.f32 %v1131_v10, %v1153_v15 }
 0x8dc   :  { %v1158_v24 = vmul.f32 %v1154_v20, %v1154_v20  ;;  %v1160_v25 = vmul.f32 %v1156_v21, %v1156_v21 }
 0x8dd   :  { %v1159_v26 = vmul.f32 %v1155_v22, %v1155_v22  ;;  %v1161_v27 = vmul.f32 %v1157_v23, %v1157_v23 }
 0x8de   :  { %v1162_v28 = vadd.f32 %v1160_v25, %v1158_v24 }
 0x8df   :  { %v1169_v29 = vadd.f32 %v1161_v27, %v1159_v26 }
 0x8e0   :  { %v1163_v30 = vrot.slane %v1162_v28, 4 }
 0x8e1   :  { %v1170_v31 = vrot.slane %v1169_v29, 4 }
 0x8e2   :  { %v1164_v32 = vadd.f32 %v1163_v30, %v1162_v28 }
 0x8e3   :  { %v1171_v33 = vadd.f32 %v1170_v31, %v1169_v29 }
 0x8e4   :  { %v1165_v34 = vrot.slane %v1164_v32, 2 }
 0x8e5   :  { %v1172_v35 = vrot.slane %v1171_v33, 2 }
 0x8e6   :  { %v1166_v36 = vadd.f32 %v1165_v34, %v1164_v32 }
 0x8e7   :  { %v1173_v37 = vadd.f32 %v1172_v35, %v1171_v33 }
 0x8e8   :  { %v1167_v38 = vrot.slane %v1166_v36, 1 }
 0x8e9   :  { %v1174_v39 = vrot.slane %v1173_v37, 1 }
 0x8ea   :  { %v1168_v41 = vadd.f32 %v1167_v38, %v1166_v36 }
 0x8eb   :  { %v1175_v42 = vadd.f32 %v1174_v39, %v1173_v37 }
 0x8ec   :  { %v1176_v43 = vmul.f32 0.0625, %v1168_v41 }
 0x8ed   :  { %v1177_v44 = vmul.f32 0.0625, %v1175_v42 }
 0x8ee   :  { %v1178_v45 = vadd.f32 1e-05, %v1176_v43 }
 0x8ef   :  { %v1179_v48 = vadd.f32 1e-05, %v1177_v44 }
 0x8f0   :  { %3740 = vrsqrt.f32 %v1178_v45 }
 0x8f1   :  { %3742 = vrsqrt.f32 %v1179_v48 }
 0x8fa   :  { %v3741_v49 = vpop.eup %3740 }
 0x8fb   :  { %v3743_v50 = vpop.eup %3742 }
 0x8fc   :  { %v1184_v54 = vcombine.low %v3741_v49, %v3743_v50 }
 0x8fe   :  { %v1191_v56 = vrot.slane %v1184_v54, %v4250_v40 }
 0x900   :  { %v1198_v58 = vrot.slane %v1191_v56, %v4250_v40 }
 0x902   :  { %v1200_v59 = vmul.f32 %v1198_v58, %v1135_v57 }
 0x904   :  { %v1205_v60 = vrot.slane %v1200_v59, %v4254_v46  ;;  %v1209_v61 = vrot.slane %v1200_v59, %v4256_v47 }
 0x906   :  { %v1212_v62 = vmul.f32 %v1205_v60, %v1152_v5  ;;  %v1213_v63 = vmul.f32 %v1209_v61, %v1153_v15  ;;  %v1233_v0 = vmul.f32 %v1205_v60, %v1123_v4  ;;  %v1234_v1 = vmul.f32 %v1209_v61, %v1125_v51 }
 0x907   :  { %v1235_v3 = vmul.f32 %v1205_v60, %v1129_v55  ;;  %v1236_v9 = vmul.f32 %v1209_v61, %v1131_v10 }
 0x908   :  { %v1216_v11 = vcombine.low %v1212_v62, %v1213_v63 }
 0x90a   :  { %v1223_v12 = vrot.slane %v1216_v11, %v4250_v40 }
 0x90c   :  { %v1230_v52 = vrot.slane %v1223_v12, %v4250_v40 }
 0x90e   :  { %v1232_v8 = vsub.f32 %v1137_v13, %v1230_v52 }
 0x910   :  { %v1241_v16 = vrot.slane %v1232_v8, %v4254_v46  ;;  %v1245_v6 = vrot.slane %v1232_v8, %v4256_v47 }
 0x912   :  { %v4311_v7 = vadd.f32 %v1241_v16, %v1233_v0  ;;  %v1249_v14 = vadd.f32 %v1245_v6, %v1234_v1  ;;  %v4313_v53 = vadd.f32 %v1241_v16, %v1235_v3  ;;  %v4315_v4 = vadd.f32 %v1245_v6, %v1236_v9 }
 0x914   :  { %v1252_v51 = vmax.f32 %v4311_v7, 0.0  ;;  %v1253_v55 = vmax.f32 %v1249_v14, 0.0  ;;  %v1254_v10 = vmax.f32 %v4313_v53, 0.0  ;;  %v1255_v17 = vmax.f32 %v4315_v4, 0.0 }
 0x915   :  { %3993 = dma.done.wait [#allocation4 + $0x7], 4224 }
 0x916   :  { %3994 = vsyncadd [#allocation4 + $0x7], 4294963072  ;;  %1359 = vmatprep.mubr.f32.mxu1 %v1253_v55  ;;  %1468 = vmatprep.mubr.f32.mxu0 %v4006_v2  ;;  %v1274_v18 = vld [vmem:[#allocation3 + $0x3a8] sm:$0xff]  ;;  %v1275_v19 = vld [vmem:[#allocation3 + $0x3b0] sm:$0xff] }
 0x917   :  { %v1258_v5 = vld [vmem:[#allocation3 + $0x328] sm:$0xff]  ;;  %v4321_v15 = vpack.c.bf16 %v1275_v19, %v1274_v18  ;;  %v1259_v20 = vld [vmem:[#allocation3 + $0x330] sm:$0xff]  ;;  %v1276_v21 = vld [vmem:[#allocation3 + $0x3b8] sm:$0xff] }
 0x918   :  { %v1277_v22 = vld [vmem:[#allocation3 + $0x3c0] sm:$0xff]  ;;  %v4323_v23 = vpack.c.bf16 %v1259_v20, %v1258_v5  ;;  %v1260_v25 = vld [vmem:[#allocation3 + $0x338] sm:$0xff]  ;;  %v1278_v27 = vld [vmem:[#allocation3 + $0x3c8] sm:$0xff] }
 0x919   :  { %v4325_v24 = vpack.c.bf16 %v1277_v22, %v1276_v21  ;;  %v1261_v26 = vld [vmem:[#allocation3 + $0x340] sm:$0xff]  ;;  %3428 = vmatprep.subr.bf16.mxu1 %v4321_v15  ;;  %v1279_v28 = vld [vmem:[#allocation3 + $0x3d0] sm:$0xff]  ;;  %v1262_v31 = vld [vmem:[#allocation3 + $0x348] sm:$0xff] }
 0x91a   :  { %3430 = vmatpush3.bf16.msra.mxu1 %v4323_v23  ;;  %v4329_v29 = vpack.c.bf16 %v1261_v26, %v1260_v25  ;;  %v4332_v30 = vpack.c.bf16 %v1279_v28, %v1278_v27  ;;  %v1263_v32 = vld [vmem:[#allocation3 + $0x350] sm:$0xff]  ;;  %v1280_v33 = vld [vmem:[#allocation3 + $0x3d8] sm:$0xff]  ;;  %v1281_v34 = vld [vmem:[#allocation3 + $0x3e0] sm:$0xff] }
 0x91b   :  { %3432 = vmatprep.subr.bf16.mxu1 %v4325_v24  ;;  %v4335_v35 = vpack.c.bf16 %v1263_v32, %v1262_v31  ;;  %v4338_v36 = vpack.c.bf16 %v1281_v34, %v1280_v33  ;;  %v1264_v37 = vld [vmem:[#allocation3 + $0x358] sm:$0xff]  ;;  %v1265_v38 = vld [vmem:[#allocation3 + $0x360] sm:$0xff]  ;;  %v1282_v39 = vld [vmem:[#allocation3 + $0x3e8] sm:$0xff] }
 0x91c   :  { %v1283_v41 = vld [vmem:[#allocation3 + $0x3f0] sm:$0xff]  ;;  %v1373_v42 = vld [vmem:[#allocation2 + $0x8] sm:$0xff]  ;;  %v1375_v45 = vld [vmem:[#allocation2 + $0x18] sm:$0xff]  ;;  %v4341_v50 = vpack.c.bf16 %v1265_v38, %v1264_v37 }
 0x91d   :  { %v1266_v43 = vld [vmem:[#allocation3 + $0x368] sm:$0xff]  ;;  %v1267_v44 = vld [vmem:[#allocation3 + $0x370] sm:$0xff]  ;;  %v1372_v48 = vld [vmem:[#allocation2] sm:$0xff]  ;;  %v3459_v54 = vpack.c.bf16 %v1375_v45, %v1373_v42  ;;  %v4344_v60 = vpack.c.bf16 %v1283_v41, %v1282_v39 }
 0x91e   :  { %3434 = vmatpush3.bf16.msra.mxu1 %v4329_v29  ;;  %v1374_v49 = vld [vmem:[#allocation2 + $0x10] sm:$0xff]  ;;  %v1377_v57 = vld [vmem:[#allocation2 + $0x28] sm:$0xff]  ;;  %v1379_v58 = vld [vmem:[#allocation2 + $0x38] sm:$0xff]  ;;  %v4347_v11 = vpack.c.bf16 %v1267_v44, %v1266_v43 }
 0x91f   :  { %3436 = vmatprep.subr.bf16.mxu1 %v4332_v30  ;;  %v3461_v56 = vpack.c.bf16 %v1374_v49, %v1372_v48  ;;  %v1376_v59 = vld [vmem:[#allocation2 + $0x20] sm:$0xff]  ;;  %v3463_v61 = vpack.c.bf16 %v1379_v58, %v1377_v57  ;;  %v1378_v62 = vld [vmem:[#allocation2 + $0x30] sm:$0xff]  ;;  %v1381_v63 = vld [vmem:[#allocation2 + $0x48] sm:$0xff]  ;;  %3460 = vmatprep.subr.bf16.mxu0 %v3459_v54 }
 0x920   :  { %v1383_v0 = vld [vmem:[#allocation2 + $0x58] sm:$0xff]  ;;  %v1285_v3 = vld [vmem:[#allocation3 + $0x400] sm:$0xff]  ;;  %v3465_v9 = vpack.c.bf16 %v1378_v62, %v1376_v59  ;;  %v1382_v8 = vld [vmem:[#allocation2 + $0x50] sm:$0xff] }
 0x921   :  { %v1284_v1 = vld [vmem:[#allocation3 + $0x3f8] sm:$0xff]  ;;  %3462 = vmatpush1.bf16.msra.mxu0 %v3461_v56  ;;  %v3467_v13 = vpack.c.bf16 %v1383_v0, %v1381_v63  ;;  %v1380_v52 = vld [vmem:[#allocation2 + $0x40] sm:$0xff]  ;;  %v1385_v14 = vld [vmem:[#allocation2 + $0x68] sm:$0xff] }
 0x922   :  { %3438 = vmatpush3.bf16.msra.mxu1 %v4335_v35  ;;  %v1268_v12 = vld [vmem:[#allocation3 + $0x378] sm:$0xff]  ;;  %3464 = vmatprep.subr.bf16.mxu0 %v3463_v61  ;;  %v4350_v16 = vpack.c.bf16 %v1285_v3, %v1284_v1  ;;  %v1269_v6 = vld [vmem:[#allocation3 + $0x380] sm:$0xff]  ;;  %v1286_v18 = vld [vmem:[#allocation3 + $0x408] sm:$0xff]  ;;  %v3469_v5 = vpack.c.bf16 %v1382_v8, %v1380_v52 }
 0x923   :  { %3440 = vmatprep.subr.bf16.mxu1 %v4338_v36  ;;  %v1387_v55 = vld [vmem:[#allocation2 + $0x78] sm:$0xff]  ;;  %v1287_v19 = vld [vmem:[#allocation3 + $0x410] sm:$0xff]  ;;  %v4353_v20 = vpack.c.bf16 %v1269_v6, %v1268_v12  ;;  %v1270_v21 = vld [vmem:[#allocation3 + $0x388] sm:$0xff] }
 0x924   :  { %v3471_v22 = vpack.c.bf16 %v1387_v55, %v1385_v14  ;;  %v1384_v25 = vld [vmem:[#allocation2 + $0x60] sm:$0xff]  ;;  %v1386_v26 = vld [vmem:[#allocation2 + $0x70] sm:$0xff]  ;;  %v4356_v27 = vpack.c.bf16 %v1287_v19, %v1286_v18  ;;  %v1389_v31 = vld [vmem:[#allocation2 + $0x88] sm:$0xff] }
 0x925   :  { %3466 = vmatpush1.bf16.msra.mxu0 %v3465_v9  ;;  %v1271_v28 = vld [vmem:[#allocation3 + $0x390] sm:$0xff]  ;;  %v1391_v32 = vld [vmem:[#allocation2 + $0x98] sm:$0xff]  ;;  %v1289_v34 = vld [vmem:[#allocation3 + $0x420] sm:$0xff]  ;;  %v3473_v37 = vpack.c.bf16 %v1386_v26, %v1384_v25 }
 0x926   :  { %3442 = vmatpush3.bf16.msra.mxu1 %v4341_v50  ;;  %3468 = vmatprep.subr.bf16.mxu0 %v3467_v13  ;;  %v1288_v33 = vld [vmem:[#allocation3 + $0x418] sm:$0xff]  ;;  %v4359_v38 = vpack.c.bf16 %v1271_v28, %v1270_v21  ;;  %v3475_v41 = vpack.c.bf16 %v1391_v32, %v1389_v31  ;;  %v1388_v42 = vld [vmem:[#allocation2 + $0x80] sm:$0xff]  ;;  %v1390_v43 = vld [vmem:[#allocation2 + $0x90] sm:$0xff] }
 0x927   :  { %3444 = vmatprep.subr.bf16.mxu1 %v4344_v60  ;;  %v1272_v39 = vld [vmem:[#allocation3 + $0x398] sm:$0xff]  ;;  %v4362_v44 = vpack.c.bf16 %v1289_v34, %v1288_v33  ;;  %v1273_v45 = vld [vmem:[#allocation3 + $0x3a0] sm:$0xff]  ;;  %v1393_v48 = vld [vmem:[#allocation2 + $0xa8] sm:$0xff]  ;;  %v3477_v54 = vpack.c.bf16 %v1390_v43, %v1388_v42 }
 0x928   :  { %v1395_v49 = vld [vmem:[#allocation2 + $0xb8] sm:$0xff]  ;;  %v4365_v56 = vpack.c.bf16 %v1273_v45, %v1272_v39  ;;  %v1392_v58 = vld [vmem:[#allocation2 + $0xa0] sm:$0xff]  ;;  %v1394_v59 = vld [vmem:[#allocation2 + $0xb0] sm:$0xff] }
 0x929   :  { %3470 = vmatpush1.bf16.msra.mxu0 %v3469_v5  ;;  %v3479_v57 = vpack.c.bf16 %v1395_v49, %v1393_v48  ;;  %v3481_v61 = vpack.c.bf16 %v1394_v59, %v1392_v58  ;;  %v1397_v62 = vld [vmem:[#allocation2 + $0xc8] sm:$0xff]  ;;  %v1399_v63 = vld [vmem:[#allocation2 + $0xd8] sm:$0xff]  ;;  %v1396_v1 = vld [vmem:[#allocation2 + $0xc0] sm:$0xff] }
 0x92a   :  { %3446 = vmatpush3.bf16.msra.mxu1 %v4347_v11  ;;  %3472 = vmatprep.subr.bf16.mxu0 %v3471_v22  ;;  %v3483_v0 = vpack.c.bf16 %v1399_v63, %v1397_v62  ;;  %v1398_v3 = vld [vmem:[#allocation2 + $0xd0] sm:$0xff]  ;;  %v1401_v12 = vld [vmem:[#allocation2 + $0xe8] sm:$0xff]  ;;  %v1403_v13 = vld [vmem:[#allocation2 + $0xf8] sm:$0xff] }
 0x92b   :  { %3448 = vmatprep.subr.bf16.mxu1 %v4350_v16  ;;  %v3485_v9 = vpack.c.bf16 %v1398_v3, %v1396_v1  ;;  %v3487_v52 = vpack.c.bf16 %v1403_v13, %v1401_v12  ;;  %v1400_v7 = vld [vmem:[#allocation2 + $0xe0] sm:$0xff]  ;;  %v1618_v25 = vld [vmem:[#allocation3 + $0x88] sm:$0xff]  ;;  %v1619_v33 = vld [vmem:[#allocation3 + $0x90] sm:$0xff] }
 0x92c   :  { %v1617_v22 = vld [vmem:[#allocation3 + $0x80] sm:$0xff]  ;;  %v1602_v31 = vld [vmem:[#allocation3 + $0x8] sm:$0xff]  ;;  %v1620_v34 = vld [vmem:[#allocation3 + $0x98] sm:$0xff] }
 0x92d   :  { %3474 = vmatpush1.bf16.msra.mxu0 %v3473_v37  ;;  %v3491_v26 = vpack.c.bf16 %v1618_v25, %v1617_v22  ;;  %v1601_v28 = vld [vmem:[#allocation3] sm:$0xff]  ;;  %v3495_v37 = vpack.c.bf16 %v1620_v34, %v1619_v33  ;;  %v1603_v39 = vld [vmem:[#allocation3 + $0x10] sm:$0xff]  ;;  %v1622_v45 = vld [vmem:[#allocation3 + $0xa8] sm:$0xff] }
 0x92e   :  { %3450 = vmatpush3.bf16.msra.mxu1 %v4353_v20  ;;  %3476 = vmatprep.subr.bf16.mxu0 %v3475_v41  ;;  %v3493_v32 = vpack.c.bf16 %v1602_v31, %v1601_v28  ;;  %v1604_v41 = vld [vmem:[#allocation3 + $0x18] sm:$0xff]  ;;  %v1621_v43 = vld [vmem:[#allocation3 + $0xa0] sm:$0xff]  ;;  %v1623_v58 = vld [vmem:[#allocation3 + $0xb0] sm:$0xff] }
 0x92f   :  { %3452 = vmatprep.subr.bf16.mxu1 %v4356_v27  ;;  %v3497_v42 = vpack.c.bf16 %v1604_v41, %v1603_v39  ;;  %v3499_v48 = vpack.c.bf16 %v1622_v45, %v1621_v43  ;;  %v1605_v49 = vld [vmem:[#allocation3 + $0x20] sm:$0xff]  ;;  %v1624_v59 = vld [vmem:[#allocation3 + $0xb8] sm:$0xff]  ;;  %v1607_v62 = vld [vmem:[#allocation3 + $0x30] sm:$0xff] }
 0x930   :  { %v1608_v63 = vld [vmem:[#allocation3 + $0x38] sm:$0xff]  ;;  %v1625_v1 = vld [vmem:[#allocation3 + $0xc0] sm:$0xff]  ;;  %v1626_v3 = vld [vmem:[#allocation3 + $0xc8] sm:$0xff] }
 0x931   :  { %3478 = vmatpush1.bf16.msra.mxu0 %v3477_v54  ;;  %v1606_v54 = vld [vmem:[#allocation3 + $0x28] sm:$0xff]  ;;  %v1609_v12 = vld [vmem:[#allocation3 + $0x40] sm:$0xff]  ;;  %v1615_v25 = vld [vmem:[#allocation3 + $0x70] sm:$0xff] }
 0x932   :  { %3454 = vmatpush3.bf16.msra.mxu1 %v4359_v38  ;;  %3480 = vmatprep.subr.bf16.mxu0 %v3479_v57  ;;  %v3501_v57 = vpack.c.bf16 %v1606_v54, %v1605_v49  ;;  %v1610_v13 = vld [vmem:[#allocation3 + $0x48] sm:$0xff] }
 0x933   :  { %3456 = vmatprep.subr.bf16.mxu1 %v4362_v44 }
 0x935   :  { %3482 = vmatpush1.bf16.msra.mxu0 %v3481_v61  ;;  %v3503_v61 = vpack.c.bf16 %v1624_v59, %v1623_v58 }
 0x936   :  { %3458 = vmatpush3.bf16.msra.mxu1 %v4365_v56  ;;  %3484 = vmatprep.subr.bf16.mxu0 %v3483_v0  ;;  %v3505_v0 = vpack.c.bf16 %v1608_v63, %v1607_v62 }
 0x937   :  { %3492 = vmatprep.subr.bf16.mxu1 %v3491_v26  ;;  %v1616_v26 = vld [vmem:[#allocation3 + $0x78] sm:$0xff] }
 0x938   :  { %v3521_v28 = vpack.c.bf16 %v1616_v26, %v1615_v25 }
 0x939   :  { %1360 = vmatmul.mubr.f32.vlgmr.msra.gmra.mrb[8].mxu1 %v1252_v51  ;;  %3486 = vmatpush1.bf16.msra.mxu0 %v3485_v9  ;;  %v1402_v51 = vld [vmem:[#allocation2 + $0xf0] sm:$0xff]  ;;  %v3507_v9 = vpack.c.bf16 %v1626_v3, %v1625_v1 }
 0x93a   :  { %1364 = vmatprep.mubr.f32.mxu1 %v1255_v17  ;;  %v3489_v8 = vpack.c.bf16 %v1402_v51, %v1400_v7  ;;  %3488 = vmatprep.subr.bf16.mxu0 %v3487_v52  ;;  %v2615_v17 = vld [vmem:[#allocation3 + $0x428] ss:$0 sm:$0xff]  ;;  %v3509_v52 = vpack.c.bf16 %v1610_v13, %v1609_v12  ;;  %v1627_v7 = vld [vmem:[#allocation3 + $0xd0] sm:$0xff]  ;;  %v1628_v51 = vld [vmem:[#allocation3 + $0xd8] sm:$0xff] }
 0x93b   :  { %3494 = vmatpush3.bf16.msra.mxu1 %v3493_v32 }
 0x93c   :  { %3496 = vmatprep.subr.bf16.mxu1 %v3495_v37 }
 0x93d   :  { %1365 = vmatmul.mubr.f32.gmra.mrb[10].mxu1 %v1254_v10  ;;  %3490 = vmatpush1.bf16.msra.mxu0 %v3489_v8  ;;  %v1611_v8 = vld [vmem:[#allocation3 + $0x50] sm:$0xff] }
 0x93f   :  { %3498 = vmatpush3.bf16.msra.mxu1 %v3497_v42 }
 0x940   :  { %3500 = vmatprep.subr.bf16.mxu1 %v3499_v48 }
 0x943   :  { %3502 = vmatpush3.bf16.msra.mxu1 %v3501_v57 }
 0x944   :  { %3504 = vmatprep.subr.bf16.mxu1 %v3503_v61 }
 0x947   :  { %3506 = vmatpush3.bf16.msra.mxu1 %v3505_v0 }
 0x948   :  { %3508 = vmatprep.subr.bf16.mxu1 %v3507_v9 }
 0x94b   :  { %3510 = vmatpush3.bf16.msra.mxu1 %v3509_v52 }
 0xa0c   :  { %v2769_v4 = vpop.f32.mrb[8].mxu1 }
 0xa0d   :  { %v2770_v53 = vpop.f32.mrb[9].mxu1 }
 0xa0e   :  { %v2771_v10 = vadd.f32 %v2770_v53, %v2769_v4  ;;  %v3511_v4 = vpack.c.bf16 %v1628_v51, %v1627_v7  ;;  %v1629_v53 = vld [vmem:[#allocation3 + $0xe0] sm:$0xff] }
 0xa10   :  { %v1362_v6 = vadd.f32 %v2771_v10, %v2615_v17  ;;  %v2772_v14 = vpop.f32.mrb[10].mxu1  ;;  %v1630_v10 = vld [vmem:[#allocation3 + $0xe8] sm:$0xff]  ;;  %3512 = vmatprep.subr.bf16.mxu1 %v3511_v4 }
 0xa11   :  { %v2773_v55 = vpop.f32.mrb[11].mxu1 }
 0xa12   :  { %v1370_v18 = vmax.f32 %v1362_v6, 0.0  ;;  %v2774_v19 = vadd.f32 %v2773_v55, %v2772_v14  ;;  %v3515_v14 = vpack.c.bf16 %v1630_v10, %v1629_v53  ;;  %v1613_v55 = vld [vmem:[#allocation3 + $0x60] sm:$0xff] }
 0xa14   :  { %v1367_v5 = vadd.f32 %v2774_v19, %v2615_v17  ;;  %1469 = vmatmul.mubr.f32.vlgmr.msra.gmra.mrb[12].mxu0 %v1370_v18  ;;  %v1612_v17 = vld [vmem:[#allocation3 + $0x58] sm:$0xff]  ;;  %v1614_v18 = vld [vmem:[#allocation3 + $0x68] sm:$0xff]  ;;  %v1631_v19 = vld [vmem:[#allocation3 + $0xf0] sm:$0xff] }
 0xa15   :  { %1474 = vmatprep.mubr.f32.mxu0 %v4006_v2  ;;  %v3513_v6 = vpack.c.bf16 %v1612_v17, %v1611_v8 }
 0xa16   :  { %v1371_v21 = vmax.f32 %v1367_v5, 0.0  ;;  %v1632_v5 = vld [vmem:[#allocation3 + $0xf8] sm:$0xff] }
 0xa17   :  { %3514 = vmatpush3.bf16.msra.mxu1 %v3513_v6  ;;  %v3519_v22 = vpack.c.bf16 %v1632_v5, %v1631_v19 }
 0xa18   :  { %1475 = vmatmul.mubr.f32.gmra.mrb[14].mxu0 %v1371_v21  ;;  %v3517_v21 = vpack.c.bf16 %v1614_v18, %v1613_v55  ;;  %3516 = vmatprep.subr.bf16.mxu1 %v3515_v14 }
 0xa1b   :  { %3518 = vmatpush3.bf16.msra.mxu1 %v3517_v21 }
 0xa1c   :  { %3520 = vmatprep.subr.bf16.mxu1 %v3519_v22 }
 0xa1f   :  { %3522 = vmatpush3.bf16.msra.mxu1 %v3521_v28 }
 0xae7   :  { %v1470_v31 = vpop.f32.mrb[12].mxu0 }
 0xae8   :  { %v1472_v32 = vpop.f32.mrb[13].mxu0 }
 0xaeb   :  { %v1476_v33 = vpop.f32.mrb[14].mxu0 }
 0xaec   :  { %v1483_v34 = vadd.f32 %v1476_v33, %v1470_v31  ;;  %v1478_v37 = vpop.f32.mrb[15].mxu0 }
 0xaed   :  { %v1490_v39 = vadd.f32 %v1478_v37, %v1472_v32 }
 0xaee   :  { %v1484_v41 = vrot.slane %v1483_v34, 4 }
 0xaef   :  { %v1491_v42 = vrot.slane %v1490_v39, 4 }
 0xaf0   :  { %v1485_v43 = vadd.f32 %v1484_v41, %v1483_v34 }
 0xaf1   :  { %v1492_v45 = vadd.f32 %v1491_v42, %v1490_v39 }
 0xaf2   :  { %v1486_v48 = vrot.slane %v1485_v43, 2 }
 0xaf3   :  { %v1493_v49 = vrot.slane %v1492_v45, 2 }
 0xaf4   :  { %v1487_v54 = vadd.f32 %v1486_v48, %v1485_v43  ;;  %v1481_v48 = vld [vmem:[#allocation2 + $0x100] ss:$8 sm:$0x3] }
 0xaf5   :  { %v1494_v57 = vadd.f32 %v1493_v49, %v1492_v45 }
 0xaf6   :  { %v1488_v58 = vrot.slane %v1487_v54, 1 }
 0xaf7   :  { %v1495_v59 = vrot.slane %v1494_v57, 1 }
 0xaf8   :  { %v1489_v61 = vadd.f32 %v1488_v58, %v1487_v54 }
 0xaf9   :  { %v1496_v62 = vadd.f32 %v1495_v59, %v1494_v57 }
 0xafa   :  { %v1497_v63 = vmul.f32 0.0625, %v1489_v61 }
 0xafb   :  { %v1498_v0 = vmul.f32 0.0625, %v1496_v62 }
 0xafc   :  { %v1499_v1 = vsub.f32 %v1470_v31, %v1497_v63  ;;  %v1501_v3 = vsub.f32 %v1476_v33, %v1497_v63 }
 0xafd   :  { %v1500_v9 = vsub.f32 %v1472_v32, %v1498_v0  ;;  %v1502_v12 = vsub.f32 %v1478_v37, %v1498_v0 }
 0xafe   :  { %v1503_v13 = vmul.f32 %v1499_v1, %v1499_v1  ;;  %v1505_v52 = vmul.f32 %v1501_v3, %v1501_v3 }
 0xaff   :  { %v1504_v7 = vmul.f32 %v1500_v9, %v1500_v9  ;;  %v1506_v51 = vmul.f32 %v1502_v12, %v1502_v12 }
 0xb00   :  { %v1507_v8 = vadd.f32 %v1505_v52, %v1503_v13  ;;  %v1482_v52 = vld [vmem:[#allocation2 + $0x101] ss:$8 sm:$0x3] }
 0xb01   :  { %v1514_v4 = vadd.f32 %v1506_v51, %v1504_v7 }
 0xb02   :  { %v1508_v17 = vrot.slane %v1507_v8, 4 }
 0xb03   :  { %v1515_v53 = vrot.slane %v1514_v4, 4 }
 0xb04   :  { %v1509_v10 = vadd.f32 %v1508_v17, %v1507_v8 }
 0xb05   :  { %v1516_v6 = vadd.f32 %v1515_v53, %v1514_v4 }
 0xb06   :  { %v1510_v14 = vrot.slane %v1509_v10, 2 }
 0xb07   :  { %v1517_v55 = vrot.slane %v1516_v6, 2 }
 0xb08   :  { %v1511_v18 = vadd.f32 %v1510_v14, %v1509_v10 }
 0xb09   :  { %v1518_v19 = vadd.f32 %v1517_v55, %v1516_v6  ;;  %v1750_v6 = vld [vmem:[#allocation3 + $0x110] sm:$0xff]  ;;  %v1751_v55 = vld [vmem:[#allocation3 + $0x118] sm:$0xff] }
 0xb0a   :  { %v1512_v5 = vrot.slane %v1511_v18, 1 }
 0xb0b   :  { %v1519_v21 = vrot.slane %v1518_v19, 1 }
 0xb0c   :  { %v1513_v22 = vadd.f32 %v1512_v5, %v1511_v18  ;;  %v1752_v18 = vld [vmem:[#allocation3 + $0x120] sm:$0xff]  ;;  %v1753_v5 = vld [vmem:[#allocation3 + $0x128] sm:$0xff] }
 0xb0d   :  { %v1520_v25 = vadd.f32 %v1519_v21, %v1518_v19  ;;  %v3527_v19 = vpack.c.bf16 %v1752_v18, %v1751_v55  ;;  %v1754_v21 = vld [vmem:[#allocation3 + $0x130] sm:$0xff] }
 0xb0e   :  { %v1521_v26 = vmul.f32 0.0625, %v1513_v22  ;;  %v3531_v22 = vpack.c.bf16 %v1754_v21, %v1753_v5  ;;  %v1708_v21 = vld [vmem:[#allocation3 + $0x100] sm:$0x1] }
 0xb0f   :  { %v1522_v28 = vmul.f32 0.0625, %v1520_v25  ;;  %v1755_v25 = vld [vmem:[#allocation3 + $0x138] sm:$0xff] }
 0xb10   :  { %v1523_v34 = vadd.f32 1e-05, %v1521_v26  ;;  %v1756_v26 = vld [vmem:[#allocation3 + $0x140] sm:$0xff] }
 0xb11   :  { %v1524_v39 = vadd.f32 1e-05, %v1522_v28  ;;  %v3535_v28 = vpack.c.bf16 %v1756_v26, %v1755_v25  ;;  %v1709_v26 = vld [vmem:[#allocation3 + $0x101] sm:$0x1] }
 0xb12   :  { %3744 = vrsqrt.f32 %v1523_v34  ;;  %v1757_v34 = vld [vmem:[#allocation3 + $0x148] sm:$0xff] }
 0xb13   :  { %3746 = vrsqrt.f32 %v1524_v39  ;;  %v1758_v39 = vld [vmem:[#allocation3 + $0x150] sm:$0xff] }
 0xb1c   :  { %v3745_v41 = vpop.eup %3744 }
 0xb1d   :  { %v3747_v42 = vpop.eup %3746 }
 0xb1e   :  { %v1529_v43 = vcombine.low %v3745_v41, %v3747_v42  ;;  %v3539_v41 = vpack.c.bf16 %v1758_v39, %v1757_v34  ;;  %v1759_v42 = vld [vmem:[#allocation3 + $0x158] sm:$0xff] }
 0xb20   :  { %v1536_v45 = vrot.slane %v1529_v43, %v4250_v40  ;;  %v1760_v43 = vld [vmem:[#allocation3 + $0x160] sm:$0xff] }
 0xb22   :  { %v1543_v49 = vrot.slane %v1536_v45, %v4250_v40  ;;  %v3543_v45 = vpack.c.bf16 %v1760_v43, %v1759_v42 }
 0xb24   :  { %v1545_v54 = vmul.f32 %v1543_v49, %v1481_v48  ;;  %v1761_v48 = vld [vmem:[#allocation3 + $0x168] sm:$0xff]  ;;  %v1762_v49 = vld [vmem:[#allocation3 + $0x170] sm:$0xff] }
 0xb26   :  { %v1550_v57 = vrot.slane %v1545_v54, %v4254_v46  ;;  %v1554_v58 = vrot.slane %v1545_v54, %v4256_v47  ;;  %v3547_v54 = vpack.c.bf16 %v1762_v49, %v1761_v48 }
 0xb28   :  { %v1558_v59 = vmul.f32 %v1554_v58, %v1498_v0  ;;  %v1581_v61 = vmul.f32 %v1554_v58, %v1478_v37  ;;  %v1557_v62 = vmul.f32 %v1550_v57, %v1497_v63  ;;  %v1579_v1 = vmul.f32 %v1554_v58, %v1472_v32  ;;  %v1764_v58 = vld [vmem:[#allocation3 + $0x180] sm:$0xff] }
 0xb29   :  { %v1578_v3 = vmul.f32 %v1550_v57, %v1470_v31  ;;  %v1580_v9 = vmul.f32 %v1550_v57, %v1476_v33  ;;  %v1749_v33 = vld [vmem:[#allocation3 + $0x108] sm:$0xff]  ;;  %v1763_v57 = vld [vmem:[#allocation3 + $0x178] sm:$0xff] }
 0xb2a   :  { %v1561_v12 = vcombine.low %v1557_v62, %v1558_v59  ;;  %v3523_v14 = vpack.c.bf16 %v1750_v6, %v1749_v33  ;;  %v3551_v59 = vpack.c.bf16 %v1764_v58, %v1763_v57  ;;  %v1881_v57 = vld [vmem:[#allocation3 + $0x190] sm:$0xff]  ;;  %v1882_v58 = vld [vmem:[#allocation3 + $0x198] sm:$0xff] }
 0xb2c   :  { %v1568_v13 = vrot.slane %v1561_v12, %v4250_v40  ;;  %3524 = vmatprep.subr.bf16.mxu0 %v3523_v14 }
 0xb2d   :  { %3526 = vmatpush3.bf16.msra.mxu0 %v3523_v14 }
 0xb2e   :  { %v1575_v7 = vrot.slane %v1568_v13, %v4250_v40  ;;  %3528 = vmatprep.subr.bf16.mxu0 %v3527_v19 }
 0xb30   :  { %v1577_v51 = vsub.f32 %v1482_v52, %v1575_v7 }
 0xb31   :  { %3530 = vmatpush3.bf16.msra.mxu0 %v3527_v19 }
 0xb32   :  { %v1586_v8 = vrot.slane %v1577_v51, %v4254_v46  ;;  %v1590_v4 = vrot.slane %v1577_v51, %v4256_v47  ;;  %3532 = vmatprep.subr.bf16.mxu0 %v3531_v22 }
 0xb34   :  { %v1594_v17 = vadd.f32 %v1590_v4, %v1579_v1  ;;  %v1593_v53 = vadd.f32 %v1586_v8, %v1578_v3  ;;  %v1596_v10 = vadd.f32 %v1590_v4, %v1581_v61  ;;  %v1595_v0 = vadd.f32 %v1586_v8, %v1580_v9 }
 0xb35   :  { %3534 = vmatpush3.bf16.msra.mxu0 %v3531_v22 }
 0xb36   :  { %v1598_v37 = vmax.f32 %v1594_v17, 0.0  ;;  %v1597_v63 = vmax.f32 %v1593_v53, 0.0  ;;  %v1600_v31 = vmax.f32 %v1596_v10, 0.0  ;;  %v1599_v32 = vmax.f32 %v1595_v0, 0.0  ;;  %3536 = vmatprep.subr.bf16.mxu0 %v3535_v28 }
 0xb38   :  { %1697 = vmatprep.mubr.f32.mxu1 %v1598_v37 }
 0xb39   :  { %1698 = vmatmul.mubr.f32.vlgmr.msra.gmra.mrb[12].mxu1 %v1597_v63  ;;  %3538 = vmatpush3.bf16.msra.mxu0 %v3535_v28 }
 0xb3a   :  { %1702 = vmatprep.mubr.f32.mxu1 %v1600_v31  ;;  %3540 = vmatprep.subr.bf16.mxu0 %v3539_v41 }
 0xb3d   :  { %1703 = vmatmul.mubr.f32.gmra.mrb[14].mxu1 %v1599_v32  ;;  %3542 = vmatpush3.bf16.msra.mxu0 %v3539_v41 }
 0xb3e   :  { %3544 = vmatprep.subr.bf16.mxu0 %v3543_v45 }
 0xb41   :  { %3546 = vmatpush3.bf16.msra.mxu0 %v3543_v45 }
 0xb42   :  { %3548 = vmatprep.subr.bf16.mxu0 %v3547_v54 }
 0xb45   :  { %3550 = vmatpush3.bf16.msra.mxu0 %v3547_v54 }
 0xb46   :  { %3552 = vmatprep.subr.bf16.mxu0 %v3551_v59 }
 0xb49   :  { %3554 = vmatpush3.bf16.msra.mxu0 %v3551_v59  ;;  %v3555_v59 = vpack.c.bf16 %v1882_v58, %v1881_v57 }
 0xb4b   :  { %3556 = vmatprep.subr.bf16.mxu1 %v3555_v59 }
 0xb4c   :  { %3558 = vmatpush3.bf16.msra.mxu1 %v3555_v59 }
 0xc0c   :  { %v2807_v61 = vpop.f32.mrb[12].mxu1 }
 0xc0d   :  { %v2808_v62 = vpop.f32.mrb[13].mxu1 }
 0xc0e   :  { %v2809_v1 = vadd.f32 %v2808_v62, %v2807_v61  ;;  %v1883_v61 = vld [vmem:[#allocation3 + $0x1a0] sm:$0xff]  ;;  %v1884_v62 = vld [vmem:[#allocation3 + $0x1a8] sm:$0xff] }
 0xc10   :  { %v2810_v3 = vpop.f32.mrb[14].mxu1 }
 0xc11   :  { %v2811_v9 = vpop.f32.mrb[15].mxu1 }
 0xc12   :  { %v2812_v12 = vadd.f32 %v2811_v9, %v2810_v3  ;;  %v3559_v3 = vpack.c.bf16 %v1884_v62, %v1883_v61  ;;  %v1885_v9 = vld [vmem:[#allocation3 + $0x1b0] sm:$0xff] }
 0xc14   :  { %v1710_v13 = vadd.f32 %v2812_v12, %v2809_v1  ;;  %3560 = vmatprep.subr.bf16.mxu1 %v3559_v3 }
 0xc15   :  { %3562 = vmatpush3.bf16.msra.mxu1 %v3559_v3 }
 0xc16   :  { %v1711_v52 = vrot.slane %v1710_v13, 4 }
 0xc18   :  { %v1712_v7 = vadd.f32 %v1711_v52, %v1710_v13  ;;  %v1887_v13 = vld [vmem:[#allocation3 + $0x1c0] sm:$0xff]  ;;  %v1888_v52 = vld [vmem:[#allocation3 + $0x1c8] sm:$0xff] }
 0xc1a   :  { %v1713_v51 = vrot.slane %v1712_v7, 2 }
 0xc1c   :  { %v1714_v8 = vadd.f32 %v1713_v51, %v1712_v7  ;;  %v3567_v7 = vpack.c.bf16 %v1888_v52, %v1887_v13  ;;  %v1889_v51 = vld [vmem:[#allocation3 + $0x1d0] sm:$0xff] }
 0xc1e   :  { %v1715_v4 = vrot.slane %v1714_v8, 1 }
 0xc20   :  { %v1716_v17 = vadd.f32 %v1715_v4, %v1714_v8  ;;  %v1890_v8 = vld [vmem:[#allocation3 + $0x1d8] sm:$0xff] }
 0xc21   :  { %v3571_v4 = vpack.c.bf16 %v1890_v8, %v1889_v51 }
 0xc22   :  { %v1717_v53 = vmul.f32 0.0625, %v1716_v17  ;;  %v1891_v17 = vld [vmem:[#allocation3 + $0x1e0] sm:$0xff] }
 0xc24   :  { %v1718_v10 = vsub.f32 %v2809_v1, %v1717_v53  ;;  %v1719_v0 = vsub.f32 %v2812_v12, %v1717_v53 }
 0xc26   :  { %v1720_v37 = vmul.f32 %v1718_v10, %v1718_v10  ;;  %v1721_v63 = vmul.f32 %v1719_v0, %v1719_v0  ;;  %v1893_v0 = vld [vmem:[#allocation3 + $0x1f0] sm:$0xff] }
 0xc28   :  { %v1722_v31 = vadd.f32 %v1721_v63, %v1720_v37  ;;  %v1894_v37 = vld [vmem:[#allocation3 + $0x1f8] sm:$0xff] }
 0xc29   :  { %v3579_v63 = vpack.c.bf16 %v1894_v37, %v1893_v0 }
 0xc2a   :  { %v1723_v32 = vrot.slane %v1722_v31, 4 }
 0xc2c   :  { %v1724_v33 = vadd.f32 %v1723_v32, %v1722_v31  ;;  %v1895_v31 = vld [vmem:[#allocation3 + $0x200] sm:$0xff]  ;;  %v1896_v32 = vld [vmem:[#allocation3 + $0x208] sm:$0xff] }
 0xc2e   :  { %v1725_v6 = vrot.slane %v1724_v33, 2 }
 0xc30   :  { %v1726_v14 = vadd.f32 %v1725_v6, %v1724_v33  ;;  %v3583_v33 = vpack.c.bf16 %v1896_v32, %v1895_v31  ;;  %v1979_v6 = vld [vmem:[#allocation3 + $0x218] sm:$0xff] }
 0xc32   :  { %v1727_v55 = vrot.slane %v1726_v14, 1 }
 0xc34   :  { %v1728_v18 = vadd.f32 %v1727_v55, %v1726_v14  ;;  %v1980_v14 = vld [vmem:[#allocation3 + $0x220] sm:$0xff]  ;;  %v1981_v55 = vld [vmem:[#allocation3 + $0x228] sm:$0xff] }
 0xc36   :  { %v1729_v19 = vmul.f32 0.0625, %v1728_v18  ;;  %v3587_v18 = vpack.c.bf16 %v1980_v14, %v1979_v6  ;;  %v1840_v6 = vld [vmem:[#allocation3 + $0x188] sm:$0x1] }
 0xc38   :  { %v1730_v5 = vadd.f32 1e-05, %v1729_v19  ;;  %v1982_v19 = vld [vmem:[#allocation3 + $0x230] sm:$0xff]  ;;  %3588 = vmatprep.subr.bf16.mxu0 %v3587_v18 }
 0xc3a   :  { %3748 = vrsqrt.f32 %v1730_v5  ;;  %v3591_v5 = vpack.c.bf16 %v1982_v19, %v1981_v55 }
 0xc44   :  { %v3749_v22 = vpop.eup %3748 }
 0xc45   :  { %v1732_v25 = vmul.f32 %v3749_v22, %v1708_v21  ;;  %v1983_v21 = vld [vmem:[#allocation3 + $0x238] sm:$0xff]  ;;  %v1984_v22 = vld [vmem:[#allocation3 + $0x240] sm:$0xff] }
 0xc47   :  { %v1738_v28 = vrot.slane %v1732_v25, %v4254_v46  ;;  %v1733_v34 = vmul.f32 %v1732_v25, %v1717_v53  ;;  %v1892_v53 = vld [vmem:[#allocation3 + $0x1e8] sm:$0xff]  ;;  %v3595_v25 = vpack.c.bf16 %v1984_v22, %v1983_v21 }
 0xc48   :  { %v3575_v10 = vpack.c.bf16 %v1892_v53, %v1891_v17 }
 0xc49   :  { %v1740_v39 = vmul.f32 %v2812_v12, %v1738_v28  ;;  %v1734_v41 = vsub.f32 %v1709_v26, %v1733_v34  ;;  %v1739_v42 = vmul.f32 %v2809_v1, %v1738_v28  ;;  %v1886_v1 = vld [vmem:[#allocation3 + $0x1b8] sm:$0xff]  ;;  %v1985_v26 = vld [vmem:[#allocation3 + $0x248] sm:$0xff]  ;;  %v1986_v28 = vld [vmem:[#allocation3 + $0x250] sm:$0xff] }
 0xc4a   :  { %v3563_v12 = vpack.c.bf16 %v1886_v1, %v1885_v9  ;;  %v3599_v34 = vpack.c.bf16 %v1986_v28, %v1985_v26 }
 0xc4b   :  { %v1744_v43 = vrot.slane %v1734_v41, %v4254_v46  ;;  %v1988_v41 = vld [vmem:[#allocation3 + $0x260] sm:$0xff] }
 0xc4c   :  { %3564 = vmatprep.subr.bf16.mxu1 %v3563_v12 }
 0xc4d   :  { %v1745_v45 = vadd.f32 %v1744_v43, %v1739_v42  ;;  %v1746_v48 = vadd.f32 %v1744_v43, %v1740_v39  ;;  %3566 = vmatpush3.bf16.msra.mxu1 %v3563_v12  ;;  %v1987_v39 = vld [vmem:[#allocation3 + $0x258] sm:$0xff]  ;;  %v1989_v43 = vld [vmem:[#allocation3 + $0x268] sm:$0xff] }
 0xc4e   :  { %3568 = vmatprep.subr.bf16.mxu1 %v3567_v7  ;;  %v3603_v42 = vpack.c.bf16 %v1988_v41, %v1987_v39 }
 0xc4f   :  { %v1747_v49 = vmax.f32 %v1745_v45, 0.0  ;;  %v1748_v54 = vmax.f32 %v1746_v48, 0.0  ;;  %v1990_v45 = vld [vmem:[#allocation3 + $0x270] sm:$0xff] }
 0xc50   :  { %v3607_v48 = vpack.c.bf16 %v1990_v45, %v1989_v43  ;;  %v1994_v43 = vld [vmem:[#allocation3 + $0x290] sm:$0xff] }
 0xc51   :  { %3095 = vmatprep.mubr.f32.mxu0 %v1747_v49  ;;  %3570 = vmatpush3.bf16.msra.mxu1 %v3567_v7  ;;  %v1991_v49 = vld [vmem:[#allocation3 + $0x278] sm:$0xff] }
 0xc52   :  { %3096 = vmatmul.mubr.f32.vlgmr.msra.gmra.mrb[16].mxu0 %v1748_v54  ;;  %3572 = vmatprep.subr.bf16.mxu1 %v3571_v4  ;;  %v1992_v54 = vld [vmem:[#allocation3 + $0x280] sm:$0xff] }
 0xc53   :  { %3590 = vmatpush3.bf16.msra.mxu0 %v3587_v18  ;;  %v3611_v57 = vpack.c.bf16 %v1992_v54, %v1991_v49  ;;  %v1841_v18 = vld [vmem:[#allocation3 + $0x189] sm:$0x1] }
 0xc54   :  { %3592 = vmatprep.subr.bf16.mxu0 %v3591_v5 }
 0xc55   :  { %3574 = vmatpush3.bf16.msra.mxu1 %v3571_v4 }
 0xc56   :  { %3576 = vmatprep.subr.bf16.mxu1 %v3575_v10 }
 0xc57   :  { %3594 = vmatpush3.bf16.msra.mxu0 %v3591_v5 }
 0xc58   :  { %3596 = vmatprep.subr.bf16.mxu0 %v3595_v25 }
 0xc59   :  { %3578 = vmatpush3.bf16.msra.mxu1 %v3575_v10 }
 0xc5a   :  { %3580 = vmatprep.subr.bf16.mxu1 %v3579_v63 }
 0xc5b   :  { %3598 = vmatpush3.bf16.msra.mxu0 %v3595_v25 }
 0xc5c   :  { %3600 = vmatprep.subr.bf16.mxu0 %v3599_v34 }
 0xc5d   :  { %3582 = vmatpush3.bf16.msra.mxu1 %v3579_v63 }
 0xc5e   :  { %3584 = vmatprep.subr.bf16.mxu1 %v3583_v33 }
 0xc5f   :  { %3602 = vmatpush3.bf16.msra.mxu0 %v3599_v34 }
 0xc60   :  { %3604 = vmatprep.subr.bf16.mxu0 %v3603_v42 }
 0xc61   :  { %3586 = vmatpush3.bf16.msra.mxu1 %v3583_v33 }
 0xc63   :  { %3606 = vmatpush3.bf16.msra.mxu0 %v3603_v42  ;;  %v1993_v42 = vld [vmem:[#allocation3 + $0x288] sm:$0xff] }
 0xc64   :  { %3608 = vmatprep.subr.bf16.mxu0 %v3607_v48  ;;  %v3615_v45 = vpack.c.bf16 %v1994_v43, %v1993_v42 }
 0xc67   :  { %3610 = vmatpush3.bf16.msra.mxu0 %v3607_v48  ;;  %v2616_v48 = vld [vmem:[#allocation3 + $0x210] ss:$0 sm:$0xff] }
 0xc68   :  { %3612 = vmatprep.subr.bf16.mxu0 %v3611_v57 }
 0xc6b   :  { %3614 = vmatpush3.bf16.msra.mxu0 %v3611_v57 }
 0xc6c   :  { %3616 = vmatprep.subr.bf16.mxu0 %v3615_v45 }
 0xc6f   :  { %3618 = vmatpush3.bf16.msra.mxu0 %v3615_v45 }
 0xd25   :  { %v3097_v58 = vpop.f32.mrb[16].mxu0 }
 0xd26   :  { %v1831_v59 = vpop.f32.mrb[17].mxu0 }
 0xd27   :  { %v1842_v61 = vadd.f32 %v3097_v58, %v1831_v59 }
 0xd29   :  { %v1843_v62 = vrot.slane %v1842_v61, 4 }
 0xd2b   :  { %v1844_v3 = vadd.f32 %v1843_v62, %v1842_v61  ;;  %v2111_v62 = vld [vmem:[#allocation3 + $0x2a0] sm:$0xff] }
 0xd2d   :  { %v1845_v9 = vrot.slane %v1844_v3, 2 }
 0xd2f   :  { %v1846_v1 = vadd.f32 %v1845_v9, %v1844_v3  ;;  %v2112_v3 = vld [vmem:[#allocation3 + $0x2a8] sm:$0xff] }
 0xd30   :  { %v3619_v9 = vpack.c.bf16 %v2112_v3, %v2111_v62 }
 0xd31   :  { %v1847_v12 = vrot.slane %v1846_v1, 1 }
 0xd32   :  { %3620 = vmatprep.subr.bf16.mxu1 %v3619_v9 }
 0xd33   :  { %v1848_v13 = vadd.f32 %v1847_v12, %v1846_v1  ;;  %v2113_v1 = vld [vmem:[#allocation3 + $0x2b0] sm:$0xff]  ;;  %v2114_v12 = vld [vmem:[#allocation3 + $0x2b8] sm:$0xff] }
 0xd35   :  { %v1849_v52 = vmul.f32 0.0625, %v1848_v13  ;;  %v3623_v13 = vpack.c.bf16 %v2114_v12, %v2113_v1 }
 0xd37   :  { %v1850_v7 = vsub.f32 %v1831_v59, %v1849_v52  ;;  %v1851_v51 = vsub.f32 %v3097_v58, %v1849_v52 }
 0xd39   :  { %v1852_v8 = vmul.f32 %v1850_v7, %v1850_v7  ;;  %v1853_v4 = vmul.f32 %v1851_v51, %v1851_v51  ;;  %v2116_v7 = vld [vmem:[#allocation3 + $0x2c8] sm:$0xff] }
 0xd3b   :  { %v1854_v17 = vadd.f32 %v1853_v4, %v1852_v8  ;;  %v2117_v8 = vld [vmem:[#allocation3 + $0x2d0] sm:$0xff]  ;;  %v2118_v4 = vld [vmem:[#allocation3 + $0x2d8] sm:$0xff] }
 0xd3d   :  { %v1855_v53 = vrot.slane %v1854_v17, 4 }
 0xd3f   :  { %v1856_v10 = vadd.f32 %v1855_v53, %v1854_v17  ;;  %v3631_v17 = vpack.c.bf16 %v2118_v4, %v2117_v8  ;;  %v2119_v53 = vld [vmem:[#allocation3 + $0x2e0] sm:$0xff] }
 0xd41   :  { %v1857_v0 = vrot.slane %v1856_v10, 2 }
 0xd43   :  { %v1858_v37 = vadd.f32 %v1857_v0, %v1856_v10  ;;  %v2120_v10 = vld [vmem:[#allocation3 + $0x2e8] sm:$0xff] }
 0xd44   :  { %v3635_v0 = vpack.c.bf16 %v2120_v10, %v2119_v53 }
 0xd45   :  { %v1859_v63 = vrot.slane %v1858_v37, 1 }
 0xd47   :  { %v1860_v31 = vadd.f32 %v1859_v63, %v1858_v37  ;;  %v2121_v37 = vld [vmem:[#allocation3 + $0x2f0] sm:$0xff]  ;;  %v2122_v63 = vld [vmem:[#allocation3 + $0x2f8] sm:$0xff] }
 0xd49   :  { %v1861_v32 = vmul.f32 0.0625, %v1860_v31  ;;  %v3639_v31 = vpack.c.bf16 %v2122_v63, %v2121_v37 }
 0xd4b   :  { %v1862_v33 = vadd.f32 1e-05, %v1861_v32  ;;  %v2123_v32 = vld [vmem:[#allocation3 + $0x300] sm:$0xff] }
 0xd4d   :  { %3750 = vrsqrt.f32 %v1862_v33  ;;  %v2124_v33 = vld [vmem:[#allocation3 + $0x308] sm:$0xff] }
 0xd57   :  { %v3751_v14 = vpop.eup %3750 }
 0xd58   :  { %v1864_v55 = vmul.f32 %v3751_v14, %v1840_v6  ;;  %v3643_v6 = vpack.c.bf16 %v2124_v33, %v2123_v32  ;;  %v2125_v14 = vld [vmem:[#allocation3 + $0x310] sm:$0xff]  ;;  %v2256_v33 = vld [vmem:[#allocation2 + $0x178] sm:$0xff] }
 0xd5a   :  { %v1870_v19 = vrot.slane %v1864_v55, %v4254_v46  ;;  %v1865_v5 = vmul.f32 %v1864_v55, %v1849_v52  ;;  %v2115_v52 = vld [vmem:[#allocation3 + $0x2c0] sm:$0xff]  ;;  %v2126_v55 = vld [vmem:[#allocation3 + $0x318] sm:$0xff] }
 0xd5b   :  { %v3627_v51 = vpack.c.bf16 %v2116_v7, %v2115_v52 }
 0xd5c   :  { %v1871_v21 = vmul.f32 %v1870_v19, %v1831_v59  ;;  %v1872_v22 = vmul.f32 %v3097_v58, %v1870_v19  ;;  %v1866_v25 = vsub.f32 %v1841_v18, %v1865_v5  ;;  %v3647_v18 = vpack.c.bf16 %v2126_v55, %v2125_v14  ;;  %v2255_v55 = vld [vmem:[#allocation2 + $0x170] sm:$0xff] }
 0xd5e   :  { %v1876_v26 = vrot.slane %v1866_v25, %v4254_v46 }
 0xd60   :  { %v1877_v28 = vadd.f32 %v1876_v26, %v1871_v21  ;;  %v1878_v34 = vadd.f32 %v1876_v26, %v1872_v22 }
 0xd62   :  { %v1879_v39 = vmax.f32 %v1877_v28, 0.0  ;;  %v1880_v41 = vmax.f32 %v1878_v34, 0.0 }
 0xd64   :  { %3130 = vmatprep.mubr.f32.mxu1 %v1879_v39 }
 0xd65   :  { %3131 = vmatmul.mubr.f32.vlgmr.msra.gmra.mrb[16].mxu1 %v1880_v41 }
 0xd66   :  { %3622 = vmatpush3.bf16.msra.mxu1 %v3619_v9  ;;  %v2070_v9 = vld [vmem:[#allocation3 + $0x298] sm:$0x1] }
 0xd67   :  { %3624 = vmatprep.subr.bf16.mxu1 %v3623_v13 }
 0xd6a   :  { %3626 = vmatpush3.bf16.msra.mxu1 %v3623_v13  ;;  %v2071_v13 = vld [vmem:[#allocation3 + $0x299] sm:$0x1] }
 0xd6b   :  { %3628 = vmatprep.subr.bf16.mxu1 %v3627_v51 }
 0xd6e   :  { %3630 = vmatpush3.bf16.msra.mxu1 %v3627_v51 }
 0xd6f   :  { %3632 = vmatprep.subr.bf16.mxu1 %v3631_v17 }
 0xd72   :  { %3634 = vmatpush3.bf16.msra.mxu1 %v3631_v17 }
 0xd73   :  { %3636 = vmatprep.subr.bf16.mxu1 %v3635_v0 }
 0xd76   :  { %3638 = vmatpush3.bf16.msra.mxu1 %v3635_v0 }
 0xd77   :  { %3640 = vmatprep.subr.bf16.mxu1 %v3639_v31 }
 0xd7a   :  { %3642 = vmatpush3.bf16.msra.mxu1 %v3639_v31  ;;  %v2253_v31 = vld [vmem:[#allocation2 + $0x160] sm:$0xff] }
 0xd7b   :  { %3644 = vmatprep.subr.bf16.mxu1 %v3643_v6 }
 0xd7e   :  { %3646 = vmatpush3.bf16.msra.mxu1 %v3643_v6  ;;  %v2258_v6 = vld [vmem:[#allocation2 + $0x188] sm:$0xff] }
 0xd7f   :  { %3648 = vmatprep.subr.bf16.mxu1 %v3647_v18  ;;  %v3663_v14 = vpack.c.bf16 %v2258_v6, %v2256_v33 }
 0xd82   :  { %3650 = vmatpush3.bf16.msra.mxu1 %v3647_v18  ;;  %v2257_v18 = vld [vmem:[#allocation2 + $0x180] sm:$0xff] }
 0xd83   :  { %3684 = vmatprep.subr.bf16.mxu1 %v4321_v15 }
 0xe38   :  { %v3132_v49 = vpop.f32.mrb[16].mxu1 }
 0xe39   :  { %v1974_v54 = vadd.f32 %v3132_v49, %v2616_v48  ;;  %v1968_v57 = vpop.f32.mrb[17].mxu1 }
 0xe3a   :  { %v1969_v59 = vadd.f32 %v2616_v48, %v1968_v57 }
 0xe3b   :  { %v1978_v58 = vmax.f32 %v1974_v54, 0.0 }
 0xe3c   :  { %v1977_v61 = vmax.f32 %v1969_v59, 0.0 }
 0xe3d   :  { %2618 = vst [vmem:[%s4433_s3 + $0x18] sm:$0xff] %v1978_v58 }
 0xe3e   :  { %2617 = vst [vmem:[%s4433_s3 + $0x10] sm:$0xff] %v1977_v61  ;;  %3165 = vmatprep.mubr.f32.mxu0 %v1977_v61 }
 0xe3f   :  { %3166 = vmatmul.mubr.f32.vlgmr.msra.gmra.mrb[18].mxu0 %v1978_v58 }
 0xe40   :  { %2339 = vmatprep.mubr.f32.mxu0 %v4006_v2 }
 0xf12   :  { %v3167_v19 = vpop.f32.mrb[18].mxu0 }
 0xf13   :  { %v2061_v5 = vpop.f32.mrb[19].mxu0 }
 0xf14   :  { %v2072_v21 = vadd.f32 %v3167_v19, %v2061_v5 }
 0xf16   :  { %v2073_v22 = vrot.slane %v2072_v21, 4 }
 0xf18   :  { %v2074_v25 = vadd.f32 %v2073_v22, %v2072_v21  ;;  %v2262_v21 = vld [vmem:[#allocation2 + $0x1a8] sm:$0xff] }
 0xf1a   :  { %v2075_v26 = vrot.slane %v2074_v25, 2 }
 0xf1c   :  { %v2076_v28 = vadd.f32 %v2075_v26, %v2074_v25  ;;  %v2259_v25 = vld [vmem:[#allocation2 + $0x190] sm:$0xff]  ;;  %v2261_v26 = vld [vmem:[#allocation2 + $0x1a0] sm:$0xff] }
 0xf1e   :  { %v2077_v34 = vrot.slane %v2076_v28, 1 }
 0xf20   :  { %v2078_v39 = vadd.f32 %v2077_v34, %v2076_v28  ;;  %v3669_v28 = vpack.c.bf16 %v2261_v26, %v2259_v25  ;;  %v2264_v34 = vld [vmem:[#allocation2 + $0x1b8] sm:$0xff] }
 0xf22   :  { %v2079_v41 = vmul.f32 0.0625, %v2078_v39  ;;  %v2266_v39 = vld [vmem:[#allocation2 + $0x1c8] sm:$0xff] }
 0xf24   :  { %v2080_v42 = vsub.f32 %v2061_v5, %v2079_v41  ;;  %v2081_v43 = vsub.f32 %v3167_v19, %v2079_v41 }
 0xf26   :  { %v2082_v45 = vmul.f32 %v2080_v42, %v2080_v42  ;;  %v2083_v48 = vmul.f32 %v2081_v43, %v2081_v43  ;;  %v2263_v42 = vld [vmem:[#allocation2 + $0x1b0] sm:$0xff]  ;;  %v2265_v43 = vld [vmem:[#allocation2 + $0x1c0] sm:$0xff] }
 0xf28   :  { %v2084_v49 = vadd.f32 %v2083_v48, %v2082_v45  ;;  %v3673_v45 = vpack.c.bf16 %v2265_v43, %v2263_v42  ;;  %v2268_v48 = vld [vmem:[#allocation2 + $0x1d8] sm:$0xff] }
 0xf2a   :  { %v2085_v54 = vrot.slane %v2084_v49, 4 }
 0xf2c   :  { %v2086_v57 = vadd.f32 %v2085_v54, %v2084_v49  ;;  %v2270_v49 = vld [vmem:[#allocation2 + $0x1e8] sm:$0xff] }
 0xf2d   :  { %v3675_v54 = vpack.c.bf16 %v2270_v49, %v2268_v48 }
 0xf2e   :  { %v2087_v59 = vrot.slane %v2086_v57, 2 }
 0xf30   :  { %v2088_v58 = vadd.f32 %v2087_v59, %v2086_v57  ;;  %v2267_v57 = vld [vmem:[#allocation2 + $0x1d0] sm:$0xff]  ;;  %v2269_v59 = vld [vmem:[#allocation2 + $0x1e0] sm:$0xff] }
 0xf32   :  { %v2089_v15 = vrot.slane %v2088_v58, 1 }
 0xf34   :  { %v2090_v61 = vadd.f32 %v2089_v15, %v2088_v58  ;;  %v3677_v58 = vpack.c.bf16 %v2269_v59, %v2267_v57  ;;  %v2272_v15 = vld [vmem:[#allocation2 + $0x1f8] sm:$0xff] }
 0xf36   :  { %v2091_v62 = vmul.f32 0.0625, %v2090_v61  ;;  %v2274_v61 = vld [vmem:[#allocation2 + $0x208] sm:$0xff] }
 0xf38   :  { %v2092_v3 = vadd.f32 1e-05, %v2091_v62  ;;  %v3679_v62 = vpack.c.bf16 %v2274_v61, %v2272_v15 }
 0xf3a   :  { %3752 = vrsqrt.f32 %v2092_v3  ;;  %v2271_v3 = vld [vmem:[#allocation2 + $0x1f0] sm:$0xff] }
 0xf44   :  { %v3753_v1 = vpop.eup %3752 }
 0xf45   :  { %v2094_v12 = vmul.f32 %v3753_v1, %v2070_v9  ;;  %v2273_v9 = vld [vmem:[#allocation2 + $0x200] sm:$0xff] }
 0xf46   :  { %v3681_v1 = vpack.c.bf16 %v2273_v9, %v2271_v3 }
 0xf47   :  { %v2100_v52 = vrot.slane %v2094_v12, %v4254_v46  ;;  %v2095_v7 = vmul.f32 %v2094_v12, %v2079_v41  ;;  %v3671_v41 = vpack.c.bf16 %v2266_v39, %v2264_v34 }
 0xf49   :  { %v2101_v51 = vmul.f32 %v2100_v52, %v2061_v5  ;;  %v2102_v8 = vmul.f32 %v3167_v19, %v2100_v52  ;;  %v2096_v4 = vsub.f32 %v2071_v13, %v2095_v7  ;;  %v3665_v19 = vpack.c.bf16 %v2257_v18, %v2255_v55  ;;  %v2260_v5 = vld [vmem:[#allocation2 + $0x198] sm:$0xff] }
 0xf4a   :  { %v3667_v22 = vpack.c.bf16 %v2262_v21, %v2260_v5 }
 0xf4b   :  { %v2106_v17 = vrot.slane %v2096_v4, %v4254_v46 }
 0xf4d   :  { %v2107_v53 = vadd.f32 %v2106_v17, %v2101_v51  ;;  %v2108_v10 = vadd.f32 %v2106_v17, %v2102_v8 }
 0xf4f   :  { %v2109_v0 = vmax.f32 %v2107_v53, 0.0  ;;  %v2110_v37 = vmax.f32 %v2108_v10, 0.0 }
 0xf51   :  { %3200 = vmatprep.mubr.f32.mxu1 %v2109_v0 }
 0xf52   :  { %3201 = vmatmul.mubr.f32.vlgmr.msra.gmra.mrb[18].mxu1 %v2110_v37 }
 0xf53   :  { %3686 = vmatpush3.bf16.msra.mxu1 %v4323_v23  ;;  %v2244_v23 = vld [vmem:[#allocation2 + $0x118] sm:$0xff] }
 0xf54   :  { %3688 = vmatprep.subr.bf16.mxu1 %v4325_v24  ;;  %v2246_v24 = vld [vmem:[#allocation2 + $0x128] sm:$0xff] }
 0xf57   :  { %3690 = vmatpush3.bf16.msra.mxu1 %v4329_v29  ;;  %v3651_v29 = vpack.c.bf16 %v2246_v24, %v2244_v23 }
 0xf58   :  { %3692 = vmatprep.subr.bf16.mxu1 %v4332_v30  ;;  %v2243_v30 = vld [vmem:[#allocation2 + $0x110] sm:$0xff] }
 0xf59   :  { %3652 = vmatprep.subr.bf16.mxu0 %v3651_v29 }
 0xf5b   :  { %3694 = vmatpush3.bf16.msra.mxu1 %v4335_v35  ;;  %v2245_v35 = vld [vmem:[#allocation2 + $0x120] sm:$0xff] }
 0xf5c   :  { %3696 = vmatprep.subr.bf16.mxu1 %v4338_v36  ;;  %v3653_v36 = vpack.c.bf16 %v2245_v35, %v2243_v30 }
 0xf5e   :  { %3654 = vmatpush1.bf16.msra.mxu0 %v3653_v36 }
 0xf5f   :  { %3698 = vmatpush3.bf16.msra.mxu1 %v4341_v50  ;;  %v2248_v50 = vld [vmem:[#allocation2 + $0x138] sm:$0xff] }
 0xf60   :  { %3700 = vmatprep.subr.bf16.mxu1 %v4344_v60  ;;  %v2250_v60 = vld [vmem:[#allocation2 + $0x148] sm:$0xff] }
 0xf63   :  { %3702 = vmatpush3.bf16.msra.mxu1 %v4347_v11  ;;  %v3655_v11 = vpack.c.bf16 %v2250_v60, %v2248_v50 }
 0xf64   :  { %3704 = vmatprep.subr.bf16.mxu1 %v4350_v16  ;;  %v2247_v16 = vld [vmem:[#allocation2 + $0x130] sm:$0xff] }
 0xf65   :  { %3656 = vmatprep.subr.bf16.mxu0 %v3655_v11 }
 0xf67   :  { %3706 = vmatpush3.bf16.msra.mxu1 %v4353_v20  ;;  %v2249_v20 = vld [vmem:[#allocation2 + $0x140] sm:$0xff] }
 0xf68   :  { %3708 = vmatprep.subr.bf16.mxu1 %v4356_v27  ;;  %v3657_v27 = vpack.c.bf16 %v2249_v20, %v2247_v16 }
 0xf6a   :  { %3658 = vmatpush1.bf16.msra.mxu0 %v3657_v27  ;;  %v2202_v27 = vld [vmem:[#allocation3 + $0x320] sm:$0x1] }
 0xf6b   :  { %3710 = vmatpush3.bf16.msra.mxu1 %v4359_v38  ;;  %v2252_v38 = vld [vmem:[#allocation2 + $0x158] sm:$0xff] }
 0xf6c   :  { %3712 = vmatprep.subr.bf16.mxu1 %v4362_v44  ;;  %v2254_v44 = vld [vmem:[#allocation2 + $0x168] sm:$0xff] }
 0xf6d   :  { %v3659_v63 = vpack.c.bf16 %v2254_v44, %v2252_v38 }
 0xf6f   :  { %3714 = vmatpush3.bf16.msra.mxu1 %v4365_v56  ;;  %v2251_v56 = vld [vmem:[#allocation2 + $0x150] sm:$0xff]  ;;  %3660 = vmatprep.subr.bf16.mxu0 %v3659_v63  ;;  %v2203_v63 = vld [vmem:[#allocation3 + $0x321] sm:$0x1] }
 0xf70   :  { %v3661_v32 = vpack.c.bf16 %v2253_v31, %v2251_v56 }
 0xf72   :  { %3662 = vmatpush1.bf16.msra.mxu0 %v3661_v32 }
 0xf73   :  { %3664 = vmatprep.subr.bf16.mxu0 %v3663_v14 }
 0xf76   :  { %3666 = vmatpush1.bf16.msra.mxu0 %v3665_v19 }
 0xf77   :  { %3668 = vmatprep.subr.bf16.mxu0 %v3667_v22 }
 0xf7a   :  { %3670 = vmatpush1.bf16.msra.mxu0 %v3669_v28 }
 0xf7b   :  { %3672 = vmatprep.subr.bf16.mxu0 %v3671_v41 }
 0xf7e   :  { %3674 = vmatpush1.bf16.msra.mxu0 %v3673_v45 }
 0xf7f   :  { %3676 = vmatprep.subr.bf16.mxu0 %v3675_v54 }
 0xf82   :  { %3678 = vmatpush1.bf16.msra.mxu0 %v3677_v58 }
 0xf83   :  { %3680 = vmatprep.subr.bf16.mxu0 %v3679_v62 }
 0xf86   :  { %3682 = vmatpush1.bf16.msra.mxu0 %v3681_v1 }
0x1025   :  { %v3202_v12 = vpop.f32.mrb[18].mxu1 }
0x1026   :  { %v2193_v13 = vpop.f32.mrb[19].mxu1 }
0x1027   :  { %v2204_v52 = vadd.f32 %v3202_v12, %v2193_v13 }
0x1029   :  { %v2205_v7 = vrot.slane %v2204_v52, 4 }
0x102b   :  { %v2206_v51 = vadd.f32 %v2205_v7, %v2204_v52 }
0x102d   :  { %v2207_v8 = vrot.slane %v2206_v51, 2 }
0x102f   :  { %v2208_v4 = vadd.f32 %v2207_v8, %v2206_v51 }
0x1031   :  { %v2209_v17 = vrot.slane %v2208_v4, 1 }
0x1033   :  { %v2210_v53 = vadd.f32 %v2209_v17, %v2208_v4 }
0x1035   :  { %v2211_v10 = vmul.f32 0.0625, %v2210_v53 }
0x1037   :  { %v2212_v0 = vsub.f32 %v2193_v13, %v2211_v10  ;;  %v2213_v37 = vsub.f32 %v3202_v12, %v2211_v10 }
0x1039   :  { %v2214_v23 = vmul.f32 %v2212_v0, %v2212_v0  ;;  %v2215_v24 = vmul.f32 %v2213_v37, %v2213_v37 }
0x103b   :  { %v2216_v29 = vadd.f32 %v2215_v24, %v2214_v23 }
0x103d   :  { %v2217_v30 = vrot.slane %v2216_v29, 4 }
0x103f   :  { %v2218_v35 = vadd.f32 %v2217_v30, %v2216_v29 }
0x1041   :  { %v2219_v36 = vrot.slane %v2218_v35, 2 }
0x1043   :  { %v2220_v50 = vadd.f32 %v2219_v36, %v2218_v35 }
0x1045   :  { %v2221_v60 = vrot.slane %v2220_v50, 1 }
0x1047   :  { %v2222_v11 = vadd.f32 %v2221_v60, %v2220_v50 }
0x1049   :  { %v2223_v16 = vmul.f32 0.0625, %v2222_v11 }
0x104b   :  { %v2224_v20 = vadd.f32 1e-05, %v2223_v16 }
0x104d   :  { %3754 = vrsqrt.f32 %v2224_v20 }
0x1057   :  { %v3755_v38 = vpop.eup %3754 }
0x1058   :  { %v2226_v44 = vmul.f32 %v3755_v38, %v2202_v27 }
0x105a   :  { %v2227_v56 = vmul.f32 %v2226_v44, %v2211_v10  ;;  %v2232_v31 = vrot.slane %v2226_v44, %v4254_v46 }
0x105c   :  { %v2228_v32 = vsub.f32 %v2203_v63, %v2227_v56  ;;  %v2233_v33 = vmul.f32 %v2232_v31, %v2193_v13  ;;  %v2234_v6 = vmul.f32 %v3202_v12, %v2232_v31  ;;  %v2352_v63 = vld [vmem:[#allocation2 + $0x210] ss:$8 sm:$0x3] }
0x105e   :  { %v2238_v14 = vrot.slane %v2228_v32, %v4254_v46 }
0x1060   :  { %v2239_v55 = vadd.f32 %v2238_v14, %v2233_v33  ;;  %v2240_v18 = vadd.f32 %v2238_v14, %v2234_v6 }
0x1062   :  { %v2241_v19 = vmax.f32 %v2239_v55, 0.0  ;;  %v2242_v5 = vmax.f32 %v2240_v18, 0.0 }
0x1064   :  { %2340 = vmatmul.mubr.f32.vlgmr.msra.gmra.mrb[20].mxu0 %v2241_v19 }
0x1065   :  { %2345 = vmatprep.mubr.f32.mxu0 %v4006_v2 }
0x1068   :  { %2346 = vmatmul.mubr.f32.gmra.mrb[22].mxu0 %v2242_v5 }
0x1137   :  { %v2341_v21 = vpop.f32.mrb[20].mxu0 }
0x1138   :  { %v2343_v22 = vpop.f32.mrb[21].mxu0 }
0x113b   :  { %v2347_v25 = vpop.f32.mrb[22].mxu0 }
0x113c   :  { %v2354_v26 = vadd.f32 %v2347_v25, %v2341_v21  ;;  %v2349_v28 = vpop.f32.mrb[23].mxu0 }
0x113d   :  { %v2361_v34 = vadd.f32 %v2349_v28, %v2343_v22 }
0x113e   :  { %v2355_v39 = vrot.slane %v2354_v26, 4 }
0x113f   :  { %v2362_v41 = vrot.slane %v2361_v34, 4 }
0x1140   :  { %v2356_v42 = vadd.f32 %v2355_v39, %v2354_v26  ;;  %v2353_v39 = vld [vmem:[#allocation2 + $0x211] ss:$8 sm:$0x3] }
0x1141   :  { %v2363_v43 = vadd.f32 %v2362_v41, %v2361_v34 }
0x1142   :  { %v2357_v45 = vrot.slane %v2356_v42, 2 }
0x1143   :  { %v2364_v48 = vrot.slane %v2363_v43, 2 }
0x1144   :  { %v2358_v49 = vadd.f32 %v2357_v45, %v2356_v42 }
0x1145   :  { %v2365_v54 = vadd.f32 %v2364_v48, %v2363_v43 }
0x1146   :  { %v2359_v57 = vrot.slane %v2358_v49, 1 }
0x1147   :  { %v2366_v59 = vrot.slane %v2365_v54, 1 }
0x1148   :  { %v2360_v58 = vadd.f32 %v2359_v57, %v2358_v49 }
0x1149   :  { %v2367_v2 = vadd.f32 %v2366_v59, %v2365_v54 }
0x114a   :  { %v2368_v15 = vmul.f32 0.0625, %v2360_v58 }
0x114b   :  { %v2369_v61 = vmul.f32 0.0625, %v2367_v2  ;;  %v3760_v2 = vld [vmem:[#allocation3 + $0x428] ss:$0 sm:$0xff] }
0x114c   :  { %v2370_v62 = vsub.f32 %v2341_v21, %v2368_v15  ;;  %v2372_v3 = vsub.f32 %v2347_v25, %v2368_v15 }
0x114d   :  { %v2371_v9 = vsub.f32 %v2343_v22, %v2369_v61  ;;  %v2373_v1 = vsub.f32 %v2349_v28, %v2369_v61 }
0x114e   :  { %v2374_v12 = vmul.f32 %v2370_v62, %v2370_v62  ;;  %v2376_v13 = vmul.f32 %v2372_v3, %v2372_v3 }
0x114f   :  { %v2375_v52 = vmul.f32 %v2371_v9, %v2371_v9  ;;  %v2377_v7 = vmul.f32 %v2373_v1, %v2373_v1 }
0x1150   :  { %v2378_v51 = vadd.f32 %v2376_v13, %v2374_v12 }
0x1151   :  { %v2385_v8 = vadd.f32 %v2377_v7, %v2375_v52 }
0x1152   :  { %v2379_v4 = vrot.slane %v2378_v51, 4 }
0x1153   :  { %v2386_v17 = vrot.slane %v2385_v8, 4 }
0x1154   :  { %v2380_v53 = vadd.f32 %v2379_v4, %v2378_v51 }
0x1155   :  { %v2387_v10 = vadd.f32 %v2386_v17, %v2385_v8 }
0x1156   :  { %v2381_v0 = vrot.slane %v2380_v53, 2 }
0x1157   :  { %v2388_v37 = vrot.slane %v2387_v10, 2 }
0x1158   :  { %v2382_v23 = vadd.f32 %v2381_v0, %v2380_v53 }
0x1159   :  { %v2389_v24 = vadd.f32 %v2388_v37, %v2387_v10 }
0x115a   :  { %v2383_v29 = vrot.slane %v2382_v23, 1 }
0x115b   :  { %v2390_v30 = vrot.slane %v2389_v24, 1 }
0x115c   :  { %v2384_v35 = vadd.f32 %v2383_v29, %v2382_v23 }
0x115d   :  { %v2391_v36 = vadd.f32 %v2390_v30, %v2389_v24 }
0x115e   :  { %v2392_v50 = vmul.f32 0.0625, %v2384_v35 }
0x115f   :  { %v2393_v60 = vmul.f32 0.0625, %v2391_v36 }
0x1160   :  { %v2394_v11 = vadd.f32 1e-05, %v2392_v50 }
0x1161   :  { %v2395_v16 = vadd.f32 1e-05, %v2393_v60 }
0x1162   :  { %3756 = vrsqrt.f32 %v2394_v11 }
0x1163   :  { %3758 = vrsqrt.f32 %v2395_v16 }
0x116c   :  { %v3757_v20 = vpop.eup %3756 }
0x116d   :  { %v3759_v27 = vpop.eup %3758 }
0x116e   :  { %v2400_v38 = vcombine.low %v3757_v20, %v3759_v27 }
0x1170   :  { %v2407_v44 = vrot.slane %v2400_v38, %v4250_v40 }
0x1172   :  { %v2414_v56 = vrot.slane %v2407_v44, %v4250_v40 }
0x1174   :  { %v2416_v31 = vmul.f32 %v2414_v56, %v2352_v63 }
0x1176   :  { %v2421_v32 = vrot.slane %v2416_v31, %v4254_v46  ;;  %v2425_v33 = vrot.slane %v2416_v31, %v4256_v47 }
0x1178   :  { %v2428_v6 = vmul.f32 %v2421_v32, %v2368_v15  ;;  %v2429_v14 = vmul.f32 %v2425_v33, %v2369_v61  ;;  %v2452_v55 = vmul.f32 %v2425_v33, %v2349_v28  ;;  %v2450_v18 = vmul.f32 %v2425_v33, %v2343_v22 }
0x1179   :  { %v2449_v19 = vmul.f32 %v2421_v32, %v2341_v21  ;;  %v2451_v5 = vmul.f32 %v2421_v32, %v2347_v25 }
0x117a   :  { %v2432_v26 = vcombine.low %v2428_v6, %v2429_v14 }
0x117c   :  { %v2439_v34 = vrot.slane %v2432_v26, %v4250_v40 }
0x117e   :  { %v2446_v41 = vrot.slane %v2439_v34, %v4250_v40 }
0x1180   :  { %v2448_v42 = vsub.f32 %v2353_v39, %v2446_v41 }
0x1182   :  { %v2457_v43 = vrot.slane %v2448_v42, %v4254_v46  ;;  %v2461_v45 = vrot.slane %v2448_v42, %v4256_v47 }
0x1184   :  { %v2467_v48 = vadd.f32 %v2461_v45, %v2452_v55  ;;  %v2465_v49 = vadd.f32 %v2461_v45, %v2450_v18  ;;  %v2464_v54 = vadd.f32 %v2457_v43, %v2449_v19  ;;  %v2466_v57 = vadd.f32 %v2457_v43, %v2451_v5 }
0x1186   :  { %v2469_v59 = vmax.f32 %v2465_v49, 0.0  ;;  %v2468_v28 = vmax.f32 %v2464_v54, 0.0  ;;  %v2471_v21 = vmax.f32 %v2467_v48, 0.0  ;;  %v2470_v22 = vmax.f32 %v2466_v57, 0.0 }
0x1188   :  { %2536 = vmatprep.mubr.f32.mxu1 %v2469_v59 }
0x1189   :  { %2537 = vmatmul.mubr.f32.vlgmr.msra.gmra.mrb[20].mxu1 %v2468_v28 }
0x118a   :  { %2541 = vmatprep.mubr.f32.mxu1 %v2471_v21 }
0x118d   :  { %2542 = vmatmul.mubr.f32.gmra.mrb[22].mxu1 %v2470_v22 }
0x125c   :  { %v2917_v25 = vpop.f32.mrb[20].mxu1 }
0x125d   :  { %v2918_v58 = vpop.f32.mrb[21].mxu1 }
0x125e   :  { %v2919_v40 = vadd.f32 %v2918_v58, %v2917_v25 }
0x1260   :  { %v2539_v15 = vadd.f32 %v3760_v2, %v2919_v40  ;;  %v2920_v46 = vpop.f32.mrb[22].mxu1 }
0x1261   :  { %v2921_v61 = vpop.f32.mrb[23].mxu1 }
0x1262   :  { %v2547_v47 = vmax.f32 %v2539_v15, 0.0  ;;  %v2922_v62 = vadd.f32 %v2921_v61, %v2920_v46 }
0x1264   :  { %2549 = vst [vmem:[%s4433_s3] sm:$0xff] %v2547_v47  ;;  %v2544_v3 = vadd.f32 %v3760_v2, %v2922_v62 }
0x1266   :  { %v2548_v9 = vmax.f32 %v2544_v3, 0.0 }
0x1268   :  { %2550 = vst [vmem:[%s4433_s3 + $0x8] sm:$0xff] %v2548_v9 }
0x1269   :  { %2558 = vsyncpa [#allocation6], 1 }
0x126a   :  { %2559 = vsyncmov [#allocation4] }
0x126d   :  { %s2560_s8 = vpop.sfrf %2559 }
0x126e   :  { %p2619_p3 = scmp.ne.s32.totalorder %s2560_s8, 0 }
0x1270   :  { %2564 = shalt.err (%p2619_p3)  }
0x1271   :  { %2566 = vsyncmov [#allocation4 + $0x1] }
0x1274   :  { %s2567_s10 = vpop.sfrf %2566 }
0x1275   :  { %p2620_p13 = scmp.ne.s32.totalorder %s2567_s10, 0 }
0x1277   :  { %2571 = shalt.err (%p2620_p13)  }
0x1278   :  { %2573 = vsyncmov [#allocation4 + $0x2] }
0x127b   :  { %s2574_s11 = vpop.sfrf %2573 }
0x127c   :  { %p2621_p0 = scmp.ne.s32.totalorder %s2574_s11, 0 }
0x127e   :  { %2578 = shalt.err (%p2621_p0)  }
0x127f   :  { %2580 = vsyncmov [#allocation4 + $0x3] }
0x1282   :  { %s2581_s12 = vpop.sfrf %2580 }
0x1283   :  { %p2622_p9 = scmp.ne.s32.totalorder %s2581_s12, 0 }
0x1285   :  { %2585 = shalt.err (%p2622_p9)  }
0x1286   :  { %2587 = vsyncmov [#allocation4 + $0x4] }
0x1289   :  { %s2588_s13 = vpop.sfrf %2587 }
0x128a   :  { %p2623_p10 = scmp.ne.s32.totalorder %s2588_s13, 0 }
0x128c   :  { %2592 = shalt.err (%p2623_p10)  }
0x128d   :  { %2594 = vsyncmov [#allocation4 + $0x5] }
0x1290   :  { %s2595_s3 = vpop.sfrf %2594 }
0x1291   :  { %p2624_p1 = scmp.ne.s32.totalorder %s2595_s3, 0 }
0x1293   :  { %2599 = shalt.err (%p2624_p1)  }
0x1294   :  { %2601 = vsyncmov [#allocation4 + $0x6] }
0x1297   :  { %s2602_s14 = vpop.sfrf %2601 }
0x1298   :  { %p2625_p6 = scmp.ne.s32.totalorder %s2602_s14, 0 }
0x129a   :  { %2606 = shalt.err (%p2625_p6)  }
0x129b   :  { %2608 = vsyncmov [#allocation4 + $0x7] }
0x129e   :  { %s2609_s16 = vpop.sfrf %2608 }
0x129f   :  { %p2626_p2 = scmp.ne.s32.totalorder %s2609_s16, 0 }
0x12a1   :  { %2613 = shalt.err (%p2626_p2)  }

</bundles_post_ra>
